<compile_context>
chip_gen: v5e
topology: v5e:2x2
jax: 0.10.0
libtpu: 0.0.40
codegen_flags: <defaults>
</compile_context>

<pallas_src>
import jax
import jax.numpy as jnp
from jax.experimental import pallas as pl
from jax.experimental.pallas import tpu as pltpu


# Padded (lane-dense) layer widths.
H1_P = 1024            # 1000 -> 1024
H2_P = 512             # 500  -> 512
OUT_P = 128            # 5    -> 128
OUT_REAL = 5
B_TOT = H1_P + H2_P + OUT_P   # concatenated bias width (1664 = 13*128)
TK_MAX = 2048          # max K (d_in) tile -> resident w1 slice <= 4 MiB bf16


def _round_up(x, m):
    return ((x + m - 1) // m) * m


def _choose_tb(B):
    """Batch tile: sublane/bf16-pack aligned (mult. of 16)."""
    if B <= 32:
        return _round_up(B, 16)                 # tiny batch: single small tile
    if B <= 512:
        return _round_up((B + 1) // 2, 16)      # >=2 tiles -> both v7x TCs busy
    return 256                                  # large batch: amortize overhead


def _choose_tk(d_in_p):
    """Largest multiple of 128 <= TK_MAX that divides d_in_p (no extra K pad)."""
    m = d_in_p // 128
    best = 1
    for d in range(1, min(m, TK_MAX // 128) + 1):
        if m % d == 0:
            best = d
    return 128 * best


def fnet_kernel(x_ref, w1_ref, w2_ref, w3_ref, b_ref, o_ref, acc_ref):
    k = pl.program_id(1)

    @pl.when(k == 0)
    def _init():
        acc_ref[...] = jnp.zeros_like(acc_ref)

    # fc1 partial product over this K tile (bf16 MXU operands, f32 accumulate).
    x = x_ref[...].astype(jnp.bfloat16)
    acc_ref[...] += jnp.dot(x, w1_ref[...], preferred_element_type=jnp.float32)

    @pl.when(k == pl.num_programs(1) - 1)
    def _finish():
        b1 = b_ref[:, 0:H1_P]
        b2 = b_ref[:, H1_P:H1_P + H2_P]
        b3 = b_ref[:, H1_P + H2_P:B_TOT]
        h1 = jnp.maximum(acc_ref[...] + b1, 0.0)                       # f32
        h2 = jnp.dot(h1.astype(jnp.bfloat16), w2_ref[...],
                     preferred_element_type=jnp.float32)
        h2 = jnp.maximum(h2 + b2, 0.0)                                 # f32
        o = jnp.dot(h2.astype(jnp.bfloat16), w3_ref[...],
                    preferred_element_type=jnp.float32)
        o_ref[...] = (o + b3).astype(o_ref.dtype)                      # (TB,128)


def init_params(key, d_in):
    """Unpadded f32 params, (in, out) layout (matches nn.Linear's x @ W.T + b)."""
    k1, k2, k3, k4, k5, k6 = jax.random.split(key, 6)
    s1 = 1.0 / jnp.sqrt(d_in)
    s2 = 1.0 / jnp.sqrt(1000.0)
    s3 = 1.0 / jnp.sqrt(500.0)
    w1 = jax.random.uniform(k1, (d_in, 1000), jnp.float32, -s1, s1)
    b1 = jax.random.uniform(k2, (1000,), jnp.float32, -s1, s1)
    w2 = jax.random.uniform(k3, (1000, 500), jnp.float32, -s2, s2)
    b2 = jax.random.uniform(k4, (500,), jnp.float32, -s2, s2)
    w3 = jax.random.uniform(k5, (500, 5), jnp.float32, -s3, s3)
    b3 = jax.random.uniform(k6, (5,), jnp.float32, -s3, s3)
    return w1, b1, w2, b2, w3, b3


def prepare_params(params, d_in):
    """Zero-pad to lane-dense widths, cast weights to bf16, fold biases (once)."""
    w1, b1, w2, b2, w3, b3 = params
    d_in_p = _round_up(d_in, 128)

    w1_p = jnp.zeros((d_in_p, H1_P), jnp.bfloat16).at[:d_in, :1000].set(
        w1.astype(jnp.bfloat16))
    # Invariant: rows 1000..H1_P-1 of w2_p (and 500..H2_P-1 of w3_p) stay zero.
    # h1/h2's padded lanes are exactly 0 only because the bias pad lanes are 0
    # and ReLU(0)=0, so the zero weight rows keep them inert downstream.
    w2_p = jnp.zeros((H1_P, H2_P), jnp.bfloat16).at[:1000, :500].set(
        w2.astype(jnp.bfloat16))
    w3_p = jnp.zeros((H2_P, OUT_P), jnp.bfloat16).at[:500, :OUT_REAL].set(
        w3.astype(jnp.bfloat16))

    # Biases stay f32 (added on the f32 accumulator); padded lanes are 0.
    b1_p = jnp.zeros((1, H1_P), jnp.float32).at[:, :1000].set(b1[None, :])
    b2_p = jnp.zeros((1, H2_P), jnp.float32).at[:, :500].set(b2[None, :])
    b3_p = jnp.zeros((1, OUT_P), jnp.float32).at[:, :OUT_REAL].set(b3[None, :])
    bias = jnp.concatenate([b1_p, b2_p, b3_p], axis=1)   # (1, 1664)

    return dict(w1=w1_p, w2=w2_p, w3=w3_p, bias=bias, d_in=d_in, d_in_p=d_in_p)


def fnet_forward(x_nchw, prepared):
    """x_nchw: (B, 1, dimx, dimy) f32. Returns (B, 5) f32."""
    w1, w2, w3, bias = prepared["w1"], prepared["w2"], prepared["w3"], prepared["bias"]
    d_in, d_in_p = prepared["d_in"], prepared["d_in_p"]

    B = x_nchw.shape[0]
    x = x_nchw.reshape(B, d_in)          # same as torch x.view(B, -1)

    TB = _choose_tb(B)
    Bp = _round_up(B, TB)
    TK = _choose_tk(d_in_p)
    num_k = d_in_p // TK

    needs_pad = (Bp != B) or (d_in_p != d_in)
    if needs_pad:
        # One-time pad; cast to bf16 so the padded copy's DMA bytes are halved.
        x_in = jnp.zeros((Bp, d_in_p), jnp.bfloat16).at[:B, :d_in].set(
            x.astype(jnp.bfloat16))
    else:
        # No extra HBM pass: feed x as-is (f32); the kernel casts to bf16.
        x_in = x

    grid = (Bp // TB, num_k)

    # VMEM budget derived from actual operand/scratch sizes (+50% headroom).
    x_bytes = x_in.dtype.itemsize
    w1_bufs = 1 if num_k == 1 else 2
    vmem_bytes = (
        w1_bufs * TK * H1_P * 2                      # w1 slice (bf16)
        + H1_P * H2_P * 2 + H2_P * OUT_P * 2         # resident w2, w3 (bf16)
        + B_TOT * 4                                  # concatenated bias (f32)
        + 2 * TB * TK * x_bytes                      # x tile, double-buffered
        + 2 * TB * OUT_P * 4                         # out tile, double-buffered
        + TB * H1_P * 4                              # fc1 accumulator scratch
    )
    vmem_limit = min(int(vmem_bytes * 1.5) + (2 << 20), 100 << 20)

    flops = 2 * Bp * (d_in_p * H1_P + H1_P * H2_P + H2_P * OUT_P)
    bytes_accessed = (x_in.size * x_bytes
                      + (w1.size + w2.size + w3.size) * 2
                      + bias.size * 4
                      + Bp * OUT_P * 4)

    resident = pl.Buffered(1)                          # constant index_map
    w1_mode = pl.Buffered(1) if num_k == 1 else pl.Buffered(2)

    out_p = pl.pallas_call(
        fnet_kernel,
        out_shape=jax.ShapeDtypeStruct((Bp, OUT_P), jnp.float32),
        grid_spec=pltpu.PrefetchScalarGridSpec(
            num_scalar_prefetch=0,
            grid=grid,
            in_specs=[
                # x: tiled over batch and K -> pipelined DMA overlaps compute.
                pl.BlockSpec((TB, TK), lambda i, k: (i, k)),
                # w1: tiled over K (double-buffered iff it actually changes).
                pl.BlockSpec((TK, H1_P), lambda i, k: (k, 0),
                             pipeline_mode=w1_mode),
                # w2/w3/bias: constant block index -> VMEM-resident, 1 buffer.
                pl.BlockSpec((H1_P, H2_P), lambda i, k: (0, 0),
                             pipeline_mode=resident),
                pl.BlockSpec((H2_P, OUT_P), lambda i, k: (0, 0),
                             pipeline_mode=resident),
                pl.BlockSpec((1, B_TOT), lambda i, k: (0, 0),
                             pipeline_mode=resident),
            ],
            out_specs=pl.BlockSpec((TB, OUT_P), lambda i, k: (i, 0)),
            scratch_shapes=[pltpu.VMEM((TB, H1_P), jnp.float32)],
        ),
        compiler_params=pltpu.CompilerParams(
            dimension_semantics=("parallel", "arbitrary"),
            vmem_limit_bytes=vmem_limit,
        ),
        cost_estimate=pl.CostEstimate(
            flops=flops, transcendentals=0, bytes_accessed=bytes_accessed),
    )(x_in, w1, w2, w3, bias)

    return out_p[:B, :OUT_REAL]


if __name__ == "__main__":
    key = jax.random.PRNGKey(0)
    kx, kp = jax.random.split(key)

    B, C, dimx, dimy = 2, 1, 16, 16
    d_in = C * dimx * dimy

    x = jax.random.normal(kx, (B, C, dimx, dimy), jnp.float32)
    params = init_params(kp, d_in)
    prepared = prepare_params(params, d_in)

    out = fnet_forward(x, prepared)
    out = jax.block_until_ready(out)

    # Pure-JAX f32 reference (tolerance loosened for bf16 matmul operands —
    # intentional mixed-precision tradeoff).
    w1, b1, w2, b2, w3, b3 = params
    xf = x.reshape(B, -1)
    ref = jnp.maximum(xf @ w1 + b1, 0.0)
    ref = jnp.maximum(ref @ w2 + b2, 0.0)
    ref = ref @ w3 + b3

    assert out.shape == (B, OUT_REAL)
    err = jnp.max(jnp.abs(out - ref))
    assert jnp.allclose(out, ref, atol=5e-2, rtol=5e-2), f"max abs err {err}"

    print("KERNEL_OK")
</pallas_src>

<mosaic_0001>
module attributes {stable_mosaic.version = 11 : i64} {
  func.func @fnet_kernel(%arg0: i32, %arg1: i32, %arg2: memref<16x256xbf16, #tpu.memory_space<vmem>>, %arg3: memref<256x1024xbf16, #tpu.memory_space<vmem>>, %arg4: memref<1024x512xbf16, #tpu.memory_space<vmem>>, %arg5: memref<512x128xbf16, #tpu.memory_space<vmem>>, %arg6: memref<1x1664xf32, #tpu.memory_space<vmem>>, %arg7: memref<16x128xf32, #tpu.memory_space<vmem>>, %arg8: memref<16x1024xf32, #tpu.memory_space<vmem>>) attributes {dimension_semantics = [#tpu.dimension_semantics<parallel>, #tpu.dimension_semantics<arbitrary>], iteration_bounds = array<i64: 1, 1>, scalar_prefetch = 0 : i64, scratch_operands = 1 : i64, tpu.core_type = #tpu.core_type<tc>, window_params = [{transform_indices = @transform_0, window_bounds = array<i64: 16, 256>}, {pipeline_mode = #tpu.pipeline_mode<synchronous>, transform_indices = @transform_1, window_bounds = array<i64: 256, 1024>}, {pipeline_mode = #tpu.pipeline_mode<synchronous>, transform_indices = @transform_2, window_bounds = array<i64: 1024, 512>}, {pipeline_mode = #tpu.pipeline_mode<synchronous>, transform_indices = @transform_3, window_bounds = array<i64: 512, 128>}, {pipeline_mode = #tpu.pipeline_mode<synchronous>, transform_indices = @transform_4, window_bounds = array<i64: 1, 1664>}, {transform_indices = @transform_5, window_bounds = array<i64: 16, 128>}]} {
    %c0_i32 = arith.constant 0 : i32
    %0 = arith.cmpi eq, %arg1, %c0_i32 : i32
    %1 = arith.extui %0 : i1 to i32
    %c0_i32_0 = arith.constant 0 : i32
    %2 = arith.cmpi ne, %1, %c0_i32_0 : i32
    scf.if %2 {
      %cst_10 = arith.constant 0.000000e+00 : f32
      %12 = vector.broadcast %cst_10 : f32 to vector<16x1024xf32>
      %c0_11 = arith.constant 0 : index
      %c0_12 = arith.constant 0 : index
      %13 = vector.load %arg8[%c0_11, %c0_12] : memref<16x1024xf32, #tpu.memory_space<vmem>>, vector<16x1024xf32>
      tpu.vector_store %arg8[%c0_11, %c0_12], %12 {strides = array<i32>} : memref<16x1024xf32, #tpu.memory_space<vmem>>, vector<16x1024xf32>,
    } else {
    }
    %c0 = arith.constant 0 : index
    %c0_1 = arith.constant 0 : index
    %3 = vector.load %arg2[%c0, %c0_1] : memref<16x256xbf16, #tpu.memory_space<vmem>>, vector<16x256xbf16>
    %c0_2 = arith.constant 0 : index
    %c0_3 = arith.constant 0 : index
    %4 = vector.load %arg8[%c0_2, %c0_3] : memref<16x1024xf32, #tpu.memory_space<vmem>>, vector<16x1024xf32>
    %c0_4 = arith.constant 0 : index
    %c0_5 = arith.constant 0 : index
    %5 = vector.load %arg3[%c0_4, %c0_5] : memref<256x1024xbf16, #tpu.memory_space<vmem>>, vector<256x1024xbf16>
    %cst = arith.constant dense<0.000000e+00> : vector<16x1024xf32>
    %6 = tpu.matmul %3, %5, %cst {dimension_numbers = #tpu.dot_dimension_numbers<[1], [0], [0], [1], [0, 0, 1, 1], [], []>} : vector<16x256xbf16>, vector<256x1024xbf16>, vector<16x1024xf32> -> vector<16x1024xf32>
    %7 = arith.addf %4, %6 : vector<16x1024xf32>
    %c0_6 = arith.constant 0 : index
    %c0_7 = arith.constant 0 : index
    %8 = vector.load %arg8[%c0_6, %c0_7] : memref<16x1024xf32, #tpu.memory_space<vmem>>, vector<16x1024xf32>
    tpu.vector_store %arg8[%c0_6, %c0_7], %7 {strides = array<i32>} : memref<16x1024xf32, #tpu.memory_space<vmem>>, vector<16x1024xf32>,
    %c0_i32_8 = arith.constant 0 : i32
    %9 = arith.cmpi eq, %arg1, %c0_i32_8 : i32
    %10 = arith.extui %9 : i1 to i32
    %c0_i32_9 = arith.constant 0 : i32
    %11 = arith.cmpi ne, %10, %c0_i32_9 : i32
    scf.if %11 {
      %c0_10 = arith.constant 0 : index
      %c0_11 = arith.constant 0 : index
      %12 = vector.load %arg6[%c0_10, %c0_11] : memref<1x1664xf32, #tpu.memory_space<vmem>>, vector<1x1024xf32>
      %c0_12 = arith.constant 0 : index
      %c1024 = arith.constant 1024 : index
      %13 = vector.load %arg6[%c0_12, %c1024] : memref<1x1664xf32, #tpu.memory_space<vmem>>, vector<1x512xf32>
      %c0_13 = arith.constant 0 : index
      %c1536 = arith.constant 1536 : index
      %14 = vector.load %arg6[%c0_13, %c1536] : memref<1x1664xf32, #tpu.memory_space<vmem>>, vector<1x128xf32>
      %c0_14 = arith.constant 0 : index
      %c0_15 = arith.constant 0 : index
      %15 = vector.load %arg8[%c0_14, %c0_15] : memref<16x1024xf32, #tpu.memory_space<vmem>>, vector<16x1024xf32>
      %16 = vector.broadcast %12 : vector<1x1024xf32> to vector<16x1024xf32>
      %17 = arith.addf %15, %16 : vector<16x1024xf32>
      %cst_16 = arith.constant 0.000000e+00 : f32
      %18 = vector.broadcast %cst_16 : f32 to vector<16x1024xf32>
      %19 = arith.maximumf %17, %18 : vector<16x1024xf32>
      %20 = arith.truncf %19 : vector<16x1024xf32> to vector<16x1024xbf16>
      %c0_17 = arith.constant 0 : index
      %c0_18 = arith.constant 0 : index
      %21 = vector.load %arg4[%c0_17, %c0_18] : memref<1024x512xbf16, #tpu.memory_space<vmem>>, vector<1024x512xbf16>
      %cst_19 = arith.constant dense<0.000000e+00> : vector<16x512xf32>
      %22 = tpu.matmul %20, %21, %cst_19 {dimension_numbers = #tpu.dot_dimension_numbers<[1], [0], [0], [1], [0, 0, 1, 1], [], []>} : vector<16x1024xbf16>, vector<1024x512xbf16>, vector<16x512xf32> -> vector<16x512xf32>
      %23 = vector.broadcast %13 : vector<1x512xf32> to vector<16x512xf32>
      %24 = arith.addf %22, %23 : vector<16x512xf32>
      %cst_20 = arith.constant 0.000000e+00 : f32
      %25 = vector.broadcast %cst_20 : f32 to vector<16x512xf32>
      %26 = arith.maximumf %24, %25 : vector<16x512xf32>
      %27 = arith.truncf %26 : vector<16x512xf32> to vector<16x512xbf16>
      %c0_21 = arith.constant 0 : index
      %c0_22 = arith.constant 0 : index
      %28 = vector.load %arg5[%c0_21, %c0_22] : memref<512x128xbf16, #tpu.memory_space<vmem>>, vector<512x128xbf16>
      %cst_23 = arith.constant dense<0.000000e+00> : vector<16x128xf32>
      %29 = tpu.matmul %27, %28, %cst_23 {dimension_numbers = #tpu.dot_dimension_numbers<[1], [0], [0], [1], [0, 0, 1, 1], [], []>} : vector<16x512xbf16>, vector<512x128xbf16>, vector<16x128xf32> -> vector<16x128xf32>
      %30 = vector.broadcast %14 : vector<1x128xf32> to vector<16x128xf32>
      %31 = arith.addf %29, %30 : vector<16x128xf32>
      %c0_24 = arith.constant 0 : index
      %c0_25 = arith.constant 0 : index
      %32 = vector.load %arg7[%c0_24, %c0_25] : memref<16x128xf32, #tpu.memory_space<vmem>>, vector<16x128xf32>
      tpu.vector_store %arg7[%c0_24, %c0_25], %31 {strides = array<i32>} : memref<16x128xf32, #tpu.memory_space<vmem>>, vector<16x128xf32>,
    } else {
    }
    return
  }
  func.func @transform_0(%arg0: i32, %arg1: i32) -> (i32, i32) {
    %c0_i32 = arith.constant 0 : i32
    return %arg0, %arg1 : i32, i32
  }
  func.func @transform_1(%arg0: i32, %arg1: i32) -> (i32, i32) {
    %c0_i32 = arith.constant 0 : i32
    %c0_i32_0 = arith.constant 0 : i32
    return %arg1, %c0_i32 : i32, i32
  }
  func.func @transform_2(%arg0: i32, %arg1: i32) -> (i32, i32) {
    %c0_i32 = arith.constant 0 : i32
    %c0_i32_0 = arith.constant 0 : i32
    %c0_i32_1 = arith.constant 0 : i32
    return %c0_i32, %c0_i32_0 : i32, i32
  }
  func.func @transform_3(%arg0: i32, %arg1: i32) -> (i32, i32) {
    %c0_i32 = arith.constant 0 : i32
    %c0_i32_0 = arith.constant 0 : i32
    %c0_i32_1 = arith.constant 0 : i32
    return %c0_i32, %c0_i32_0 : i32, i32
  }
  func.func @transform_4(%arg0: i32, %arg1: i32) -> (i32, i32) {
    %c0_i32 = arith.constant 0 : i32
    %c0_i32_0 = arith.constant 0 : i32
    %c0_i32_1 = arith.constant 0 : i32
    return %c0_i32, %c0_i32_0 : i32, i32
  }
  func.func @transform_5(%arg0: i32, %arg1: i32) -> (i32, i32) {
    %c0_i32 = arith.constant 0 : i32
    %c0_i32_0 = arith.constant 0 : i32
    return %arg0, %c0_i32 : i32, i32
  }
}

</mosaic_0001>

<bundles_post_ra>
// kernel: tpu_custom_call.1
= control target key start
LH: loop header
LB: loop body
LE: loop exit
PB: predicated region body
PF: predicated region fallthrough
CT: control target
= control target key end

     0   :  { %10 = vsyncpa [#allocation4], 0  ;;  %s6024_s0 = inlined_call_operand.hbm [shape: bf16[16,256], index: 0, kind: input, shape index: {}]   ;;  %s6025_s1 = inlined_call_operand.hbm [shape: bf16[256,1024], index: 1, kind: input, shape index: {}]   ;;  %s6026_s2 = inlined_call_operand.hbm [shape: bf16[1024,512], index: 2, kind: input, shape index: {}]   ;;  %s6027_s3 = inlined_call_operand.hbm [shape: bf16[512,128], index: 3, kind: input, shape index: {}]   ;;  %s6028_s4 = inlined_call_operand.hbm [shape: f32[1,1664], index: 4, kind: input, shape index: {}]   ;;  %s6029_s5 = inlined_call_operand.hbm [shape: f32[16,128], index: 5, kind: output, shape index: {}]  }
   0x1   :  { %11 = vsyncpa [#allocation7], 0 }
   0x2   :  { %12 = vsyncpa [#allocation10], 0  ;;  %s31_s20 = sshll.u32 %s6025_s1, 4  ;;  %s32_s20 = int_to_ptr.hbm [resolvable:$true] %s31_s20 }
   0x3   :  { %13 = vsyncpa [#allocation5], 0  ;;  %s5848_s21 = smov [#allocation6]   ;;  %s57_s25 = sshll.u32 %s6027_s3, 4  ;;  %s58_s25 = int_to_ptr.hbm [resolvable:$true] %s57_s25 }
   0x4   :  { %s33_s22 = sshll.u32 %s5848_s21, 4  ;;  %s5849_s26 = smov 512   ;;  %s34_s22 = int_to_ptr.vmem [resolvable:$true] %s33_s22 }
   0x5   :  { %s5850_s27 = smov 32   ;;  %s5851_s28 = smov [#allocation9]  }
   0x6   :  { %39 = dma.hbm_to_vmem [thread:$0]  %s32_s20, 16384, %s34_s22, [#allocation7], %s5849_s26, %s5849_s26, %s5850_s27  }
   0x7   :  { %s59_s29 = sshll.u32 %s5851_s28, 4  ;;  %s5852_s30 = smov 64   ;;  %s60_s29 = int_to_ptr.vmem [resolvable:$true] %s59_s29 }
   0x8   :  { %s5853_s6 = smov 4   ;;  %s18_s8 = sshll.u32 %s6024_s0, 4  ;;  %s19_s8 = int_to_ptr.hbm [resolvable:$true] %s18_s8 }
   0x9   :  { %65 = dma.hbm_to_vmem [thread:$0]  %s58_s25, 4096, %s60_s29, [#allocation10], %s5852_s30, %s5852_s30, %s5853_s6  }
   0xa   :  { %s5854_s9 = smov [#allocation3]   ;;  %s44_s12 = sshll.u32 %s6026_s2, 4  ;;  %s45_s12 = int_to_ptr.hbm [resolvable:$true] %s44_s12 }
   0xb   :  { %s20_s10 = sshll.u32 %s5854_s9, 4  ;;  %s5855_s13 = smov 128   ;;  %s21_s10 = int_to_ptr.vmem [resolvable:$true] %s20_s10 }
   0xc   :  { %s5856_s14 = smov 8   ;;  %s5857_s15 = smov [#allocation8]  }
   0xd   :  { %26 = dma.hbm_to_vmem [thread:$0]  %s19_s8, 256, %s21_s10, [#allocation4], %s5855_s13, %s5855_s13, %s5856_s14  }
   0xe   :  { %s46_s16 = sshll.u32 %s5857_s15, 4  ;;  %s5858_s17 = smov 256   ;;  %s47_s16 = int_to_ptr.vmem [resolvable:$true] %s46_s16 }
   0xf   :  { %s5859_s0 = smov 16   ;;  %s71_s20 = sshll.u32 %s6028_s4, 4  ;;  %s72_s20 = int_to_ptr.hbm [resolvable:$true] %s71_s20 }
  0x10   :  { %52 = dma.hbm_to_vmem [thread:$0]  %s45_s12, 32768, %s47_s16, [#allocation7], %s5858_s17, %s5858_s17, %s5859_s0  }
  0x11   :  { %s5860_s21 = smov [#allocation11]  }
  0x12   :  { %s73_s2 = sshll.u32 %s5860_s21, 4  ;;  %s74_s2 = int_to_ptr.vmem [resolvable:$true] %s73_s2 }
  0x13   :  { %76 = dma.hbm_to_vmem [thread:$0]  %s72_s20, 208, %s74_s2, [#allocation10]  }
  0x14   :  { %5840 = dma.done.wait [#allocation4], 256  }
  0x15   :  { %5841 = vsyncadd [#allocation4], 4294967040 }
  0x16   :  { %5842 = dma.done.wait [#allocation7], 49152  }
  0x17   :  { %5843 = vsyncadd [#allocation7], 4294918144 }
  0x18   :  { %5844 = dma.done.wait [#allocation10], 4304  }
  0x19   :  { %5845 = vsyncadd [#allocation10], 4294962992  ;;  %v3825_v0 = vld [vmem:[#allocation6 + $0x1c0] sm:$0xf]  ;;  %v5321_v5 = vld [vmem:[#allocation6 + $0x1c4] sm:$0xf] }
  0x1a   :  { %v5325_v1 = vld [vmem:[#allocation6 + $0x1dc] sm:$0xf0]  ;;  %v3827_v6 = vld [vmem:[#allocation6 + $0x1e0] sm:$0xf0]  ;;  %s5861_s4 = smov [#allocation12]   ;;  %s3576_s25 = sshll.u32 %s6029_s5, 4  ;;  %s3577_s25 = int_to_ptr.hbm [resolvable:$true] %s3576_s25 }
  0x1b   :  { %v4081_v2 = vld [vmem:[#allocation6 + $0x3c0] sm:$0xf]  ;;  %v3826_v3 = vor.u32 %v5325_v1, %v3825_v0  ;;  %v3830_v8 = vor.u32 %v5321_v5, %v3827_v6  ;;  %v5385_v9 = vld [vmem:[#allocation6 + $0x3c4] sm:$0xf]  ;;  %s3574_s22 = sshll.u32 %s5861_s4, 4  ;;  %s3575_s22 = int_to_ptr.vmem [resolvable:$true] %s3574_s22 }
  0x1c   :  { %v5389_v4 = vld [vmem:[#allocation6 + $0x3dc] sm:$0xf0]  ;;  %v4083_v10 = vld [vmem:[#allocation6 + $0x3e0] sm:$0xf0] }
  0x1d   :  { %v4082_v7 = vor.u32 %v5389_v4, %v4081_v2  ;;  %v3793_v11 = vld [vmem:[#allocation6 + $0x180] sm:$0xf]  ;;  %913 = vmatpush.bf16.msra.mxu0 %v3826_v3  ;;  %v4086_v12 = vor.u32 %v5385_v9, %v4083_v10  ;;  %941 = vmatpush.bf16.msra.mxu2 %v3830_v8  ;;  %v5313_v18 = vld [vmem:[#allocation6 + $0x184] sm:$0xf] }
  0x1e   :  { %v5317_v13 = vld [vmem:[#allocation6 + $0x19c] sm:$0xf0]  ;;  %v3795_v19 = vld [vmem:[#allocation6 + $0x1a0] sm:$0xf0] }
  0x1f   :  { %v4049_v14 = vld [vmem:[#allocation6 + $0x380] sm:$0xf]  ;;  %927 = vmatpush.bf16.msra.mxu1 %v4082_v7  ;;  %v3794_v16 = vor.u32 %v5317_v13, %v3793_v11  ;;  %v5377_v20 = vld [vmem:[#allocation6 + $0x384] sm:$0xf]  ;;  %955 = vmatpush.bf16.msra.mxu3 %v4086_v12  ;;  %v3798_v21 = vor.u32 %v5313_v18, %v3795_v19 }
  0x20   :  { %v5381_v15 = vld [vmem:[#allocation6 + $0x39c] sm:$0xf0]  ;;  %v4051_v22 = vld [vmem:[#allocation6 + $0x3a0] sm:$0xf0] }
  0x21   :  { %v4050_v17 = vor.u32 %v5381_v15, %v4049_v14  ;;  %v3761_v23 = vld [vmem:[#allocation6 + $0x140] sm:$0xf]  ;;  %v4054_v25 = vor.u32 %v5377_v20, %v4051_v22  ;;  %v5305_v28 = vld [vmem:[#allocation6 + $0x144] sm:$0xf]  ;;  %914 = vmatpush.bf16.msra.mxu0 %v3794_v16  ;;  %942 = vmatpush.bf16.msra.mxu2 %v3798_v21 }
  0x22   :  { %v5309_v24 = vld [vmem:[#allocation6 + $0x15c] sm:$0xf0]  ;;  %v3763_v30 = vld [vmem:[#allocation6 + $0x160] sm:$0xf0] }
  0x23   :  { %v4017_v26 = vld [vmem:[#allocation6 + $0x340] sm:$0xf]  ;;  %v3762_v29 = vor.u32 %v5309_v24, %v3761_v23  ;;  %v5369_v31 = vld [vmem:[#allocation6 + $0x344] sm:$0xf]  ;;  %928 = vmatpush.bf16.msra.mxu1 %v4050_v17  ;;  %v3766_v34 = vor.u32 %v5305_v28, %v3763_v30  ;;  %956 = vmatpush.bf16.msra.mxu3 %v4054_v25  ;;  %v3833_v28 = vld [vmem:[#allocation6 + $0x1c8] sm:$0xf] }
  0x24   :  { %v5373_v27 = vld [vmem:[#allocation6 + $0x35c] sm:$0xf0]  ;;  %v4019_v32 = vld [vmem:[#allocation6 + $0x360] sm:$0xf0]  ;;  %v4089_v30 = vld [vmem:[#allocation6 + $0x3c8] sm:$0xf] }
  0x25   :  { %v4018_v33 = vor.u32 %v5373_v27, %v4017_v26  ;;  %v3729_v35 = vld [vmem:[#allocation6 + $0x100] sm:$0xf]  ;;  %v4022_v38 = vor.u32 %v5369_v31, %v4019_v32  ;;  %v5297_v40 = vld [vmem:[#allocation6 + $0x104] sm:$0xf]  ;;  %915 = vmatpush.bf16.msra.mxu0 %v3762_v29  ;;  %943 = vmatpush.bf16.msra.mxu2 %v3766_v34  ;;  %v5326_v29 = vld [vmem:[#allocation6 + $0x1e4] sm:$0xf0] }
  0x26   :  { %v5301_v36 = vld [vmem:[#allocation6 + $0x11c] sm:$0xf0]  ;;  %v3731_v41 = vld [vmem:[#allocation6 + $0x120] sm:$0xf0]  ;;  %v5390_v32 = vld [vmem:[#allocation6 + $0x3e4] sm:$0xf0] }
  0x27   :  { %v3985_v37 = vld [vmem:[#allocation6 + $0x300] sm:$0xf]  ;;  %v5361_v42 = vld [vmem:[#allocation6 + $0x304] sm:$0xf]  ;;  %v3730_v44 = vor.u32 %v5301_v36, %v3729_v35  ;;  %929 = vmatpush.bf16.msra.mxu1 %v4018_v33  ;;  %v3734_v46 = vor.u32 %v5297_v40, %v3731_v41  ;;  %957 = vmatpush.bf16.msra.mxu3 %v4022_v38  ;;  %v5322_v33 = vld [vmem:[#allocation6 + $0x1cc] sm:$0xf]  ;;  %v3834_v40 = vor.u32 %v5326_v29, %v3833_v28 }
  0x28   :  { %v5365_v39 = vld [vmem:[#allocation6 + $0x31c] sm:$0xf0]  ;;  %v3987_v43 = vld [vmem:[#allocation6 + $0x320] sm:$0xf0]  ;;  %v3835_v34 = vld [vmem:[#allocation6 + $0x1e8] sm:$0xf0] }
  0x29   :  { %v3986_v45 = vor.u32 %v5365_v39, %v3985_v37  ;;  %v3697_v47 = vld [vmem:[#allocation6 + $0xc0] sm:$0xf]  ;;  %v3990_v50 = vor.u32 %v5361_v42, %v3987_v43  ;;  %v5289_v52 = vld [vmem:[#allocation6 + $0xc4] sm:$0xf]  ;;  %916 = vmatpush.bf16.msra.mxu0 %v3730_v44  ;;  %944 = vmatpush.bf16.msra.mxu2 %v3734_v46  ;;  %v5386_v37 = vld [vmem:[#allocation6 + $0x3cc] sm:$0xf]  ;;  %v4090_v43 = vor.u32 %v5390_v32, %v4089_v30 }
  0x2a   :  { %v5293_v48 = vld [vmem:[#allocation6 + $0xdc] sm:$0xf0]  ;;  %v3699_v53 = vld [vmem:[#allocation6 + $0xe0] sm:$0xf0]  ;;  %v4091_v38 = vld [vmem:[#allocation6 + $0x3e8] sm:$0xf0]  ;;  %v3838_v44 = vor.u32 %v5322_v33, %v3835_v34 }
  0x2b   :  { %v3953_v49 = vld [vmem:[#allocation6 + $0x2c0] sm:$0xf]  ;;  %v5353_v54 = vld [vmem:[#allocation6 + $0x2c4] sm:$0xf]  ;;  %v3698_v56 = vor.u32 %v5293_v48, %v3697_v47  ;;  %930 = vmatpush.bf16.msra.mxu1 %v3986_v45  ;;  %v3702_v58 = vor.u32 %v5289_v52, %v3699_v53  ;;  %958 = vmatpush.bf16.msra.mxu3 %v3990_v50  ;;  %v3801_v41 = vld [vmem:[#allocation6 + $0x188] sm:$0xf]  ;;  %v4094_v48 = vor.u32 %v5386_v37, %v4091_v38 }
  0x2c   :  { %v5357_v51 = vld [vmem:[#allocation6 + $0x2dc] sm:$0xf0]  ;;  %v3955_v55 = vld [vmem:[#allocation6 + $0x2e0] sm:$0xf0]  ;;  %v5318_v42 = vld [vmem:[#allocation6 + $0x1a4] sm:$0xf0] }
  0x2d   :  { %v3954_v57 = vor.u32 %v5357_v51, %v3953_v49  ;;  %v3665_v59 = vld [vmem:[#allocation6 + $0x80] sm:$0xf]  ;;  %v3958_v62 = vor.u32 %v5353_v54, %v3955_v55  ;;  %v5281_v0 = vld [vmem:[#allocation6 + $0x84] sm:$0xf]  ;;  %917 = vmatpush.bf16.msra.mxu0 %v3698_v56  ;;  %945 = vmatpush.bf16.msra.mxu2 %v3702_v58  ;;  %v4057_v45 = vld [vmem:[#allocation6 + $0x388] sm:$0xf]  ;;  %v3802_v55 = vor.u32 %v5318_v42, %v3801_v41 }
  0x2e   :  { %v5285_v60 = vld [vmem:[#allocation6 + $0x9c] sm:$0xf0]  ;;  %v3667_v1 = vld [vmem:[#allocation6 + $0xa0] sm:$0xf0]  ;;  %v5382_v46 = vld [vmem:[#allocation6 + $0x3a4] sm:$0xf0] }
  0x2f   :  { %v3921_v61 = vld [vmem:[#allocation6 + $0x280] sm:$0xf]  ;;  %v5345_v2 = vld [vmem:[#allocation6 + $0x284] sm:$0xf]  ;;  %v3666_v4 = vor.u32 %v5285_v60, %v3665_v59  ;;  %931 = vmatpush.bf16.msra.mxu1 %v3954_v57  ;;  %v3670_v6 = vor.u32 %v5281_v0, %v3667_v1  ;;  %959 = vmatpush.bf16.msra.mxu3 %v3958_v62  ;;  %v5314_v47 = vld [vmem:[#allocation6 + $0x18c] sm:$0xf]  ;;  %v4058_v58 = vor.u32 %v5382_v46, %v4057_v45 }
  0x30   :  { %v5349_v63 = vld [vmem:[#allocation6 + $0x29c] sm:$0xf0]  ;;  %v3923_v3 = vld [vmem:[#allocation6 + $0x2a0] sm:$0xf0]  ;;  %v3803_v49 = vld [vmem:[#allocation6 + $0x1a8] sm:$0xf0] }
  0x31   :  { %v3922_v5 = vor.u32 %v5349_v63, %v3921_v61  ;;  %v3633_v7 = vld [vmem:[#allocation6 + $0x40] sm:$0xf]  ;;  %v3926_v10 = vor.u32 %v5345_v2, %v3923_v3  ;;  %v5273_v12 = vld [vmem:[#allocation6 + $0x44] sm:$0xf]  ;;  %918 = vmatpush.bf16.msra.mxu0 %v3666_v4  ;;  %946 = vmatpush.bf16.msra.mxu2 %v3670_v6  ;;  %v5378_v50 = vld [vmem:[#allocation6 + $0x38c] sm:$0xf]  ;;  %v3806_v59 = vor.u32 %v5314_v47, %v3803_v49 }
  0x32   :  { %v5277_v8 = vld [vmem:[#allocation6 + $0x5c] sm:$0xf0]  ;;  %v3635_v13 = vld [vmem:[#allocation6 + $0x60] sm:$0xf0]  ;;  %v4059_v51 = vld [vmem:[#allocation6 + $0x3a8] sm:$0xf0] }
  0x33   :  { %v3889_v9 = vld [vmem:[#allocation6 + $0x240] sm:$0xf]  ;;  %v5337_v14 = vld [vmem:[#allocation6 + $0x244] sm:$0xf]  ;;  %v3634_v16 = vor.u32 %v5277_v8, %v3633_v7  ;;  %932 = vmatpush.bf16.msra.mxu1 %v3922_v5  ;;  %v3638_v20 = vor.u32 %v5273_v12, %v3635_v13  ;;  %960 = vmatpush.bf16.msra.mxu3 %v3926_v10  ;;  %v3593_v52 = vld [vmem:[#allocation3] sm:$0xf]  ;;  %v4062_v0 = vor.u32 %v5378_v50, %v4059_v51 }
  0x34   :  { %v5341_v11 = vld [vmem:[#allocation6 + $0x25c] sm:$0xf0]  ;;  %v3891_v15 = vld [vmem:[#allocation6 + $0x260] sm:$0xf0]  ;;  %v5264_v53 = vld [vmem:[#allocation3 + $0x4] sm:$0xf0] }
  0x35   :  { %v3601_v17 = vld [vmem:[#allocation6] sm:$0xf]  ;;  %v3890_v19 = vor.u32 %v5341_v11, %v3889_v9  ;;  %v5265_v23 = vld [vmem:[#allocation6 + $0x4] sm:$0xf]  ;;  %v3894_v24 = vor.u32 %v5337_v14, %v3891_v15  ;;  %919 = vmatpush.bf16.msra.mxu0 %v3634_v16  ;;  %947 = vmatpush.bf16.msra.mxu2 %v3638_v20  ;;  %v5263_v54 = vld [vmem:[#allocation3 + $0x4] sm:$0xf]  ;;  %v5910_v56 = vor.u32 %v5264_v53, %v3593_v52 }
  0x36   :  { %v5269_v18 = vld [vmem:[#allocation6 + $0x1c] sm:$0xf0]  ;;  %v3603_v25 = vld [vmem:[#allocation6 + $0x20] sm:$0xf0]  ;;  %v3595_v57 = vld [vmem:[#allocation3 + $0x8] sm:$0xf0] }
  0x37   :  { %v3857_v21 = vld [vmem:[#allocation6 + $0x200] sm:$0xf]  ;;  %v5329_v26 = vld [vmem:[#allocation6 + $0x204] sm:$0xf]  ;;  %v3602_v31 = vor.u32 %v5269_v18, %v3601_v17  ;;  %933 = vmatpush.bf16.msra.mxu1 %v3890_v19  ;;  %v3606_v36 = vor.u32 %v5265_v23, %v3603_v25  ;;  %961 = vmatpush.bf16.msra.mxu3 %v3894_v24  ;;  %v3769_v60 = vld [vmem:[#allocation6 + $0x148] sm:$0xf]  ;;  %v5912_v63 = vor.u32 %v5263_v54, %v3595_v57 }
  0x38   :  { %v5333_v22 = vld [vmem:[#allocation6 + $0x21c] sm:$0xf0]  ;;  %v3859_v27 = vld [vmem:[#allocation6 + $0x220] sm:$0xf0]  ;;  %v5310_v61 = vld [vmem:[#allocation6 + $0x164] sm:$0xf0] }
  0x39   :  { %v3858_v35 = vor.u32 %v5333_v22, %v3857_v21  ;;  %v3862_v39 = vor.u32 %v5329_v26, %v3859_v27  ;;  %920 = vmatpush.bf16.msra.mxu0 %v3602_v31  ;;  %948 = vmatpush.bf16.msra.mxu2 %v3606_v36  ;;  %v4025_v62 = vld [vmem:[#allocation6 + $0x348] sm:$0xf]  ;;  %v5306_v2 = vld [vmem:[#allocation6 + $0x14c] sm:$0xf]  ;;  %v3770_v6 = vor.u32 %v5310_v61, %v3769_v60 }
  0x3a   :  { %v5374_v1 = vld [vmem:[#allocation6 + $0x364] sm:$0xf0]  ;;  %v3771_v3 = vld [vmem:[#allocation6 + $0x168] sm:$0xf0] }
  0x3b   :  { %934 = vmatpush.bf16.msra.mxu1 %v3858_v35  ;;  %962 = vmatpush.bf16.msra.mxu3 %v3862_v39  ;;  %v5370_v4 = vld [vmem:[#allocation6 + $0x34c] sm:$0xf]  ;;  %v4026_v7 = vor.u32 %v5374_v1, %v4025_v62  ;;  %v3774_v8 = vor.u32 %v5306_v2, %v3771_v3  ;;  %v3737_v9 = vld [vmem:[#allocation6 + $0x108] sm:$0xf] }
  0x3c   :  { %949 = vmatmul.bf16.vlgmr.msra.gmra.mxu2 %v5910_v56  ;;  %v4027_v5 = vld [vmem:[#allocation6 + $0x368] sm:$0xf0]  ;;  %921 = vmatmul.bf16.vlgmr.msra.gmra.mxu0 %v5910_v56  ;;  %v5302_v10 = vld [vmem:[#allocation6 + $0x124] sm:$0xf0] }
  0x3d   :  { %969 = vmatpush.bf16.msrb.mxu0 %v3834_v40  ;;  %997 = vmatpush.bf16.msrb.mxu2 %v3838_v44  ;;  %v3993_v11 = vld [vmem:[#allocation6 + $0x308] sm:$0xf]  ;;  %v4030_v12 = vor.u32 %v5370_v4, %v4027_v5  ;;  %v5298_v14 = vld [vmem:[#allocation6 + $0x10c] sm:$0xf]  ;;  %v3738_v18 = vor.u32 %v5302_v10, %v3737_v9  ;;  %v3841_v4 = vld [vmem:[#allocation6 + $0x1d0] sm:$0xf] }
  0x3e   :  { %963 = vmatmul.bf16.vlgmr.msra.gmra.mxu3 %v5912_v63  ;;  %935 = vmatmul.bf16.vlgmr.msra.gmra.mxu1 %v5912_v63  ;;  %v5366_v13 = vld [vmem:[#allocation6 + $0x324] sm:$0xf0]  ;;  %v3739_v15 = vld [vmem:[#allocation6 + $0x128] sm:$0xf0]  ;;  %v5327_v5 = vld [vmem:[#allocation6 + $0x1ec] sm:$0xf0] }
  0x3f   :  { %983 = vmatpush.bf16.msrb.mxu1 %v4090_v43  ;;  %1011 = vmatpush.bf16.msrb.mxu3 %v4094_v48  ;;  %v5362_v16 = vld [vmem:[#allocation6 + $0x30c] sm:$0xf]  ;;  %v3994_v19 = vor.u32 %v5366_v13, %v3993_v11  ;;  %v3742_v20 = vor.u32 %v5298_v14, %v3739_v15  ;;  %v3705_v21 = vld [vmem:[#allocation6 + $0xc8] sm:$0xf]  ;;  %v5323_v9 = vld [vmem:[#allocation6 + $0x1d4] sm:$0xf] }
  0x40   :  { %v3995_v17 = vld [vmem:[#allocation6 + $0x328] sm:$0xf0]  ;;  %v5294_v22 = vld [vmem:[#allocation6 + $0xe4] sm:$0xf0]  ;;  %v3843_v10 = vld [vmem:[#allocation6 + $0x1f0] sm:$0xf0] }
  0x41   :  { %970 = vmatpush.bf16.msrb.mxu0 %v3802_v55  ;;  %998 = vmatpush.bf16.msrb.mxu2 %v3806_v59  ;;  %v3961_v23 = vld [vmem:[#allocation6 + $0x2c8] sm:$0xf]  ;;  %v3998_v24 = vor.u32 %v5362_v16, %v3995_v17  ;;  %v5290_v26 = vld [vmem:[#allocation6 + $0xcc] sm:$0xf]  ;;  %v3706_v30 = vor.u32 %v5294_v22, %v3705_v21  ;;  %v5387_v13 = vld [vmem:[#allocation6 + $0x3d4] sm:$0xf]  ;;  %v3842_v16 = vor.u32 %v5327_v5, %v3841_v4 }
  0x42   :  { %v5358_v25 = vld [vmem:[#allocation6 + $0x2e4] sm:$0xf0]  ;;  %v3707_v27 = vld [vmem:[#allocation6 + $0xe8] sm:$0xf0]  ;;  %v4099_v14 = vld [vmem:[#allocation6 + $0x3f0] sm:$0xf0] }
  0x43   :  { %984 = vmatpush.bf16.msrb.mxu1 %v4058_v58  ;;  %1012 = vmatpush.bf16.msrb.mxu3 %v4062_v0  ;;  %v5354_v28 = vld [vmem:[#allocation6 + $0x2cc] sm:$0xf]  ;;  %v3962_v31 = vor.u32 %v5358_v25, %v3961_v23  ;;  %v3710_v32 = vor.u32 %v5290_v26, %v3707_v27  ;;  %v3673_v33 = vld [vmem:[#allocation6 + $0x88] sm:$0xf]  ;;  %v4065_v21 = vld [vmem:[#allocation6 + $0x390] sm:$0xf]  ;;  %v4102_v22 = vor.u32 %v5387_v13, %v4099_v14 }
  0x44   :  { %v3963_v29 = vld [vmem:[#allocation6 + $0x2e8] sm:$0xf0]  ;;  %v5286_v34 = vld [vmem:[#allocation6 + $0xa4] sm:$0xf0]  ;;  %v5383_v23 = vld [vmem:[#allocation6 + $0x3ac] sm:$0xf0] }
  0x45   :  { %971 = vmatpush.bf16.msrb.mxu0 %v3770_v6  ;;  %999 = vmatpush.bf16.msrb.mxu2 %v3774_v8  ;;  %v3929_v35 = vld [vmem:[#allocation6 + $0x288] sm:$0xf]  ;;  %v3966_v36 = vor.u32 %v5354_v28, %v3963_v29  ;;  %v5282_v38 = vld [vmem:[#allocation6 + $0x8c] sm:$0xf]  ;;  %v3674_v42 = vor.u32 %v5286_v34, %v3673_v33  ;;  %v4097_v6 = vld [vmem:[#allocation6 + $0x3d0] sm:$0xf]  ;;  %v4066_v29 = vor.u32 %v5383_v23, %v4065_v21 }
  0x46   :  { %v5350_v37 = vld [vmem:[#allocation6 + $0x2a4] sm:$0xf0]  ;;  %v3675_v39 = vld [vmem:[#allocation6 + $0xa8] sm:$0xf0]  ;;  %v5391_v8 = vld [vmem:[#allocation6 + $0x3ec] sm:$0xf0] }
  0x47   :  { %985 = vmatpush.bf16.msrb.mxu1 %v4026_v7  ;;  %1013 = vmatpush.bf16.msrb.mxu3 %v4030_v12  ;;  %v5346_v40 = vld [vmem:[#allocation6 + $0x28c] sm:$0xf]  ;;  %v3930_v43 = vor.u32 %v5350_v37, %v3929_v35  ;;  %v3678_v44 = vor.u32 %v5282_v38, %v3675_v39  ;;  %v3641_v45 = vld [vmem:[#allocation6 + $0x48] sm:$0xf]  ;;  %v4098_v17 = vor.u32 %v5391_v8, %v4097_v6  ;;  %v3811_v25 = vld [vmem:[#allocation6 + $0x1b0] sm:$0xf0] }
  0x48   :  { %v3931_v41 = vld [vmem:[#allocation6 + $0x2a8] sm:$0xf0]  ;;  %v5278_v46 = vld [vmem:[#allocation6 + $0x64] sm:$0xf0]  ;;  %v5379_v26 = vld [vmem:[#allocation6 + $0x394] sm:$0xf] }
  0x49   :  { %972 = vmatpush.bf16.msrb.mxu0 %v3738_v18  ;;  %1000 = vmatpush.bf16.msrb.mxu2 %v3742_v20  ;;  %v3897_v47 = vld [vmem:[#allocation6 + $0x248] sm:$0xf]  ;;  %v3934_v48 = vor.u32 %v5346_v40, %v3931_v41  ;;  %v5274_v50 = vld [vmem:[#allocation6 + $0x4c] sm:$0xf]  ;;  %v3642_v54 = vor.u32 %v5278_v46, %v3641_v45  ;;  %v3846_v18 = vor.u32 %v5323_v9, %v3843_v10  ;;  %v5319_v20 = vld [vmem:[#allocation6 + $0x1ac] sm:$0xf0] }
  0x4a   :  { %v5342_v49 = vld [vmem:[#allocation6 + $0x264] sm:$0xf0]  ;;  %v3643_v51 = vld [vmem:[#allocation6 + $0x68] sm:$0xf0]  ;;  %v4067_v27 = vld [vmem:[#allocation6 + $0x3b0] sm:$0xf0] }
  0x4b   :  { %986 = vmatpush.bf16.msrb.mxu1 %v3994_v19  ;;  %1014 = vmatpush.bf16.msrb.mxu3 %v3998_v24  ;;  %v5338_v52 = vld [vmem:[#allocation6 + $0x24c] sm:$0xf]  ;;  %v3609_v55 = vld [vmem:[#allocation6 + $0x8] sm:$0xf]  ;;  %v3898_v58 = vor.u32 %v5342_v49, %v3897_v47  ;;  %v3646_v59 = vor.u32 %v5274_v50, %v3643_v51  ;;  %v3809_v19 = vld [vmem:[#allocation6 + $0x190] sm:$0xf]  ;;  %v4070_v34 = vor.u32 %v5379_v26, %v4067_v27 }
  0x4c   :  { %v3899_v53 = vld [vmem:[#allocation6 + $0x268] sm:$0xf0]  ;;  %v5270_v57 = vld [vmem:[#allocation6 + $0x24] sm:$0xf0]  ;;  %v5315_v24 = vld [vmem:[#allocation6 + $0x194] sm:$0xf]  ;;  %v3810_v28 = vor.u32 %v5319_v20, %v3809_v19 }
  0x4d   :  { %973 = vmatpush.bf16.msrb.mxu0 %v3706_v30  ;;  %1001 = vmatpush.bf16.msrb.mxu2 %v3710_v32  ;;  %v3865_v60 = vld [vmem:[#allocation6 + $0x208] sm:$0xf]  ;;  %v5266_v62 = vld [vmem:[#allocation6 + $0xc] sm:$0xf]  ;;  %v3902_v0 = vor.u32 %v5338_v52, %v3899_v53  ;;  %v3610_v7 = vor.u32 %v5270_v57, %v3609_v55  ;;  %v3814_v30 = vor.u32 %v5315_v24, %v3811_v25  ;;  %v5311_v32 = vld [vmem:[#allocation6 + $0x16c] sm:$0xf0] }
  0x4e   :  { %v5334_v61 = vld [vmem:[#allocation6 + $0x224] sm:$0xf0]  ;;  %v3611_v1 = vld [vmem:[#allocation6 + $0x28] sm:$0xf0]  ;;  %v4033_v33 = vld [vmem:[#allocation6 + $0x350] sm:$0xf] }
  0x4f   :  { %987 = vmatpush.bf16.msrb.mxu1 %v3962_v31  ;;  %1015 = vmatpush.bf16.msrb.mxu3 %v3966_v36  ;;  %v5330_v2 = vld [vmem:[#allocation6 + $0x20c] sm:$0xf]  ;;  %v3866_v11 = vor.u32 %v5334_v61, %v3865_v60  ;;  %v3614_v12 = vor.u32 %v5266_v62, %v3611_v1  ;;  %v3777_v31 = vld [vmem:[#allocation6 + $0x150] sm:$0xf]  ;;  %v5307_v36 = vld [vmem:[#allocation6 + $0x154] sm:$0xf] }
  0x50   :  { %v3867_v3 = vld [vmem:[#allocation6 + $0x228] sm:$0xf0]  ;;  %v5375_v35 = vld [vmem:[#allocation6 + $0x36c] sm:$0xf0]  ;;  %v3779_v37 = vld [vmem:[#allocation6 + $0x170] sm:$0xf0]  ;;  %v3778_v40 = vor.u32 %v5311_v32, %v3777_v31 }
  0x51   :  { %974 = vmatpush.bf16.msrb.mxu0 %v3674_v42  ;;  %1002 = vmatpush.bf16.msrb.mxu2 %v3678_v44  ;;  %v3870_v15 = vor.u32 %v5330_v2, %v3867_v3  ;;  %v5371_v38 = vld [vmem:[#allocation6 + $0x354] sm:$0xf]  ;;  %v4034_v41 = vor.u32 %v5375_v35, %v4033_v33  ;;  %v3782_v42 = vor.u32 %v5307_v36, %v3779_v37  ;;  %v5303_v44 = vld [vmem:[#allocation6 + $0x12c] sm:$0xf0] }
  0x52   :  { %v4035_v39 = vld [vmem:[#allocation6 + $0x370] sm:$0xf0]  ;;  %v4001_v45 = vld [vmem:[#allocation6 + $0x310] sm:$0xf] }
  0x53   :  { %988 = vmatpush.bf16.msrb.mxu1 %v3930_v43  ;;  %1016 = vmatpush.bf16.msrb.mxu3 %v3934_v48  ;;  %v3745_v43 = vld [vmem:[#allocation6 + $0x110] sm:$0xf]  ;;  %v4038_v46 = vor.u32 %v5371_v38, %v4035_v39  ;;  %v5299_v48 = vld [vmem:[#allocation6 + $0x114] sm:$0xf]  ;;  %v3849_v38 = vld [vmem:[#allocation6 + $0x1d8] sm:$0xf] }
  0x54   :  { %v5367_v47 = vld [vmem:[#allocation6 + $0x32c] sm:$0xf0]  ;;  %v3747_v49 = vld [vmem:[#allocation6 + $0x130] sm:$0xf0]  ;;  %v3746_v52 = vor.u32 %v5303_v44, %v3745_v43  ;;  %v5328_v39 = vld [vmem:[#allocation6 + $0x1f4] sm:$0xf0] }
  0x55   :  { %975 = vmatpush.bf16.msrb.mxu0 %v3642_v54  ;;  %1003 = vmatpush.bf16.msrb.mxu2 %v3646_v59  ;;  %v5363_v50 = vld [vmem:[#allocation6 + $0x314] sm:$0xf]  ;;  %v4002_v53 = vor.u32 %v5367_v47, %v4001_v45  ;;  %v3750_v54 = vor.u32 %v5299_v48, %v3747_v49  ;;  %v3713_v55 = vld [vmem:[#allocation6 + $0xd0] sm:$0xf]  ;;  %v5324_v43 = vld [vmem:[#allocation6 + $0x1dc] sm:$0xf] }
  0x56   :  { %v4003_v51 = vld [vmem:[#allocation6 + $0x330] sm:$0xf0]  ;;  %v5295_v57 = vld [vmem:[#allocation6 + $0xec] sm:$0xf0]  ;;  %v3851_v44 = vld [vmem:[#allocation6 + $0x1f8] sm:$0xf0] }
  0x57   :  { %989 = vmatpush.bf16.msrb.mxu1 %v3898_v58  ;;  %1017 = vmatpush.bf16.msrb.mxu3 %v3902_v0  ;;  %v3969_v58 = vld [vmem:[#allocation6 + $0x2d0] sm:$0xf]  ;;  %v4006_v59 = vor.u32 %v5363_v50, %v4003_v51  ;;  %v5291_v61 = vld [vmem:[#allocation6 + $0xd4] sm:$0xf]  ;;  %v3714_v2 = vor.u32 %v5295_v57, %v3713_v55  ;;  %v5388_v47 = vld [vmem:[#allocation6 + $0x3dc] sm:$0xf]  ;;  %v3850_v50 = vor.u32 %v5328_v39, %v3849_v38 }
  0x58   :  { %v5359_v60 = vld [vmem:[#allocation6 + $0x2ec] sm:$0xf0]  ;;  %v3715_v62 = vld [vmem:[#allocation6 + $0xf0] sm:$0xf0]  ;;  %v4107_v48 = vld [vmem:[#allocation6 + $0x3f8] sm:$0xf0] }
  0x59   :  { %976 = vmatpush.bf16.msrb.mxu0 %v3610_v7  ;;  %1004 = vmatpush.bf16.msrb.mxu2 %v3614_v12  ;;  %v5355_v0 = vld [vmem:[#allocation6 + $0x2d4] sm:$0xf]  ;;  %v3970_v3 = vor.u32 %v5359_v60, %v3969_v58  ;;  %v3718_v4 = vor.u32 %v5291_v61, %v3715_v62  ;;  %v3681_v5 = vld [vmem:[#allocation6 + $0x90] sm:$0xf]  ;;  %v4073_v55 = vld [vmem:[#allocation6 + $0x398] sm:$0xf]  ;;  %v4110_v57 = vor.u32 %v5388_v47, %v4107_v48 }
  0x5a   :  { %v3971_v1 = vld [vmem:[#allocation6 + $0x2f0] sm:$0xf0]  ;;  %v5287_v6 = vld [vmem:[#allocation6 + $0xac] sm:$0xf0]  ;;  %v5384_v58 = vld [vmem:[#allocation6 + $0x3b4] sm:$0xf0] }
  0x5b   :  { %990 = vmatpush.bf16.msrb.mxu1 %v3866_v11  ;;  %1018 = vmatpush.bf16.msrb.mxu3 %v3870_v15  ;;  %v3937_v7 = vld [vmem:[#allocation6 + $0x290] sm:$0xf]  ;;  %v3974_v8 = vor.u32 %v5355_v0, %v3971_v1  ;;  %v5283_v10 = vld [vmem:[#allocation6 + $0x94] sm:$0xf]  ;;  %v3682_v14 = vor.u32 %v5287_v6, %v3681_v5  ;;  %v3819_v60 = vld [vmem:[#allocation6 + $0x1b8] sm:$0xf0]  ;;  %v4074_v1 = vor.u32 %v5384_v58, %v4073_v55 }
  0x5c   :  { %977 = vmatmul.bf16.vlgmr.msrb.gmra.mxu0 %v5910_v56  ;;  %1005 = vmatmul.bf16.vlgmr.msrb.gmra.mxu2 %v5910_v56  ;;  %v5351_v9 = vld [vmem:[#allocation6 + $0x2ac] sm:$0xf0]  ;;  %v3683_v11 = vld [vmem:[#allocation6 + $0xb0] sm:$0xf0]  ;;  %v5380_v61 = vld [vmem:[#allocation6 + $0x39c] sm:$0xf] }
  0x5d   :  { %1025 = vmatpush.bf16.msra.mxu0 %v3842_v16  ;;  %1053 = vmatpush.bf16.msra.mxu2 %v3846_v18  ;;  %v5347_v12 = vld [vmem:[#allocation6 + $0x294] sm:$0xf]  ;;  %v3938_v15 = vor.u32 %v5351_v9, %v3937_v7  ;;  %v3686_v16 = vor.u32 %v5283_v10, %v3683_v11  ;;  %v5279_v18 = vld [vmem:[#allocation6 + $0x6c] sm:$0xf0]  ;;  %v4075_v62 = vld [vmem:[#allocation6 + $0x3b8] sm:$0xf0] }
  0x5e   :  { %991 = vmatmul.bf16.vlgmr.msrb.gmra.mxu1 %v5912_v63  ;;  %1019 = vmatmul.bf16.vlgmr.msrb.gmra.mxu3 %v5912_v63  ;;  %v3939_v13 = vld [vmem:[#allocation6 + $0x2b0] sm:$0xf0]  ;;  %v3905_v19 = vld [vmem:[#allocation6 + $0x250] sm:$0xf]  ;;  %v4041_v5 = vld [vmem:[#allocation6 + $0x358] sm:$0xf]  ;;  %v4078_v6 = vor.u32 %v5380_v61, %v4075_v62 }
  0x5f   :  { %1039 = vmatpush.bf16.msra.mxu1 %v4098_v17  ;;  %1067 = vmatpush.bf16.msra.mxu3 %v4102_v22  ;;  %v3649_v17 = vld [vmem:[#allocation6 + $0x50] sm:$0xf]  ;;  %v3942_v20 = vor.u32 %v5347_v12, %v3939_v13  ;;  %v5275_v22 = vld [vmem:[#allocation6 + $0x54] sm:$0xf]  ;;  %v5376_v7 = vld [vmem:[#allocation6 + $0x374] sm:$0xf0] }
  0x60   :  { %v5343_v21 = vld [vmem:[#allocation6 + $0x26c] sm:$0xf0]  ;;  %v3651_v23 = vld [vmem:[#allocation6 + $0x70] sm:$0xf0]  ;;  %v3650_v26 = vor.u32 %v5279_v18, %v3649_v17  ;;  %v3787_v9 = vld [vmem:[#allocation6 + $0x178] sm:$0xf0]  ;;  %v4042_v13 = vor.u32 %v5376_v7, %v4041_v5 }
  0x61   :  { %1026 = vmatpush.bf16.msra.mxu0 %v3810_v28  ;;  %1054 = vmatpush.bf16.msra.mxu2 %v3814_v30  ;;  %v5339_v24 = vld [vmem:[#allocation6 + $0x254] sm:$0xf]  ;;  %v3617_v27 = vld [vmem:[#allocation6 + $0x10] sm:$0xf]  ;;  %v3654_v30 = vor.u32 %v5275_v22, %v3651_v23  ;;  %v5372_v10 = vld [vmem:[#allocation6 + $0x35c] sm:$0xf] }
  0x62   :  { %v3907_v25 = vld [vmem:[#allocation6 + $0x270] sm:$0xf0]  ;;  %v5271_v28 = vld [vmem:[#allocation6 + $0x2c] sm:$0xf0]  ;;  %v4043_v11 = vld [vmem:[#allocation6 + $0x378] sm:$0xf0] }
  0x63   :  { %1040 = vmatpush.bf16.msra.mxu1 %v4066_v29  ;;  %1068 = vmatpush.bf16.msra.mxu3 %v4070_v34  ;;  %v3906_v29 = vor.u32 %v5343_v21, %v3905_v19  ;;  %v3873_v31 = vld [vmem:[#allocation6 + $0x210] sm:$0xf]  ;;  %v5267_v33 = vld [vmem:[#allocation6 + $0x14] sm:$0xf]  ;;  %v3910_v34 = vor.u32 %v5339_v24, %v3907_v25  ;;  %v4009_v17 = vld [vmem:[#allocation6 + $0x318] sm:$0xf]  ;;  %v4046_v18 = vor.u32 %v5372_v10, %v4043_v11 }
  0x64   :  { %v5335_v32 = vld [vmem:[#allocation6 + $0x22c] sm:$0xf0]  ;;  %v3619_v35 = vld [vmem:[#allocation6 + $0x30] sm:$0xf0]  ;;  %v5368_v19 = vld [vmem:[#allocation6 + $0x334] sm:$0xf0] }
  0x65   :  { %1027 = vmatpush.bf16.msra.mxu0 %v3778_v40  ;;  %1055 = vmatpush.bf16.msra.mxu2 %v3782_v42  ;;  %v5331_v36 = vld [vmem:[#allocation6 + $0x214] sm:$0xf]  ;;  %v4105_v40 = vld [vmem:[#allocation6 + $0x3d8] sm:$0xf]  ;;  %v3874_v45 = vor.u32 %v5335_v32, %v3873_v31  ;;  %v3755_v21 = vld [vmem:[#allocation6 + $0x138] sm:$0xf0]  ;;  %v4010_v25 = vor.u32 %v5368_v19, %v4009_v17 }
  0x66   :  { %v3875_v37 = vld [vmem:[#allocation6 + $0x230] sm:$0xf0]  ;;  %v5392_v42 = vld [vmem:[#allocation6 + $0x3f4] sm:$0xf0]  ;;  %v5364_v22 = vld [vmem:[#allocation6 + $0x31c] sm:$0xf] }
  0x67   :  { %1041 = vmatpush.bf16.msra.mxu1 %v4034_v41  ;;  %1069 = vmatpush.bf16.msra.mxu3 %v4038_v46  ;;  %v3618_v41 = vor.u32 %v5271_v28, %v3617_v27  ;;  %v3622_v46 = vor.u32 %v5267_v33, %v3619_v35  ;;  %v3878_v49 = vor.u32 %v5331_v36, %v3875_v37  ;;  %v4011_v23 = vld [vmem:[#allocation6 + $0x338] sm:$0xf0]  ;;  %v3721_v27 = vld [vmem:[#allocation6 + $0xd8] sm:$0xf]  ;;  %v4225_v10 = vld [vmem:[#allocation8 + $0xe0] sm:$0xf] }
  0x68   :  { %v4106_v51 = vor.u32 %v5392_v42, %v4105_v40  ;;  %v5296_v28 = vld [vmem:[#allocation6 + $0xf4] sm:$0xf0]  ;;  %v5292_v32 = vld [vmem:[#allocation6 + $0xdc] sm:$0xf]  ;;  %v5423_v11 = vld [vmem:[#allocation8 + $0xec] sm:$0xf0] }
  0x69   :  { %1028 = vmatpush.bf16.msra.mxu0 %v3746_v52  ;;  %1056 = vmatpush.bf16.msra.mxu2 %v3750_v54  ;;  %v3854_v52 = vor.u32 %v5324_v43, %v3851_v44  ;;  %v5320_v54 = vld [vmem:[#allocation6 + $0x1b4] sm:$0xf0]  ;;  %v3723_v33 = vld [vmem:[#allocation6 + $0xf8] sm:$0xf0]  ;;  %v3722_v36 = vor.u32 %v5296_v28, %v3721_v27  ;;  %v4209_v19 = vld [vmem:[#allocation8 + $0xc0] sm:$0xf] }
  0x6a   :  { %v5360_v31 = vld [vmem:[#allocation6 + $0x2f4] sm:$0xf0]  ;;  %v3979_v35 = vld [vmem:[#allocation6 + $0x2f8] sm:$0xf0]  ;;  %v3726_v38 = vor.u32 %v5292_v32, %v3723_v33  ;;  %v4321_v28 = vld [vmem:[#allocation8 + $0x1a0] sm:$0xf] }
  0x6b   :  { %1042 = vmatpush.bf16.msra.mxu1 %v4002_v53  ;;  %1070 = vmatpush.bf16.msra.mxu3 %v4006_v59  ;;  %v3817_v53 = vld [vmem:[#allocation6 + $0x198] sm:$0xf]  ;;  %v5316_v59 = vld [vmem:[#allocation6 + $0x19c] sm:$0xf]  ;;  %v5411_v32 = vld [vmem:[#allocation8 + $0x8c] sm:$0xf0] }
  0x6c   :  { %v3818_v0 = vor.u32 %v5320_v54, %v3817_v53  ;;  %v3689_v39 = vld [vmem:[#allocation6 + $0x98] sm:$0xf]  ;;  %v5284_v44 = vld [vmem:[#allocation6 + $0x9c] sm:$0xf] }
  0x6d   :  { %1029 = vmatpush.bf16.msra.mxu0 %v3714_v2  ;;  %1057 = vmatpush.bf16.msra.mxu2 %v3718_v4  ;;  %v3822_v2 = vor.u32 %v5316_v59, %v3819_v60  ;;  %v5312_v4 = vld [vmem:[#allocation6 + $0x174] sm:$0xf0]  ;;  %v3947_v47 = vld [vmem:[#allocation6 + $0x2b8] sm:$0xf0] }
  0x6e   :  { %v5288_v40 = vld [vmem:[#allocation6 + $0xb4] sm:$0xf0]  ;;  %v3659_v58 = vld [vmem:[#allocation6 + $0x78] sm:$0xf0] }
  0x6f   :  { %1043 = vmatpush.bf16.msra.mxu1 %v3970_v3  ;;  %1071 = vmatpush.bf16.msra.mxu3 %v3974_v8  ;;  %v3785_v3 = vld [vmem:[#allocation6 + $0x158] sm:$0xf]  ;;  %v5308_v8 = vld [vmem:[#allocation6 + $0x15c] sm:$0xf]  ;;  %v3690_v48 = vor.u32 %v5288_v40, %v3689_v39  ;;  %v4289_v40 = vld [vmem:[#allocation8 + $0x160] sm:$0xf] }
  0x70   :  { %v3786_v12 = vor.u32 %v5312_v4, %v3785_v3  ;;  %v5352_v43 = vld [vmem:[#allocation6 + $0x2b4] sm:$0xf0]  ;;  %v5340_v59 = vld [vmem:[#allocation6 + $0x25c] sm:$0xf] }
  0x71   :  { %1030 = vmatpush.bf16.msra.mxu0 %v3682_v14  ;;  %1058 = vmatpush.bf16.msra.mxu2 %v3686_v16  ;;  %v3790_v14 = vor.u32 %v5308_v8, %v3787_v9  ;;  %v5304_v16 = vld [vmem:[#allocation6 + $0x134] sm:$0xf0]  ;;  %v3915_v60 = vld [vmem:[#allocation6 + $0x278] sm:$0xf0] }
  0x72   :  { %v3913_v53 = vld [vmem:[#allocation6 + $0x258] sm:$0xf]  ;;  %v3918_v5 = vor.u32 %v5340_v59, %v3915_v60  ;;  %v3627_v7 = vld [vmem:[#allocation6 + $0x38] sm:$0xf0]  ;;  %v4113_v60 = vld [vmem:[#allocation8] sm:$0xf] }
  0x73   :  { %1044 = vmatpush.bf16.msra.mxu1 %v3938_v15  ;;  %1072 = vmatpush.bf16.msra.mxu3 %v3942_v20  ;;  %v3753_v15 = vld [vmem:[#allocation6 + $0x118] sm:$0xf]  ;;  %v5300_v20 = vld [vmem:[#allocation6 + $0x11c] sm:$0xf] }
  0x74   :  { %v3754_v24 = vor.u32 %v5304_v16, %v3753_v15  ;;  %v5344_v55 = vld [vmem:[#allocation6 + $0x274] sm:$0xf0]  ;;  %v5332_v8 = vld [vmem:[#allocation6 + $0x21c] sm:$0xf] }
  0x75   :  { %1031 = vmatpush.bf16.msra.mxu0 %v3650_v26  ;;  %1059 = vmatpush.bf16.msra.mxu2 %v3654_v30  ;;  %v3758_v26 = vor.u32 %v5300_v20, %v3755_v21  ;;  %v4014_v30 = vor.u32 %v5364_v22, %v4011_v23  ;;  %v3625_v62 = vld [vmem:[#allocation6 + $0x18] sm:$0xf]  ;;  %v3883_v9 = vld [vmem:[#allocation6 + $0x238] sm:$0xf0]  ;;  %v5419_v20 = vld [vmem:[#allocation8 + $0xcc] sm:$0xf0] }
  0x76   :  { %v3881_v3 = vld [vmem:[#allocation6 + $0x218] sm:$0xf]  ;;  %v3886_v17 = vor.u32 %v5332_v8, %v3883_v9  ;;  %v4337_v22 = vld [vmem:[#allocation8 + $0x1c0] sm:$0xf]  ;;  %v5451_v23 = vld [vmem:[#allocation8 + $0x1cc] sm:$0xf0] }
  0x77   :  { %1045 = vmatpush.bf16.msra.mxu1 %v3906_v29  ;;  %1073 = vmatpush.bf16.msra.mxu3 %v3910_v34  ;;  %v3977_v29 = vld [vmem:[#allocation6 + $0x2d8] sm:$0xf]  ;;  %v5356_v34 = vld [vmem:[#allocation6 + $0x2dc] sm:$0xf]  ;;  %v4338_v27 = vor.u32 %v5451_v23, %v4337_v22  ;;  %v4449_v8 = vld [vmem:[#allocation8 + $0x2a0] sm:$0xf] }
  0x78   :  { %v3978_v37 = vor.u32 %v5360_v31, %v3977_v29  ;;  %v3982_v42 = vor.u32 %v5356_v34, %v3979_v35  ;;  %v5336_v4 = vld [vmem:[#allocation6 + $0x234] sm:$0xf0]  ;;  %v5447_v29 = vld [vmem:[#allocation8 + $0x1ac] sm:$0xf0]  ;;  %v4177_v31 = vld [vmem:[#allocation8 + $0x80] sm:$0xf] }
  0x79   :  { %1032 = vmatpush.bf16.msra.mxu0 %v3618_v41  ;;  %1060 = vmatpush.bf16.msra.mxu2 %v3622_v46  ;;  %v3945_v41 = vld [vmem:[#allocation6 + $0x298] sm:$0xf]  ;;  %v5348_v46 = vld [vmem:[#allocation6 + $0x29c] sm:$0xf]  ;;  %v3882_v15 = vor.u32 %v5336_v4, %v3881_v3  ;;  %v4322_v33 = vor.u32 %v5447_v29, %v4321_v28  ;;  %v4305_v34 = vld [vmem:[#allocation8 + $0x180] sm:$0xf] }
  0x7a   :  { %v3950_v54 = vor.u32 %v5348_v46, %v3947_v47  ;;  %v5443_v35 = vld [vmem:[#allocation8 + $0x18c] sm:$0xf0]  ;;  %v4273_v46 = vld [vmem:[#allocation8 + $0x140] sm:$0xf] }
  0x7b   :  { %1046 = vmatpush.bf16.msra.mxu1 %v3874_v45  ;;  %1074 = vmatpush.bf16.msra.mxu3 %v3878_v49  ;;  %v3691_v45 = vld [vmem:[#allocation6 + $0xb8] sm:$0xf0]  ;;  %v3946_v49 = vor.u32 %v5352_v43, %v3945_v41  ;;  %v4306_v39 = vor.u32 %v5443_v35, %v4305_v34  ;;  %v5403_v43 = vld [vmem:[#allocation8 + $0x4c] sm:$0xf0] }
  0x7c   :  { %1033 = vmatmul.bf16.vlgmr.msra.gmra.mxu0 %v5910_v56  ;;  %1061 = vmatmul.bf16.vlgmr.msra.gmra.mxu2 %v5910_v56  ;;  %v5435_v47 = vld [vmem:[#allocation8 + $0x14c] sm:$0xf0] }
  0x7d   :  { %1081 = vmatpush.bf16.msrb.mxu0 %v3850_v50  ;;  %1109 = vmatpush.bf16.msrb.mxu2 %v3854_v52  ;;  %v3694_v50 = vor.u32 %v5284_v44, %v3691_v45  ;;  %v5280_v52 = vld [vmem:[#allocation6 + $0x74] sm:$0xf0]  ;;  %v5487_v45 = vld [vmem:[#allocation8 + $0x2ec] sm:$0xf0] }
  0x7e   :  { %1047 = vmatmul.bf16.vlgmr.msra.gmra.mxu1 %v5912_v63  ;;  %1075 = vmatmul.bf16.vlgmr.msra.gmra.mxu3 %v5912_v63  ;;  %v5519_v3 = vld [vmem:[#allocation8 + $0x3ec] sm:$0xf0] }
  0x7f   :  { %1095 = vmatpush.bf16.msrb.mxu1 %v4106_v51  ;;  %1123 = vmatpush.bf16.msrb.mxu3 %v4110_v57  ;;  %v3657_v51 = vld [vmem:[#allocation6 + $0x58] sm:$0xf]  ;;  %v5276_v57 = vld [vmem:[#allocation6 + $0x5c] sm:$0xf]  ;;  %v5479_v9 = vld [vmem:[#allocation8 + $0x2ac] sm:$0xf0] }
  0x80   :  { %v3658_v61 = vor.u32 %v5280_v52, %v3657_v51  ;;  %v5399_v51 = vld [vmem:[#allocation8 + $0x2c] sm:$0xf0]  ;;  %v4274_v52 = vor.u32 %v5435_v47, %v4273_v46  ;;  %v4673_v46 = vld [vmem:[#allocation8 + $0x460] sm:$0xf] }
  0x81   :  { %1082 = vmatpush.bf16.msrb.mxu0 %v3818_v0  ;;  %1110 = vmatpush.bf16.msrb.mxu2 %v3822_v2  ;;  %v3914_v0 = vor.u32 %v5344_v55, %v3913_v53  ;;  %v5272_v2 = vld [vmem:[#allocation6 + $0x34] sm:$0xf0]  ;;  %v4257_v53 = vld [vmem:[#allocation8 + $0x120] sm:$0xf]  ;;  %v5475_v22 = vld [vmem:[#allocation8 + $0x28c] sm:$0xf0] }
  0x82   :  { %v4465_v55 = vld [vmem:[#allocation8 + $0x2c0] sm:$0xf]  ;;  %v5543_v28 = vld [vmem:[#allocation8 + $0x4ac] sm:$0xf0] }
  0x83   :  { %1096 = vmatpush.bf16.msrb.mxu1 %v4074_v1  ;;  %1124 = vmatpush.bf16.msrb.mxu3 %v4078_v6  ;;  %v3662_v1 = vor.u32 %v5276_v57, %v3659_v58  ;;  %v5268_v6 = vld [vmem:[#allocation6 + $0x1c] sm:$0xf]  ;;  %v5483_v57 = vld [vmem:[#allocation8 + $0x2cc] sm:$0xf0] }
  0x84   :  { %v3630_v16 = vor.u32 %v5268_v6, %v3627_v7  ;;  %v4466_v58 = vor.u32 %v5483_v57, %v4465_v55  ;;  %v5427_v6 = vld [vmem:[#allocation8 + $0x10c] sm:$0xf0] }
  0x85   :  { %1083 = vmatpush.bf16.msrb.mxu0 %v3786_v12  ;;  %1111 = vmatpush.bf16.msrb.mxu2 %v3790_v14  ;;  %v3626_v12 = vor.u32 %v5272_v2, %v3625_v62  ;;  %v5455_v14 = vld [vmem:[#allocation8 + $0x1ec] sm:$0xf0]  ;;  %v4737_v62 = vld [vmem:[#allocation8 + $0x4e0] sm:$0xf] }
  0x86   :  { %v4609_v2 = vld [vmem:[#allocation8 + $0x3e0] sm:$0xf]  ;;  %v5539_v35 = vld [vmem:[#allocation8 + $0x48c] sm:$0xf0] }
  0x87   :  { %1097 = vmatpush.bf16.msrb.mxu1 %v4042_v13  ;;  %1125 = vmatpush.bf16.msrb.mxu3 %v4046_v18  ;;  %v4353_v13 = vld [vmem:[#allocation8 + $0x1e0] sm:$0xf]  ;;  %v4226_v18 = vor.u32 %v5423_v11, %v4225_v10  ;;  %v4610_v4 = vor.u32 %v5519_v3, %v4609_v2  ;;  %v5571_v57 = vld [vmem:[#allocation8 + $0x58c] sm:$0xf0] }
  0x88   :  { %v4354_v21 = vor.u32 %v5455_v14, %v4353_v13  ;;  %v4865_v10 = vld [vmem:[#allocation8 + $0x5e0] sm:$0xf]  ;;  %v4450_v13 = vor.u32 %v5479_v9, %v4449_v8  ;;  %v5583_v14 = vld [vmem:[#allocation8 + $0x5ec] sm:$0xf0] }
  0x89   :  { %1084 = vmatpush.bf16.msrb.mxu0 %v3754_v24  ;;  %1112 = vmatpush.bf16.msrb.mxu2 %v3758_v26  ;;  %v4210_v24 = vor.u32 %v5419_v20, %v4209_v19  ;;  %v5415_v26 = vld [vmem:[#allocation8 + $0xac] sm:$0xf0] }
  0x8a   :  { %v5515_v19 = vld [vmem:[#allocation8 + $0x3cc] sm:$0xf0] }
  0x8b   :  { %1098 = vmatpush.bf16.msrb.mxu1 %v4010_v25  ;;  %1126 = vmatpush.bf16.msrb.mxu3 %v4014_v30  ;;  %v4193_v25 = vld [vmem:[#allocation8 + $0xa0] sm:$0xf]  ;;  %v5531_v2 = vld [vmem:[#allocation8 + $0x44c] sm:$0xf0] }
  0x8c   :  { %v4194_v30 = vor.u32 %v5415_v26, %v4193_v25  ;;  %v4849_v25 = vld [vmem:[#allocation8 + $0x5c0] sm:$0xf]  ;;  %v5579_v26 = vld [vmem:[#allocation8 + $0x5cc] sm:$0xf0] }
  0x8d   :  { %1085 = vmatpush.bf16.msrb.mxu0 %v3722_v36  ;;  %1113 = vmatpush.bf16.msrb.mxu2 %v3726_v38  ;;  %v4178_v36 = vor.u32 %v5411_v32, %v4177_v31  ;;  %v5407_v38 = vld [vmem:[#allocation8 + $0x6c] sm:$0xf0]  ;;  %v4850_v29 = vor.u32 %v5579_v26, %v4849_v25  ;;  %v4577_v31 = vld [vmem:[#allocation8 + $0x3a0] sm:$0xf] }
  0x8e   :  { %v5511_v32 = vld [vmem:[#allocation8 + $0x3ac] sm:$0xf0] }
  0x8f   :  { %1099 = vmatpush.bf16.msrb.mxu1 %v3978_v37  ;;  %1127 = vmatpush.bf16.msrb.mxu3 %v3982_v42  ;;  %v4161_v37 = vld [vmem:[#allocation8 + $0x60] sm:$0xf]  ;;  %v4578_v34 = vor.u32 %v5511_v32, %v4577_v31 }
  0x90   :  { %v4162_v41 = vor.u32 %v5407_v38, %v4161_v37  ;;  %v4481_v42 = vld [vmem:[#allocation8 + $0x2e0] sm:$0xf]  ;;  %v5471_v38 = vld [vmem:[#allocation8 + $0x26c] sm:$0xf0] }
  0x91   :  { %1086 = vmatpush.bf16.msrb.mxu0 %v3690_v48  ;;  %1114 = vmatpush.bf16.msrb.mxu2 %v3694_v50  ;;  %v4482_v48 = vor.u32 %v5487_v45, %v4481_v42  ;;  %v4129_v50 = vld [vmem:[#allocation8 + $0x20] sm:$0xf]  ;;  %v5575_v42 = vld [vmem:[#allocation8 + $0x5ac] sm:$0xf0] }
  0x92   :  { %v4130_v59 = vor.u32 %v5399_v51, %v4129_v50  ;;  %v4417_v37 = vld [vmem:[#allocation8 + $0x260] sm:$0xf]  ;;  %v5507_v45 = vld [vmem:[#allocation8 + $0x38c] sm:$0xf0] }
  0x93   :  { %1100 = vmatpush.bf16.msrb.mxu1 %v3946_v49  ;;  %1128 = vmatpush.bf16.msrb.mxu3 %v3950_v54  ;;  %v5431_v54 = vld [vmem:[#allocation8 + $0x12c] sm:$0xf0]  ;;  %v4401_v50 = vld [vmem:[#allocation8 + $0x240] sm:$0xf] }
  0x94   :  { %v5467_v51 = vld [vmem:[#allocation8 + $0x24c] sm:$0xf0]  ;;  %v4513_v32 = vld [vmem:[#allocation8 + $0x320] sm:$0xf] }
  0x95   :  { %1087 = vmatpush.bf16.msrb.mxu0 %v3658_v61  ;;  %1115 = vmatpush.bf16.msrb.mxu2 %v3662_v1  ;;  %v5395_v61 = vld [vmem:[#allocation8 + $0xc] sm:$0xf0]  ;;  %v4402_v55 = vor.u32 %v5467_v51, %v4401_v50 }
  0x96   :  { %v5551_v1 = vld [vmem:[#allocation8 + $0x4ec] sm:$0xf0]  ;;  %v4114_v7 = vor.u32 %v5395_v61, %v4113_v60  ;;  %v4545_v60 = vld [vmem:[#allocation8 + $0x360] sm:$0xf] }
  0x97   :  { %1101 = vmatpush.bf16.msrb.mxu1 %v3914_v0  ;;  %1129 = vmatpush.bf16.msrb.mxu3 %v3918_v5  ;;  %v4258_v0 = vor.u32 %v5431_v54, %v4257_v53  ;;  %v4241_v5 = vld [vmem:[#allocation8 + $0x100] sm:$0xf]  ;;  %v4738_v11 = vor.u32 %v5551_v1, %v4737_v62  ;;  %v5503_v61 = vld [vmem:[#allocation8 + $0x36c] sm:$0xf0] }
  0x98   :  { %v4657_v62 = vld [vmem:[#allocation8 + $0x440] sm:$0xf]  ;;  %v4546_v1 = vor.u32 %v5503_v61, %v4545_v60  ;;  %v4211_v61 = vld [vmem:[#allocation8 + $0xd0] sm:$0xf0] }
  0x99   :  { %1088 = vmatpush.bf16.msrb.mxu0 %v3626_v12  ;;  %1116 = vmatpush.bf16.msrb.mxu2 %v3630_v16  ;;  %v4242_v12 = vor.u32 %v5427_v6, %v4241_v5  ;;  %v5547_v16 = vld [vmem:[#allocation8 + $0x4cc] sm:$0xf0]  ;;  %v4658_v3 = vor.u32 %v5531_v2, %v4657_v62  ;;  %v4801_v6 = vld [vmem:[#allocation8 + $0x560] sm:$0xf] }
  0x9a   :  { %v5463_v5 = vld [vmem:[#allocation8 + $0x22c] sm:$0xf0]  ;;  %v4753_v62 = vld [vmem:[#allocation8 + $0x500] sm:$0xf] }
  0x9b   :  { %1102 = vmatpush.bf16.msrb.mxu1 %v3882_v15  ;;  %1130 = vmatpush.bf16.msrb.mxu3 %v3886_v17  ;;  %v4721_v15 = vld [vmem:[#allocation8 + $0x4c0] sm:$0xf]  ;;  %v4866_v17 = vor.u32 %v5583_v14, %v4865_v10  ;;  %v5567_v10 = vld [vmem:[#allocation8 + $0x56c] sm:$0xf0] }
  0x9c   :  { %1089 = vmatmul.bf16.vlgmr.msrb.gmra.mxu0 %v5910_v56  ;;  %1117 = vmatmul.bf16.vlgmr.msrb.gmra.mxu2 %v5910_v56  ;;  %v5439_v56 = vld [vmem:[#allocation8 + $0x16c] sm:$0xf0]  ;;  %v4722_v23 = vor.u32 %v5547_v16, %v4721_v15  ;;  %v4802_v14 = vor.u32 %v5567_v10, %v4801_v6  ;;  %v4529_v15 = vld [vmem:[#allocation8 + $0x340] sm:$0xf] }
  0x9d   :  { %2793 = vmatpush.bf16.msra.mxu0 %v4226_v18  ;;  %v4290_v44 = vor.u32 %v5439_v56, %v4289_v40  ;;  %2821 = vmatpush.bf16.msra.mxu2 %v4482_v48  ;;  %v4593_v18 = vld [vmem:[#allocation8 + $0x3c0] sm:$0xf]  ;;  %v4418_v56 = vor.u32 %v5471_v38, %v4417_v37  ;;  %v5535_v48 = vld [vmem:[#allocation8 + $0x46c] sm:$0xf0] }
  0x9e   :  { %1103 = vmatmul.bf16.vlgmr.msrb.gmra.mxu1 %v5912_v63  ;;  %1131 = vmatmul.bf16.vlgmr.msrb.gmra.mxu3 %v5912_v63  ;;  %v4145_v63 = vld [vmem:[#allocation8 + $0x40] sm:$0xf]  ;;  %v4594_v20 = vor.u32 %v5515_v19, %v4593_v18  ;;  %v5499_v16 = vld [vmem:[#allocation8 + $0x34c] sm:$0xf0] }
  0x9f   :  { %2807 = vmatpush.bf16.msra.mxu1 %v4354_v21  ;;  %v4146_v49 = vor.u32 %v5403_v43, %v4145_v63  ;;  %2835 = vmatpush.bf16.msra.mxu3 %v4610_v4  ;;  %v4433_v21 = vld [vmem:[#allocation8 + $0x280] sm:$0xf]  ;;  %v4530_v19 = vor.u32 %v5499_v16, %v4529_v15  ;;  %v5523_v38 = vld [vmem:[#allocation8 + $0x40c] sm:$0xf0] }
  0xa0   :  { %v5930_v40 = vld [vmem:[#allocation11] sm:$0xff]  ;;  %v5643_v16 = vld [vmem:[#allocation8 + $0x7cc] sm:$0xf0] }
  0xa1   :  { %2794 = vmatpush.bf16.msra.mxu0 %v4210_v24  ;;  %2822 = vmatpush.bf16.msra.mxu2 %v4466_v58  ;;  %v4434_v24 = vor.u32 %v5475_v22, %v4433_v21  ;;  %v1192_v54 = vperm.slane %v5930_v40, 0  ;;  %v4385_v4 = vld [vmem:[#allocation8 + $0x220] sm:$0xf]  ;;  %v1193_v8 = vperm.slane %v5930_v40, 1 }
  0xa2   :  { %v4386_v9 = vor.u32 %v5463_v5, %v4385_v4  ;;  %v4369_v22 = vld [vmem:[#allocation8 + $0x200] sm:$0xf] }
  0xa3   :  { %2808 = vmatpush.bf16.msra.mxu1 %v4338_v27  ;;  %2836 = vmatpush.bf16.msra.mxu3 %v4594_v20  ;;  %v4705_v27 = vld [vmem:[#allocation8 + $0x4a0] sm:$0xf]  ;;  %v5527_v20 = vld [vmem:[#allocation8 + $0x42c] sm:$0xf0] }
  0xa4   :  { %v5121_v2 = vld [vmem:[#allocation8 + $0x7e0] sm:$0xf] }
  0xa5   :  { %2795 = vmatpush.bf16.msra.mxu0 %v4194_v30  ;;  %2823 = vmatpush.bf16.msra.mxu2 %v4450_v13  ;;  %v4706_v30 = vor.u32 %v5543_v28, %v4705_v27  ;;  %v4785_v27 = vld [vmem:[#allocation8 + $0x540] sm:$0xf]  ;;  %v5563_v28 = vld [vmem:[#allocation8 + $0x54c] sm:$0xf0] }
  0xa6   :  { %v4786_v31 = vor.u32 %v5563_v28, %v4785_v27  ;;  %v4961_v10 = vld [vmem:[#allocation8 + $0x6a0] sm:$0xf] }
  0xa7   :  { %2809 = vmatpush.bf16.msra.mxu1 %v4322_v33  ;;  %v4689_v33 = vld [vmem:[#allocation8 + $0x480] sm:$0xf]  ;;  %2837 = vmatpush.bf16.msra.mxu3 %v4578_v34 }
  0xa8   :  { %v4625_v34 = vld [vmem:[#allocation8 + $0x400] sm:$0xf] }
  0xa9   :  { %2796 = vmatpush.bf16.msra.mxu0 %v4178_v36  ;;  %2824 = vmatpush.bf16.msra.mxu2 %v4434_v24  ;;  %v4690_v36 = vor.u32 %v5539_v35, %v4689_v33  ;;  %v5495_v33 = vld [vmem:[#allocation8 + $0x32c] sm:$0xf0]  ;;  %v5105_v15 = vld [vmem:[#allocation8 + $0x7c0] sm:$0xf] }
  0xaa   :  { %v4514_v37 = vor.u32 %v5495_v33, %v4513_v32  ;;  %v5089_v28 = vld [vmem:[#allocation8 + $0x7a0] sm:$0xf]  ;;  %v4323_v33 = vld [vmem:[#allocation8 + $0x1b0] sm:$0xf0] }
  0xab   :  { %2810 = vmatpush.bf16.msra.mxu1 %v4306_v39 }
  0xad   :  { %2797 = vmatpush.bf16.msra.mxu0 %v4162_v41  ;;  %v4833_v41 = vld [vmem:[#allocation8 + $0x5a0] sm:$0xf]  ;;  %2825 = vmatpush.bf16.msra.mxu2 %v4418_v56 }
  0xae   :  { %v4834_v43 = vor.u32 %v5575_v42, %v4833_v41  ;;  %v4626_v41 = vor.u32 %v5523_v38, %v4625_v34  ;;  %v5615_v42 = vld [vmem:[#allocation8 + $0x6ec] sm:$0xf0]  ;;  %v5405_v38 = vld [vmem:[#allocation8 + $0x64] sm:$0xf] }
  0xaf   :  { %2811 = vmatpush.bf16.msra.mxu1 %v4290_v44  ;;  %v4561_v44 = vld [vmem:[#allocation8 + $0x380] sm:$0xf] }
  0xb0   :  { %v4562_v47 = vor.u32 %v5507_v45, %v4561_v44 }
  0xb1   :  { %2798 = vmatpush.bf16.msra.mxu0 %v4146_v49  ;;  %v4674_v49 = vor.u32 %v5535_v48, %v4673_v46  ;;  %2826 = vmatpush.bf16.msra.mxu2 %v4402_v55  ;;  %v5559_v48 = vld [vmem:[#allocation8 + $0x52c] sm:$0xf0]  ;;  %v4977_v55 = vld [vmem:[#allocation8 + $0x6c0] sm:$0xf] }
  0xb2   :  { %2838 = vmatpush.bf16.msra.mxu3 %v4562_v47  ;;  %v4769_v47 = vld [vmem:[#allocation8 + $0x520] sm:$0xf] }
  0xb3   :  { %2812 = vmatpush.bf16.msra.mxu1 %v4274_v52  ;;  %v4817_v52 = vld [vmem:[#allocation8 + $0x580] sm:$0xf]  ;;  %v4770_v51 = vor.u32 %v5559_v48, %v4769_v47  ;;  %v4307_v48 = vld [vmem:[#allocation8 + $0x190] sm:$0xf0] }
  0xb5   :  { %2799 = vmatpush.bf16.msra.mxu0 %v4130_v59  ;;  %v4818_v59 = vor.u32 %v5571_v57, %v4817_v52  ;;  %2827 = vmatpush.bf16.msra.mxu2 %v4386_v9  ;;  %v4497_v52 = vld [vmem:[#allocation8 + $0x300] sm:$0xf]  ;;  %v5611_v57 = vld [vmem:[#allocation8 + $0x6cc] sm:$0xf0] }
  0xb6   :  { %2839 = vmatpush.bf16.msra.mxu3 %v4546_v1  ;;  %v4978_v60 = vor.u32 %v5611_v57, %v4977_v55  ;;  %v5555_v1 = vld [vmem:[#allocation8 + $0x50c] sm:$0xf0] }
  0xb7   :  { %2813 = vmatpush.bf16.msra.mxu1 %v4258_v0  ;;  %v4754_v5 = vor.u32 %v5555_v1, %v4753_v62  ;;  %v5437_v1 = vld [vmem:[#allocation8 + $0x164] sm:$0xf] }
  0xb9   :  { %2800 = vmatpush.bf16.msra.mxu0 %v4114_v7  ;;  %v922_v39 = vpop.f32.mrf.mxu0 }
  0xba   :  { %2840 = vmatpush.bf16.msra.mxu3 %v4530_v19  ;;  %v5449_v19 = vld [vmem:[#allocation8 + $0x1c4] sm:$0xf] }
  0xbb   :  { %2814 = vmatpush.bf16.msra.mxu1 %v4242_v12  ;;  %v936_v63 = vpop.f32.mrf.mxu1 }
  0xbc   :  { %v937_v53 = vadd.f32 %v936_v63, %v922_v39  ;;  %v4993_v39 = vld [vmem:[#allocation8 + $0x6e0] sm:$0xf]  ;;  %v5421_v63 = vld [vmem:[#allocation8 + $0xe4] sm:$0xf] }
  0xbd   :  { %2849 = vmatpush.bf16.msrb.mxu0 %v4738_v11  ;;  %v4994_v45 = vor.u32 %v5615_v42, %v4993_v39  ;;  %v5073_v42 = vld [vmem:[#allocation8 + $0x780] sm:$0xf] }
  0xbe   :  { %v1208_v7 = vadd.f32 %v1192_v54, %v937_v53  ;;  %2841 = vmatpush.bf16.msra.mxu3 %v4514_v37  ;;  %v5491_v53 = vld [vmem:[#allocation8 + $0x30c] sm:$0xf0] }
  0xbf   :  { %2863 = vmatpush.bf16.msrb.mxu1 %v4866_v17  ;;  %v950_v58 = vpop.f32.mrf.mxu2  ;;  %v4641_v17 = vld [vmem:[#allocation8 + $0x420] sm:$0xf]  ;;  %v5599_v37 = vld [vmem:[#allocation8 + $0x66c] sm:$0xf0] }
  0xc0   :  { %v4642_v21 = vor.u32 %v5527_v20, %v4641_v17  ;;  %v1224_v24 = vmax.f32 %v1208_v7, 0.0  ;;  %v5453_v7 = vld [vmem:[#allocation8 + $0x1e4] sm:$0xf]  ;;  %v4339_v20 = vld [vmem:[#allocation8 + $0x1d0] sm:$0xf0] }
  0xc1   :  { %2850 = vmatpush.bf16.msrb.mxu0 %v4722_v23  ;;  %v964_v0 = vpop.f32.mrf.mxu3  ;;  %v924_v12 = vpop.f32.mrf.mxu0  ;;  %v5459_v23 = vld [vmem:[#allocation8 + $0x20c] sm:$0xf0] }
  0xc2   :  { %v965_v11 = vadd.f32 %v964_v0, %v950_v58  ;;  %v4370_v26 = vor.u32 %v5459_v23, %v4369_v22  ;;  %v5417_v58 = vld [vmem:[#allocation8 + $0xc4] sm:$0xf]  ;;  %v4945_v22 = vld [vmem:[#allocation8 + $0x680] sm:$0xf]  ;;  %v5603_v23 = vld [vmem:[#allocation8 + $0x68c] sm:$0xf0] }
  0xc3   :  { %2864 = vmatpush.bf16.msrb.mxu1 %v4850_v29  ;;  %v938_v13 = vpop.f32.mrf.mxu1  ;;  %v4214_v0 = vor.u32 %v5417_v58, %v4211_v61  ;;  %v5057_v58 = vld [vmem:[#allocation8 + $0x760] sm:$0xf] }
  0xc4   :  { %v939_v18 = vadd.f32 %v938_v13, %v924_v12  ;;  %v1209_v29 = vadd.f32 %v1193_v8, %v965_v11  ;;  %2828 = vmatpush.bf16.msra.mxu2 %v4370_v26  ;;  %v5607_v11 = vld [vmem:[#allocation8 + $0x6ac] sm:$0xf0]  ;;  %v5413_v12 = vld [vmem:[#allocation8 + $0xa4] sm:$0xf]  ;;  %v4179_v26 = vld [vmem:[#allocation8 + $0x90] sm:$0xf0] }
  0xc5   :  { %2851 = vmatpush.bf16.msrb.mxu0 %v4706_v30  ;;  %v4962_v13 = vor.u32 %v5607_v11, %v4961_v10 }
  0xc6   :  { %v1216_v25 = vadd.f32 %v1192_v54, %v939_v18  ;;  %v4498_v54 = vor.u32 %v5491_v53, %v4497_v52  ;;  %v5106_v18 = vor.u32 %v5643_v16, %v5105_v15  ;;  %v5401_v52 = vld [vmem:[#allocation8 + $0x44] sm:$0xf]  ;;  %v5041_v15 = vld [vmem:[#allocation8 + $0x740] sm:$0xf]  ;;  %v5627_v16 = vld [vmem:[#allocation8 + $0x74c] sm:$0xf0] }
  0xc7   :  { %2865 = vmatpush.bf16.msrb.mxu1 %v4834_v43  ;;  %v952_v30 = vpop.f32.mrf.mxu2  ;;  %v4227_v43 = vld [vmem:[#allocation8 + $0xf0] sm:$0xf0] }
  0xc8   :  { %v1232_v35 = vmax.f32 %v1216_v25, 0.0  ;;  %v4230_v46 = vor.u32 %v5421_v63, %v4227_v43  ;;  %2877 = vmatpush.bf16.msrb.mxu2 %v4994_v45  ;;  %2842 = vmatpush.bf16.msra.mxu3 %v4498_v54  ;;  %v4946_v25 = vor.u32 %v5603_v23, %v4945_v22  ;;  %v5635_v63 = vld [vmem:[#allocation8 + $0x78c] sm:$0xf0]  ;;  %v5441_v43 = vld [vmem:[#allocation8 + $0x184] sm:$0xf] }
  0xc9   :  { %2852 = vmatpush.bf16.msrb.mxu0 %v4690_v36  ;;  %v966_v36 = vpop.f32.mrf.mxu3  ;;  %v5074_v47 = vor.u32 %v5635_v63, %v5073_v42  ;;  %v4147_v54 = vld [vmem:[#allocation8 + $0x50] sm:$0xf0]  ;;  %v4881_v23 = vld [vmem:[#allocation8 + $0x600] sm:$0xf] }
  0xca   :  { %v967_v56 = vadd.f32 %v966_v36, %v952_v30  ;;  %v5934_v44 = vpack.c.bf16 %v1232_v35, %v1224_v24  ;;  %v5409_v24 = vld [vmem:[#allocation8 + $0x84] sm:$0xf]  ;;  %v4929_v36 = vld [vmem:[#allocation8 + $0x660] sm:$0xf]  ;;  %v4150_v57 = vor.u32 %v5401_v52, %v4147_v54  ;;  %v4259_v42 = vld [vmem:[#allocation8 + $0x130] sm:$0xf0] }
  0xcb   :  { %2866 = vmatpush.bf16.msrb.mxu1 %v4818_v59  ;;  %v4182_v27 = vor.u32 %v5409_v24, %v4179_v26  ;;  %v5445_v30 = vld [vmem:[#allocation8 + $0x1a4] sm:$0xf]  ;;  %v4930_v39 = vor.u32 %v5599_v37, %v4929_v36  ;;  %v5587_v24 = vld [vmem:[#allocation8 + $0x60c] sm:$0xf0]  ;;  %v5025_v37 = vld [vmem:[#allocation8 + $0x720] sm:$0xf] }
  0xcc   :  { %v1217_v50 = vadd.f32 %v1193_v8, %v967_v56  ;;  %2801 = vmatmul.bf16.vlgmr.msra.gmra.mxu0 %v5934_v44  ;;  %v4355_v8 = vld [vmem:[#allocation8 + $0x1f0] sm:$0xf0]  ;;  %2878 = vmatpush.bf16.msrb.mxu2 %v4978_v60  ;;  %v4326_v35 = vor.u32 %v5445_v30, %v4323_v33  ;;  %v4882_v26 = vor.u32 %v5587_v24, %v4881_v23  ;;  %v5425_v52 = vld [vmem:[#allocation8 + $0x104] sm:$0xf] }
  0xcd   :  { %2853 = vmatpush.bf16.msrb.mxu0 %v4674_v49  ;;  %v1225_v49 = vmax.f32 %v1209_v29, 0.0  ;;  %v4358_v9 = vor.u32 %v5453_v7, %v4355_v8  ;;  %v5639_v29 = vld [vmem:[#allocation8 + $0x7ac] sm:$0xf0]  ;;  %v4163_v56 = vld [vmem:[#allocation8 + $0x70] sm:$0xf0] }
  0xce   :  { %v1233_v59 = vmax.f32 %v1217_v50, 0.0  ;;  %v5090_v32 = vor.u32 %v5639_v29, %v5089_v28  ;;  %v4913_v50 = vld [vmem:[#allocation8 + $0x640] sm:$0xf]  ;;  %v5591_v7 = vld [vmem:[#allocation8 + $0x62c] sm:$0xf0] }
  0xcf   :  { %2867 = vmatpush.bf16.msrb.mxu1 %v4802_v14  ;;  %v4195_v14 = vld [vmem:[#allocation8 + $0xb0] sm:$0xf0]  ;;  %v5397_v8 = vld [vmem:[#allocation8 + $0x24] sm:$0xf] }
  0xd0   :  { %v5937_v4 = vpack.c.bf16 %v1233_v59, %v1225_v49  ;;  %v4198_v17 = vor.u32 %v5413_v12, %v4195_v14  ;;  %2879 = vmatpush.bf16.msrb.mxu2 %v4962_v13  ;;  %v4310_v49 = vor.u32 %v5441_v43, %v4307_v48  ;;  %v5631_v59 = vld [vmem:[#allocation8 + $0x76c] sm:$0xf0]  ;;  %v4131_v12 = vld [vmem:[#allocation8 + $0x30] sm:$0xf0]  ;;  %v5481_v43 = vld [vmem:[#allocation8 + $0x2c4] sm:$0xf] }
  0xd1   :  { %2854 = vmatpush.bf16.msrb.mxu0 %v4658_v3  ;;  %v5647_v3 = vld [vmem:[#allocation8 + $0x7ec] sm:$0xf0]  ;;  %v4134_v14 = vor.u32 %v5397_v8, %v4131_v12  ;;  %v4115_v28 = vld [vmem:[#allocation8 + $0x10] sm:$0xf0]  ;;  %v5517_v54 = vld [vmem:[#allocation8 + $0x3e4] sm:$0xf] }
  0xd2   :  { %v5122_v6 = vor.u32 %v5647_v3, %v5121_v2  ;;  %2815 = vmatmul.bf16.vlgmr.msra.gmra.mxu1 %v5937_v4  ;;  %v4291_v2 = vld [vmem:[#allocation8 + $0x170] sm:$0xf0]  ;;  %v5509_v8 = vld [vmem:[#allocation8 + $0x3a4] sm:$0xf] }
  0xd3   :  { %2868 = vmatpush.bf16.msrb.mxu1 %v4786_v31  ;;  %v4483_v33 = vld [vmem:[#allocation8 + $0x2f0] sm:$0xf0] }
  0xd4   :  { %2891 = vmatpush.bf16.msrb.mxu3 %v5122_v6  ;;  %2880 = vmatpush.bf16.msrb.mxu2 %v4946_v25  ;;  %v4897_v6 = vld [vmem:[#allocation8 + $0x620] sm:$0xf] }
  0xd5   :  { %2855 = vmatpush.bf16.msrb.mxu0 %v4642_v21  ;;  %v4342_v21 = vor.u32 %v5449_v19, %v4339_v20  ;;  %v4898_v11 = vor.u32 %v5591_v7, %v4897_v6  ;;  %v5042_v20 = vor.u32 %v5627_v16, %v5041_v15  ;;  %v4435_v6 = vld [vmem:[#allocation8 + $0x290] sm:$0xf0]  ;;  %v5505_v16 = vld [vmem:[#allocation8 + $0x384] sm:$0xf] }
  0xd7   :  { %2869 = vmatpush.bf16.msrb.mxu1 %v4770_v51  ;;  %v5595_v51 = vld [vmem:[#allocation8 + $0x64c] sm:$0xf0] }
  0xd8   :  { %2892 = vmatpush.bf16.msrb.mxu3 %v5106_v18  ;;  %2881 = vmatpush.bf16.msrb.mxu2 %v4930_v39  ;;  %v4914_v53 = vor.u32 %v5595_v51, %v4913_v50  ;;  %v5619_v50 = vld [vmem:[#allocation8 + $0x70c] sm:$0xf0] }
  0xd9   :  { %2856 = vmatpush.bf16.msrb.mxu0 %v4626_v41  ;;  %v978_v31 = vpop.f32.mrf.mxu0  ;;  %v4166_v41 = vor.u32 %v5405_v38, %v4163_v56  ;;  %v5623_v38 = vld [vmem:[#allocation8 + $0x72c] sm:$0xf0] }
  0xda   :  { %v5026_v56 = vor.u32 %v5623_v38, %v5025_v37  ;;  %v1197_v38 = vperm.slane %v5930_v40, 5 }
  0xdb   :  { %2870 = vmatpush.bf16.msrb.mxu1 %v4754_v5  ;;  %v992_v34 = vpop.f32.mrf.mxu1  ;;  %v4294_v5 = vor.u32 %v5437_v1, %v4291_v2  ;;  %v5513_v1 = vld [vmem:[#allocation8 + $0x3c4] sm:$0xf]  ;;  %v4595_v2 = vld [vmem:[#allocation8 + $0x3d0] sm:$0xf0] }
  0xdc   :  { %2893 = vmatpush.bf16.msrb.mxu3 %v5090_v32  ;;  %v993_v45 = vadd.f32 %v992_v34, %v978_v31  ;;  %2882 = vmatpush.bf16.msrb.mxu2 %v4914_v53  ;;  %v5485_v32 = vld [vmem:[#allocation8 + $0x2e4] sm:$0xf]  ;;  %v4243_v53 = vld [vmem:[#allocation8 + $0x110] sm:$0xf0] }
  0xdd   :  { %2905 = vmatpush.bf16.msra.mxu0 %v4230_v46  ;;  %v1194_v46 = vperm.slane %v5930_v40, 2  ;;  %v4486_v36 = vor.u32 %v5485_v32, %v4483_v33  ;;  %v5461_v32 = vld [vmem:[#allocation8 + $0x224] sm:$0xf]  ;;  %v4387_v33 = vld [vmem:[#allocation8 + $0x230] sm:$0xf0] }
  0xdf   :  { %2919 = vmatpush.bf16.msra.mxu1 %v4358_v9  ;;  %v1006_v55 = vpop.f32.mrf.mxu2  ;;  %v1210_v60 = vadd.f32 %v1194_v46, %v993_v45  ;;  %v1195_v9 = vperm.slane %v5930_v40, 3  ;;  %v4467_v45 = vld [vmem:[#allocation8 + $0x2d0] sm:$0xf0] }
  0xe0   :  { %2894 = vmatpush.bf16.msrb.mxu3 %v5074_v47  ;;  %2883 = vmatpush.bf16.msrb.mxu2 %v4898_v11  ;;  %v4470_v48 = vor.u32 %v5481_v43, %v4467_v45  ;;  %v4739_v43 = vld [vmem:[#allocation8 + $0x4f0] sm:$0xf0] }
  0xe1   :  { %2906 = vmatpush.bf16.msra.mxu0 %v4214_v0  ;;  %v1020_v61 = vpop.f32.mrf.mxu3  ;;  %v980_v62 = vpop.f32.mrf.mxu0  ;;  %v5058_v0 = vor.u32 %v5631_v59, %v5057_v58  ;;  %v1226_v18 = vmax.f32 %v1210_v60, 0.0  ;;  %v4611_v58 = vld [vmem:[#allocation8 + $0x3f0] sm:$0xf0] }
  0xe2   :  { %v1021_v13 = vadd.f32 %v1020_v61, %v1006_v55  ;;  %v4614_v59 = vor.u32 %v5517_v54, %v4611_v58  ;;  %v5477_v61 = vld [vmem:[#allocation8 + $0x2a4] sm:$0xf] }
  0xe3   :  { %2920 = vmatpush.bf16.msra.mxu1 %v4342_v21  ;;  %v994_v3 = vpop.f32.mrf.mxu1  ;;  %v4275_v21 = vld [vmem:[#allocation8 + $0x150] sm:$0xf0]  ;;  %v5493_v58 = vld [vmem:[#allocation8 + $0x324] sm:$0xf] }
  0xe4   :  { %v995_v10 = vadd.f32 %v994_v3, %v980_v62  ;;  %2895 = vmatpush.bf16.msrb.mxu3 %v5058_v0  ;;  %v1211_v29 = vadd.f32 %v1195_v9, %v1021_v13  ;;  %2884 = vmatpush.bf16.msrb.mxu2 %v4882_v26  ;;  %v4451_v62 = vld [vmem:[#allocation8 + $0x2b0] sm:$0xf0]  ;;  %v4598_v3 = vor.u32 %v5513_v1, %v4595_v2  ;;  %v5469_v13 = vld [vmem:[#allocation8 + $0x264] sm:$0xf] }
  0xe5   :  { %2907 = vmatpush.bf16.msra.mxu0 %v4198_v17  ;;  %v5433_v17 = vld [vmem:[#allocation8 + $0x144] sm:$0xf]  ;;  %v4454_v0 = vor.u32 %v5477_v61, %v4451_v62  ;;  %v4547_v26 = vld [vmem:[#allocation8 + $0x370] sm:$0xf0] }
  0xe6   :  { %v1218_v19 = vadd.f32 %v1194_v46, %v995_v10  ;;  %v4278_v22 = vor.u32 %v5433_v17, %v4275_v21  ;;  %v1227_v46 = vmax.f32 %v1211_v29, 0.0  ;;  %v4563_v17 = vld [vmem:[#allocation8 + $0x390] sm:$0xf0]  ;;  %v5465_v21 = vld [vmem:[#allocation8 + $0x244] sm:$0xf] }
  0xe7   :  { %2921 = vmatpush.bf16.msra.mxu1 %v4326_v35  ;;  %v1008_v30 = vpop.f32.mrf.mxu2  ;;  %v4867_v1 = vld [vmem:[#allocation8 + $0x5f0] sm:$0xf0] }
  0xe8   :  { %v1234_v25 = vmax.f32 %v1218_v19, 0.0  ;;  %2896 = vmatpush.bf16.msrb.mxu3 %v5042_v20  ;;  %v1196_v19 = vperm.slane %v5930_v40, 4  ;;  %v4566_v20 = vor.u32 %v5505_v16, %v4563_v17  ;;  %v4851_v16 = vld [vmem:[#allocation8 + $0x5d0] sm:$0xf0]  ;;  %v5537_v17 = vld [vmem:[#allocation8 + $0x484] sm:$0xf] }
  0xe9   :  { %2908 = vmatpush.bf16.msra.mxu0 %v4182_v27  ;;  %v5393_v27 = vld [vmem:[#allocation8 + $0x4] sm:$0xf]  ;;  %v1022_v35 = vpop.f32.mrf.mxu3 }
  0xea   :  { %v4118_v31 = vor.u32 %v5393_v27, %v4115_v28  ;;  %v5942_v34 = vpack.c.bf16 %v1234_v25, %v1226_v18  ;;  %v1023_v39 = vadd.f32 %v1022_v35, %v1008_v30  ;;  %v5501_v25 = vld [vmem:[#allocation8 + $0x364] sm:$0xf] }
  0xeb   :  { %2922 = vmatpush.bf16.msra.mxu1 %v4310_v49  ;;  %v5009_v49 = vld [vmem:[#allocation8 + $0x700] sm:$0xf]  ;;  %v4550_v30 = vor.u32 %v5501_v25, %v4547_v26 }
  0xec   :  { %2829 = vmatmul.bf16.vlgmr.msra.gmra.mxu2 %v5942_v34  ;;  %v1219_v47 = vadd.f32 %v1195_v9, %v1023_v39  ;;  %2897 = vmatpush.bf16.msrb.mxu3 %v5026_v56  ;;  %v5010_v51 = vor.u32 %v5619_v50, %v5009_v49  ;;  %v4579_v9 = vld [vmem:[#allocation8 + $0x3b0] sm:$0xf0]  ;;  %v5497_v39 = vld [vmem:[#allocation8 + $0x344] sm:$0xf] }
  0xed   :  { %2909 = vmatpush.bf16.msra.mxu0 %v4166_v41  ;;  %v5429_v41 = vld [vmem:[#allocation8 + $0x124] sm:$0xf]  ;;  %2933 = vmatpush.bf16.msra.mxu2 %v4486_v36  ;;  %v4582_v11 = vor.u32 %v5509_v8, %v4579_v9  ;;  %v4390_v36 = vor.u32 %v5461_v32, %v4387_v33  ;;  %v4531_v56 = vld [vmem:[#allocation8 + $0x350] sm:$0xf0] }
  0xee   :  { %v4262_v63 = vor.u32 %v5429_v41, %v4259_v42  ;;  %v1235_v55 = vmax.f32 %v1219_v47, 0.0  ;;  %v4534_v45 = vor.u32 %v5497_v39, %v4531_v56  ;;  %v4371_v47 = vld [vmem:[#allocation8 + $0x210] sm:$0xf0]  ;;  %v5541_v8 = vld [vmem:[#allocation8 + $0x4a4] sm:$0xf] }
  0xef   :  { %2923 = vmatpush.bf16.msra.mxu1 %v4294_v5  ;;  %v5473_v5 = vld [vmem:[#allocation8 + $0x284] sm:$0xf]  ;;  %v4707_v9 = vld [vmem:[#allocation8 + $0x4b0] sm:$0xf0] }
  0xf0   :  { %v5945_v60 = vpack.c.bf16 %v1235_v55, %v1227_v46  ;;  %2898 = vmatpush.bf16.msrb.mxu3 %v5010_v51  ;;  %v4438_v7 = vor.u32 %v5473_v5, %v4435_v6  ;;  %v5457_v46 = vld [vmem:[#allocation8 + $0x204] sm:$0xf]  ;;  %v4659_v32 = vld [vmem:[#allocation8 + $0x450] sm:$0xf0] }
  0xf1   :  { %2910 = vmatpush.bf16.msra.mxu0 %v4150_v57  ;;  %v4246_v57 = vor.u32 %v5425_v52, %v4243_v53  ;;  %2934 = vmatpush.bf16.msra.mxu2 %v4470_v48  ;;  %v4374_v49 = vor.u32 %v5457_v46, %v4371_v47  ;;  %v5545_v53 = vld [vmem:[#allocation8 + $0x4c4] sm:$0xf]  ;;  %v4803_v39 = vld [vmem:[#allocation8 + $0x570] sm:$0xf0] }
  0xf2   :  { %2843 = vmatmul.bf16.vlgmr.msra.gmra.mxu3 %v5945_v60  ;;  %v5489_v6 = vld [vmem:[#allocation8 + $0x304] sm:$0xf] }
  0xf3   :  { %2924 = vmatpush.bf16.msra.mxu1 %v4278_v22  ;;  %v4403_v22 = vld [vmem:[#allocation8 + $0x250] sm:$0xf0] }
  0xf4   :  { %2947 = vmatpush.bf16.msra.mxu3 %v4614_v59  ;;  %v4406_v23 = vor.u32 %v5465_v21, %v4403_v22  ;;  %v4515_v59 = vld [vmem:[#allocation8 + $0x330] sm:$0xf0]  ;;  %v5573_v21 = vld [vmem:[#allocation8 + $0x5a4] sm:$0xf] }
  0xf5   :  { %2911 = vmatpush.bf16.msra.mxu0 %v4134_v14  ;;  %2935 = vmatpush.bf16.msra.mxu2 %v4454_v0  ;;  %v4419_v14 = vld [vmem:[#allocation8 + $0x270] sm:$0xf0]  ;;  %v4518_v62 = vor.u32 %v5493_v58, %v4515_v59  ;;  %v5581_v0 = vld [vmem:[#allocation8 + $0x5e4] sm:$0xf]  ;;  %v4233_v59 = vld [vmem:[#allocation8 + $0xe8] sm:$0xf] }
  0xf6   :  { %v4422_v15 = vor.u32 %v5469_v13, %v4419_v14  ;;  %v4710_v14 = vor.u32 %v5541_v8, %v4707_v9  ;;  %v4835_v22 = vld [vmem:[#allocation8 + $0x5b0] sm:$0xf0] }
  0xf7   :  { %2925 = vmatpush.bf16.msra.mxu1 %v4262_v63  ;;  %v5549_v63 = vld [vmem:[#allocation8 + $0x4e4] sm:$0xf]  ;;  %v4995_v58 = vld [vmem:[#allocation8 + $0x6f0] sm:$0xf0] }
  0xf8   :  { %2948 = vmatpush.bf16.msra.mxu3 %v4598_v3  ;;  %v4742_v52 = vor.u32 %v5549_v63, %v4739_v43 }
  0xf9   :  { %2912 = vmatpush.bf16.msra.mxu0 %v4118_v31  ;;  %v1034_v10 = vpop.f32.mrf.mxu0  ;;  %2936 = vmatpush.bf16.msra.mxu2 %v4438_v7  ;;  %v4499_v7 = vld [vmem:[#allocation8 + $0x310] sm:$0xf0] }
  0xfb   :  { %2926 = vmatpush.bf16.msra.mxu1 %v4246_v57  ;;  %v1048_v12 = vpop.f32.mrf.mxu1  ;;  %v4723_v57 = vld [vmem:[#allocation8 + $0x4d0] sm:$0xf0] }
  0xfc   :  { %v1049_v18 = vadd.f32 %v1048_v12, %v1034_v10  ;;  %2949 = vmatpush.bf16.msra.mxu3 %v4582_v11  ;;  %v4726_v5 = vor.u32 %v5545_v53, %v4723_v57  ;;  %v4502_v10 = vor.u32 %v5489_v6, %v4499_v7  ;;  %v4870_v12 = vor.u32 %v5581_v0, %v4867_v1  ;;  %v4627_v53 = vld [vmem:[#allocation8 + $0x410] sm:$0xf0]  ;;  %v5557_v6 = vld [vmem:[#allocation8 + $0x524] sm:$0xf] }
  0xfd   :  { %2937 = vmatpush.bf16.msra.mxu2 %v4422_v15  ;;  %v5577_v15 = vld [vmem:[#allocation8 + $0x5c4] sm:$0xf]  ;;  %v1199_v0 = vperm.slane %v5930_v40, 7  ;;  %v4771_v7 = vld [vmem:[#allocation8 + $0x530] sm:$0xf0] }
  0xfe   :  { %v1212_v27 = vadd.f32 %v1196_v19, %v1049_v18  ;;  %v4691_v18 = vld [vmem:[#allocation8 + $0x490] sm:$0xf0] }
  0xff   :  { %v1062_v24 = vpop.f32.mrf.mxu2 }
 0x100   :  { %2950 = vmatpush.bf16.msra.mxu3 %v4566_v20  ;;  %v1228_v41 = vmax.f32 %v1212_v27, 0.0  ;;  %v4694_v20 = vor.u32 %v5537_v17, %v4691_v18  ;;  %v4838_v27 = vor.u32 %v5573_v21, %v4835_v22  ;;  %v5420_v17 = vld [vmem:[#allocation8 + $0xd4] sm:$0xf0]  ;;  %v4755_v21 = vld [vmem:[#allocation8 + $0x510] sm:$0xf0] }
 0x101   :  { %v1076_v28 = vpop.f32.mrf.mxu3  ;;  %v1036_v29 = vpop.f32.mrf.mxu0  ;;  %2938 = vmatpush.bf16.msra.mxu2 %v4406_v23  ;;  %v5533_v23 = vld [vmem:[#allocation8 + $0x464] sm:$0xf] }
 0x102   :  { %v1077_v37 = vadd.f32 %v1076_v28, %v1062_v24  ;;  %v4675_v24 = vld [vmem:[#allocation8 + $0x470] sm:$0xf0]  ;;  %v5645_v22 = vld [vmem:[#allocation8 + $0x7e4] sm:$0xf] }
 0x103   :  { %v1050_v31 = vpop.f32.mrf.mxu1  ;;  %v4678_v28 = vor.u32 %v5533_v23, %v4675_v24  ;;  %v5123_v23 = vld [vmem:[#allocation8 + $0x7f0] sm:$0xf0] }
 0x104   :  { %v1051_v35 = vadd.f32 %v1050_v31, %v1036_v29  ;;  %2951 = vmatpush.bf16.msra.mxu3 %v4550_v30  ;;  %v1213_v50 = vadd.f32 %v1197_v38, %v1077_v37  ;;  %v5569_v29 = vld [vmem:[#allocation8 + $0x584] sm:$0xf]  ;;  %v4819_v30 = vld [vmem:[#allocation8 + $0x590] sm:$0xf0] }
 0x105   :  { %2939 = vmatpush.bf16.msra.mxu2 %v4390_v36  ;;  %v5529_v31 = vld [vmem:[#allocation8 + $0x444] sm:$0xf]  ;;  %v4822_v33 = vor.u32 %v5569_v29, %v4819_v30  ;;  %v1198_v36 = vperm.slane %v5930_v40, 6  ;;  %v4963_v30 = vld [vmem:[#allocation8 + $0x6b0] sm:$0xf0] }
 0x106   :  { %v1220_v42 = vadd.f32 %v1196_v19, %v1051_v35  ;;  %v1229_v2 = vmax.f32 %v1213_v50, 0.0  ;;  %v4854_v19 = vor.u32 %v5577_v15, %v4851_v16  ;;  %v4662_v37 = vor.u32 %v5529_v31, %v4659_v32  ;;  %v5561_v50 = vld [vmem:[#allocation8 + $0x544] sm:$0xf]  ;;  %v4979_v15 = vld [vmem:[#allocation8 + $0x6d0] sm:$0xf0] }
 0x107   :  { %v1064_v51 = vpop.f32.mrf.mxu2  ;;  %v4217_v16 = vld [vmem:[#allocation8 + $0xc8] sm:$0xf]  ;;  %v5605_v29 = vld [vmem:[#allocation8 + $0x6a4] sm:$0xf]  ;;  %v5416_v32 = vld [vmem:[#allocation8 + $0xb4] sm:$0xf0] }
 0x108   :  { %v1236_v48 = vmax.f32 %v1220_v42, 0.0  ;;  %2952 = vmatpush.bf16.msra.mxu3 %v4534_v45  ;;  %v4643_v42 = vld [vmem:[#allocation8 + $0x430] sm:$0xf0]  ;;  %v4201_v31 = vld [vmem:[#allocation8 + $0xa8] sm:$0xf] }
 0x109   :  { %v1078_v55 = vpop.f32.mrf.mxu3  ;;  %2940 = vmatpush.bf16.msra.mxu2 %v4374_v49 }
 0x10a   :  { %v5950_v54 = vpack.c.bf16 %v1236_v48, %v1228_v41  ;;  %v1079_v61 = vadd.f32 %v1078_v55, %v1064_v51  ;;  %v5525_v41 = vld [vmem:[#allocation8 + $0x424] sm:$0xf]  ;;  %v4787_v51 = vld [vmem:[#allocation8 + $0x550] sm:$0xf0] }
 0x10b   :  { %v4646_v49 = vor.u32 %v5525_v41, %v4643_v42  ;;  %v5613_v55 = vld [vmem:[#allocation8 + $0x6e4] sm:$0xf]  ;;  %v4790_v1 = vor.u32 %v5561_v50, %v4787_v51  ;;  %v4966_v42 = vor.u32 %v5605_v29, %v4963_v30 }
 0x10c   :  { %2857 = vmatmul.bf16.vlgmr.msrb.gmra.mxu0 %v5950_v54  ;;  %v1221_v3 = vadd.f32 %v1197_v38, %v1079_v61  ;;  %2953 = vmatpush.bf16.msra.mxu3 %v4518_v62  ;;  %v5565_v38 = vld [vmem:[#allocation8 + $0x564] sm:$0xf]  ;;  %v5424_v61 = vld [vmem:[#allocation8 + $0xf4] sm:$0xf0]  ;;  %v4998_v9 = vor.u32 %v5613_v55, %v4995_v58  ;;  %v4329_v58 = vld [vmem:[#allocation8 + $0x1a8] sm:$0xf] }
 0x10d   :  { %2961 = vmatpush.bf16.msrb.mxu0 %v4742_v52  ;;  %v4806_v46 = vor.u32 %v5565_v38, %v4803_v39  ;;  %v5521_v52 = vld [vmem:[#allocation8 + $0x404] sm:$0xf] }
 0x10e   :  { %v1237_v11 = vmax.f32 %v1221_v3, 0.0  ;;  %v5641_v39 = vld [vmem:[#allocation8 + $0x7c4] sm:$0xf] }
 0x10f   :  { %v5625_v30 = vld [vmem:[#allocation8 + $0x744] sm:$0xf] }
 0x110   :  { %v5953_v13 = vpack.c.bf16 %v1237_v11, %v1229_v2  ;;  %2954 = vmatpush.bf16.msra.mxu3 %v4502_v10  ;;  %v4234_v10 = vor.u32 %v5424_v61, %v4233_v59  ;;  %v5609_v11 = vld [vmem:[#allocation8 + $0x6c4] sm:$0xf]  ;;  %v5448_v59 = vld [vmem:[#allocation8 + $0x1b4] sm:$0xf0]  ;;  %v4169_v61 = vld [vmem:[#allocation8 + $0x68] sm:$0xf] }
 0x111   :  { %2962 = vmatpush.bf16.msrb.mxu0 %v4726_v5  ;;  %v4630_v5 = vor.u32 %v5521_v52, %v4627_v53  ;;  %v5637_v52 = vld [vmem:[#allocation8 + $0x7a4] sm:$0xf] }
 0x112   :  { %2871 = vmatmul.bf16.vlgmr.msrb.gmra.mxu1 %v5953_v13 }
 0x113   :  { %2975 = vmatpush.bf16.msrb.mxu1 %v4870_v12 }
 0x115   :  { %2963 = vmatpush.bf16.msrb.mxu0 %v4710_v14 }
 0x117   :  { %2976 = vmatpush.bf16.msrb.mxu1 %v4854_v19  ;;  %v4774_v19 = vor.u32 %v5557_v6, %v4771_v7  ;;  %v5075_v7 = vld [vmem:[#allocation8 + $0x790] sm:$0xf0] }
 0x119   :  { %v1090_v25 = vpop.f32.mrf.mxu0  ;;  %2964 = vmatpush.bf16.msrb.mxu0 %v4694_v20  ;;  %v5553_v20 = vld [vmem:[#allocation8 + $0x504] sm:$0xf] }
 0x11b   :  { %v1104_v26 = vpop.f32.mrf.mxu1  ;;  %2977 = vmatpush.bf16.msrb.mxu1 %v4838_v27  ;;  %v4361_v27 = vld [vmem:[#allocation8 + $0x1e8] sm:$0xf] }
 0x11c   :  { %2913 = vmatmul.bf16.vlgmr.msra.gmra.mxu0 %v5934_v44  ;;  %v1105_v35 = vadd.f32 %v1104_v26, %v1090_v25  ;;  %v4982_v25 = vor.u32 %v5609_v11, %v4979_v15  ;;  %v4218_v26 = vor.u32 %v5420_v17, %v4217_v16  ;;  %v4153_v11 = vld [vmem:[#allocation8 + $0x48] sm:$0xf]  ;;  %v5593_v15 = vld [vmem:[#allocation8 + $0x644] sm:$0xf]  ;;  %v4915_v16 = vld [vmem:[#allocation8 + $0x650] sm:$0xf0] }
 0x11d   :  { %2965 = vmatpush.bf16.msrb.mxu0 %v4678_v28  ;;  %v5456_v28 = vld [vmem:[#allocation8 + $0x1f4] sm:$0xf0] }
 0x11e   :  { %v1214_v47 = vadd.f32 %v1198_v36, %v1105_v35  ;;  %v4362_v38 = vor.u32 %v5456_v28, %v4361_v27  ;;  %v4899_v27 = vld [vmem:[#allocation8 + $0x630] sm:$0xf0] }
 0x11f   :  { %v1118_v56 = vpop.f32.mrf.mxu2  ;;  %2978 = vmatpush.bf16.msrb.mxu1 %v4822_v33 }
 0x120   :  { %v1230_v2 = vmax.f32 %v1214_v47, 0.0  ;;  %v4947_v47 = vld [vmem:[#allocation8 + $0x690] sm:$0xf0] }
 0x121   :  { %v1132_v63 = vpop.f32.mrf.mxu3  ;;  %v1092_v43 = vpop.f32.mrf.mxu0  ;;  %2966 = vmatpush.bf16.msrb.mxu0 %v4662_v37  ;;  %v5126_v37 = vor.u32 %v5645_v22, %v5123_v23  ;;  %v5440_v22 = vld [vmem:[#allocation8 + $0x174] sm:$0xf0]  ;;  %v4918_v23 = vor.u32 %v5593_v15, %v4915_v16  ;;  %v4713_v15 = vld [vmem:[#allocation8 + $0x4a8] sm:$0xf] }
 0x122   :  { %2927 = vmatmul.bf16.vlgmr.msra.gmra.mxu1 %v5937_v4  ;;  %v1133_v62 = vadd.f32 %v1132_v63, %v1118_v56  ;;  %v5107_v56 = vld [vmem:[#allocation8 + $0x7d0] sm:$0xf0]  ;;  %v4202_v63 = vor.u32 %v5416_v32, %v4201_v31  ;;  %v5544_v16 = vld [vmem:[#allocation8 + $0x4b4] sm:$0xf0] }
 0x123   :  { %v1106_v45 = vpop.f32.mrf.mxu1  ;;  %2979 = vmatpush.bf16.msrb.mxu1 %v4806_v46  ;;  %v5601_v46 = vld [vmem:[#allocation8 + $0x684] sm:$0xf]  ;;  %v5110_v50 = vor.u32 %v5641_v39, %v5107_v56  ;;  %v5043_v32 = vld [vmem:[#allocation8 + $0x750] sm:$0xf0]  ;;  %v5396_v39 = vld [vmem:[#allocation8 + $0x14] sm:$0xf0] }
 0x124   :  { %v1107_v48 = vadd.f32 %v1106_v45, %v1092_v43  ;;  %v1215_v18 = vadd.f32 %v1199_v0, %v1133_v62  ;;  %v4345_v43 = vld [vmem:[#allocation8 + $0x1c8] sm:$0xf]  ;;  %v5452_v45 = vld [vmem:[#allocation8 + $0x1d4] sm:$0xf0]  ;;  %v4950_v53 = vor.u32 %v5601_v46, %v4947_v47  ;;  %v4883_v56 = vld [vmem:[#allocation8 + $0x610] sm:$0xf0] }
 0x125   :  { %2967 = vmatpush.bf16.msrb.mxu0 %v4646_v49  ;;  %v5412_v49 = vld [vmem:[#allocation8 + $0x94] sm:$0xf0]  ;;  %v4346_v51 = vor.u32 %v5452_v45, %v4345_v43  ;;  %v5046_v43 = vor.u32 %v5625_v30, %v5043_v32  ;;  %v4489_v46 = vld [vmem:[#allocation8 + $0x2e8] sm:$0xf] }
 0x126   :  { %v1222_v57 = vadd.f32 %v1198_v36, %v1107_v48  ;;  %v1231_v33 = vmax.f32 %v1215_v18, 0.0  ;;  %v4758_v36 = vor.u32 %v5553_v20, %v4755_v21  ;;  %v4185_v48 = vld [vmem:[#allocation8 + $0x88] sm:$0xf]  ;;  %v5408_v62 = vld [vmem:[#allocation8 + $0x74] sm:$0xf0] }
 0x127   :  { %v1120_v8 = vpop.f32.mrf.mxu2  ;;  %2980 = vmatpush.bf16.msrb.mxu1 %v4790_v1  ;;  %v4186_v55 = vor.u32 %v5412_v49, %v4185_v48  ;;  %v4931_v1 = vld [vmem:[#allocation8 + $0x670] sm:$0xf0]  ;;  %v4170_v6 = vor.u32 %v5408_v62, %v4169_v61  ;;  %v4297_v21 = vld [vmem:[#allocation8 + $0x168] sm:$0xf]  ;;  %v5488_v47 = vld [vmem:[#allocation8 + $0x2f4] sm:$0xf0] }
 0x128   :  { %v1238_v3 = vmax.f32 %v1222_v57, 0.0  ;;  %v5091_v57 = vld [vmem:[#allocation8 + $0x7b0] sm:$0xf0]  ;;  %v4298_v29 = vor.u32 %v5440_v22, %v4297_v21  ;;  %v5621_v48 = vld [vmem:[#allocation8 + $0x724] sm:$0xf] }
 0x129   :  { %v1134_v14 = vpop.f32.mrf.mxu3  ;;  %2968 = vmatpush.bf16.msrb.mxu0 %v4630_v5  ;;  %v5633_v5 = vld [vmem:[#allocation8 + $0x784] sm:$0xf]  ;;  %v5059_v20 = vld [vmem:[#allocation8 + $0x770] sm:$0xf0]  ;;  %v5548_v61 = vld [vmem:[#allocation8 + $0x4d4] sm:$0xf0] }
 0x12a   :  { %v5960_v12 = vpack.c.bf16 %v1238_v3, %v1230_v2  ;;  %v1135_v40 = vadd.f32 %v1134_v14, %v1120_v8  ;;  %v5094_v2 = vor.u32 %v5637_v52, %v5091_v57  ;;  %v4330_v3 = vor.u32 %v5448_v59, %v4329_v58  ;;  %v4313_v8 = vld [vmem:[#allocation8 + $0x188] sm:$0xf]  ;;  %v5404_v14 = vld [vmem:[#allocation8 + $0x54] sm:$0xf0] }
 0x12b   :  { %2981 = vmatpush.bf16.msrb.mxu1 %v4774_v19  ;;  %v5078_v17 = vor.u32 %v5633_v5, %v5075_v7  ;;  %v4154_v19 = vor.u32 %v5404_v14, %v4153_v11  ;;  %v5432_v52 = vld [vmem:[#allocation8 + $0x134] sm:$0xf0]  ;;  %v4490_v57 = vor.u32 %v5488_v47, %v4489_v46  ;;  %v4473_v58 = vld [vmem:[#allocation8 + $0x2c8] sm:$0xf] }
 0x12c   :  { %2885 = vmatmul.bf16.vlgmr.msrb.gmra.mxu2 %v5960_v12  ;;  %v1223_v24 = vadd.f32 %v1199_v0, %v1135_v40  ;;  %2969 = vmatmul.bf16.vlgmr.msrb.gmra.mxu0 %v5950_v54  ;;  %v5597_v0 = vld [vmem:[#allocation8 + $0x664] sm:$0xf]  ;;  %v4729_v59 = vld [vmem:[#allocation8 + $0x4c8] sm:$0xf]  ;;  %v5584_v11 = vld [vmem:[#allocation8 + $0x5f4] sm:$0xf0] }
 0x12d   :  { %2989 = vmatpush.bf16.msrb.mxu2 %v4998_v9  ;;  %3017 = vmatpush.bf16.msra.mxu0 %v4234_v10  ;;  %v5444_v9 = vld [vmem:[#allocation8 + $0x194] sm:$0xf0]  ;;  %v4934_v10 = vor.u32 %v5597_v0, %v4931_v1  ;;  %v5629_v40 = vld [vmem:[#allocation8 + $0x764] sm:$0xf]  ;;  %v4249_v5 = vld [vmem:[#allocation8 + $0x108] sm:$0xf] }
 0x12e   :  { %v1239_v35 = vmax.f32 %v1223_v24, 0.0  ;;  %v4314_v18 = vor.u32 %v5444_v9, %v4313_v8  ;;  %v4137_v24 = vld [vmem:[#allocation8 + $0x28] sm:$0xf]  ;;  %v5062_v28 = vor.u32 %v5629_v40, %v5059_v20  ;;  %v5484_v1 = vld [vmem:[#allocation8 + $0x2d4] sm:$0xf0]  ;;  %v4730_v8 = vor.u32 %v5548_v61, %v4729_v59 }
 0x12f   :  { %2982 = vmatpush.bf16.msrb.mxu1 %v4758_v36  ;;  %v4617_v7 = vld [vmem:[#allocation8 + $0x3e8] sm:$0xf]  ;;  %v5520_v9 = vld [vmem:[#allocation8 + $0x3f4] sm:$0xf0]  ;;  %v4474_v14 = vor.u32 %v5484_v1, %v4473_v58 }
 0x130   :  { %v5964_v41 = vpack.c.bf16 %v1239_v35, %v1231_v33  ;;  %v4281_v33 = vld [vmem:[#allocation8 + $0x148] sm:$0xf]  ;;  %v5436_v35 = vld [vmem:[#allocation8 + $0x154] sm:$0xf0]  ;;  %v4618_v20 = vor.u32 %v5520_v9, %v4617_v7 }
 0x131   :  { %2990 = vmatpush.bf16.msrb.mxu2 %v4982_v25  ;;  %3018 = vmatpush.bf16.msra.mxu0 %v4218_v26  ;;  %v5400_v25 = vld [vmem:[#allocation8 + $0x34] sm:$0xf0]  ;;  %v5589_v26 = vld [vmem:[#allocation8 + $0x624] sm:$0xf]  ;;  %v4282_v45 = vor.u32 %v5436_v35, %v4281_v33  ;;  %v4457_v40 = vld [vmem:[#allocation8 + $0x2a8] sm:$0xf] }
 0x132   :  { %2899 = vmatmul.bf16.vlgmr.msrb.gmra.mxu3 %v5964_v41  ;;  %2983 = vmatmul.bf16.vlgmr.msrb.gmra.mxu1 %v5953_v13  ;;  %v4138_v31 = vor.u32 %v5400_v25, %v4137_v24  ;;  %v4902_v36 = vor.u32 %v5589_v26, %v4899_v27  ;;  %v4601_v22 = vld [vmem:[#allocation8 + $0x3c8] sm:$0xf]  ;;  %v5516_v24 = vld [vmem:[#allocation8 + $0x3d4] sm:$0xf0] }
 0x133   :  { %3003 = vmatpush.bf16.msrb.mxu3 %v5126_v37  ;;  %3031 = vmatpush.bf16.msra.mxu1 %v4362_v38  ;;  %v5585_v37 = vld [vmem:[#allocation8 + $0x604] sm:$0xf]  ;;  %v4121_v38 = vld [vmem:[#allocation8 + $0x8] sm:$0xf]  ;;  %v5580_v26 = vld [vmem:[#allocation8 + $0x5d4] sm:$0xf0]  ;;  %v4602_v32 = vor.u32 %v5516_v24, %v4601_v22 }
 0x134   :  { %v4122_v49 = vor.u32 %v5396_v39, %v4121_v38  ;;  %v4857_v25 = vld [vmem:[#allocation8 + $0x5c8] sm:$0xf]  ;;  %v5576_v39 = vld [vmem:[#allocation8 + $0x5b4] sm:$0xf0]  ;;  %v5422_v24 = vld [vmem:[#allocation8 + $0xec] sm:$0xf] }
 0x135   :  { %2991 = vmatpush.bf16.msrb.mxu2 %v4966_v42  ;;  %3019 = vmatpush.bf16.msra.mxu0 %v4202_v63  ;;  %v4745_v42 = vld [vmem:[#allocation8 + $0x4e8] sm:$0xf]  ;;  %v5552_v63 = vld [vmem:[#allocation8 + $0x4f4] sm:$0xf0]  ;;  %v4858_v33 = vor.u32 %v5580_v26, %v4857_v25  ;;  %v4235_v25 = vld [vmem:[#allocation8 + $0xf8] sm:$0xf0] }
 0x136   :  { %v4441_v30 = vld [vmem:[#allocation8 + $0x288] sm:$0xf]  ;;  %v5468_v59 = vld [vmem:[#allocation8 + $0x254] sm:$0xf0] }
 0x137   :  { %3004 = vmatpush.bf16.msrb.mxu3 %v5110_v50  ;;  %3032 = vmatpush.bf16.msra.mxu1 %v4346_v51  ;;  %v5027_v50 = vld [vmem:[#allocation8 + $0x730] sm:$0xf0]  ;;  %v4265_v51 = vld [vmem:[#allocation8 + $0x128] sm:$0xf]  ;;  %v5524_v22 = vld [vmem:[#allocation8 + $0x414] sm:$0xf0] }
 0x138   :  { %v5030_v62 = vor.u32 %v5621_v48, %v5027_v50  ;;  %v4266_v0 = vor.u32 %v5432_v52, %v4265_v51  ;;  %v4585_v35 = vld [vmem:[#allocation8 + $0x3a8] sm:$0xf]  ;;  %v5508_v50 = vld [vmem:[#allocation8 + $0x394] sm:$0xf0] }
 0x139   :  { %2992 = vmatpush.bf16.msrb.mxu2 %v4950_v53  ;;  %3020 = vmatpush.bf16.msra.mxu0 %v4186_v55  ;;  %v4886_v53 = vor.u32 %v5585_v37, %v4883_v56  ;;  %v4746_v55 = vor.u32 %v5552_v63, %v4745_v42  ;;  %v5512_v37 = vld [vmem:[#allocation8 + $0x3b4] sm:$0xf0]  ;;  %v4841_v38 = vld [vmem:[#allocation8 + $0x5a8] sm:$0xf] }
 0x13a   :  { %v4681_v42 = vld [vmem:[#allocation8 + $0x468] sm:$0xf]  ;;  %v5536_v63 = vld [vmem:[#allocation8 + $0x474] sm:$0xf0]  ;;  %v4586_v46 = vor.u32 %v5512_v37, %v4585_v35  ;;  %v4842_v47 = vor.u32 %v5576_v39, %v4841_v38  ;;  %v4238_v37 = vor.u32 %v5422_v24, %v4235_v25  ;;  %v4171_v24 = vld [vmem:[#allocation8 + $0x78] sm:$0xf0] }
 0x13b   :  { %3005 = vmatpush.bf16.msrb.mxu3 %v5094_v2  ;;  %3033 = vmatpush.bf16.msra.mxu1 %v4330_v3  ;;  %v5617_v2 = vld [vmem:[#allocation8 + $0x704] sm:$0xf]  ;;  %v5011_v3 = vld [vmem:[#allocation8 + $0x710] sm:$0xf0]  ;;  %v4569_v48 = vld [vmem:[#allocation8 + $0x388] sm:$0xf] }
 0x13c   :  { %2941 = vmatmul.bf16.vlgmr.msra.gmra.mxu2 %v5942_v34  ;;  %v4825_v51 = vld [vmem:[#allocation8 + $0x588] sm:$0xf]  ;;  %v5572_v52 = vld [vmem:[#allocation8 + $0x594] sm:$0xf0]  ;;  %v4570_v61 = vor.u32 %v5508_v50, %v4569_v48 }
 0x13d   :  { %3021 = vmatpush.bf16.msra.mxu0 %v4170_v6  ;;  %2993 = vmatpush.bf16.msrb.mxu2 %v4934_v10  ;;  %v5428_v6 = vld [vmem:[#allocation8 + $0x114] sm:$0xf0]  ;;  %v4873_v10 = vld [vmem:[#allocation8 + $0x5e8] sm:$0xf] }
 0x13e   :  { %v4874_v21 = vor.u32 %v5584_v11, %v4873_v10  ;;  %v4409_v58 = vld [vmem:[#allocation8 + $0x248] sm:$0xf]  ;;  %v5464_v10 = vld [vmem:[#allocation8 + $0x234] sm:$0xf0] }
 0x13f   :  { %3006 = vmatpush.bf16.msrb.mxu3 %v5078_v17  ;;  %3034 = vmatpush.bf16.msra.mxu1 %v4314_v18  ;;  %v5014_v17 = vor.u32 %v5617_v2, %v5011_v3  ;;  %v4250_v18 = vor.u32 %v5428_v6, %v4249_v5  ;;  %v5504_v2 = vld [vmem:[#allocation8 + $0x374] sm:$0xf0]  ;;  %v4809_v3 = vld [vmem:[#allocation8 + $0x568] sm:$0xf]  ;;  %v4410_v6 = vor.u32 %v5468_v59, %v4409_v58  ;;  %v5414_v58 = vld [vmem:[#allocation8 + $0xac] sm:$0xf] }
 0x140   :  { %v5568_v5 = vld [vmem:[#allocation8 + $0x574] sm:$0xf0]  ;;  %v4649_v7 = vld [vmem:[#allocation8 + $0x428] sm:$0xf]  ;;  %v4203_v59 = vld [vmem:[#allocation8 + $0xb8] sm:$0xf0] }
 0x141   :  { %3022 = vmatpush.bf16.msra.mxu0 %v4154_v19  ;;  %2994 = vmatpush.bf16.msrb.mxu2 %v4918_v23  ;;  %v5480_v19 = vld [vmem:[#allocation8 + $0x2b4] sm:$0xf0]  ;;  %v4714_v23 = vor.u32 %v5544_v16, %v4713_v15  ;;  %v4393_v9 = vld [vmem:[#allocation8 + $0x228] sm:$0xf] }
 0x142   :  { %2955 = vmatmul.bf16.vlgmr.msra.gmra.mxu3 %v5945_v60  ;;  %v4458_v27 = vor.u32 %v5480_v19, %v4457_v40  ;;  %v4537_v15 = vld [vmem:[#allocation8 + $0x348] sm:$0xf]  ;;  %v5564_v40 = vld [vmem:[#allocation8 + $0x554] sm:$0xf0]  ;;  %v4394_v19 = vor.u32 %v5464_v10, %v4393_v9  ;;  %v4347_v9 = vld [vmem:[#allocation8 + $0x1d8] sm:$0xf0] }
 0x143   :  { %3007 = vmatpush.bf16.msrb.mxu3 %v5062_v28  ;;  %3035 = vmatpush.bf16.msra.mxu1 %v4298_v29  ;;  %v4697_v28 = vld [vmem:[#allocation8 + $0x488] sm:$0xf]  ;;  %v5540_v29 = vld [vmem:[#allocation8 + $0x494] sm:$0xf0]  ;;  %v5410_v10 = vld [vmem:[#allocation8 + $0x8c] sm:$0xf] }
 0x144   :  { %v5560_v35 = vld [vmem:[#allocation8 + $0x534] sm:$0xf0]  ;;  %v4985_v39 = vld [vmem:[#allocation8 + $0x6c8] sm:$0xf] }
 0x145   :  { %3023 = vmatpush.bf16.msra.mxu0 %v4138_v31  ;;  %2995 = vmatpush.bf16.msrb.mxu2 %v4902_v36  ;;  %v5476_v31 = vld [vmem:[#allocation8 + $0x294] sm:$0xf0]  ;;  %v4698_v36 = vor.u32 %v5540_v29, %v4697_v28  ;;  %v5001_v28 = vld [vmem:[#allocation8 + $0x6e8] sm:$0xf] }
 0x146   :  { %v4442_v56 = vor.u32 %v5476_v31, %v4441_v30  ;;  %v5616_v29 = vld [vmem:[#allocation8 + $0x6f4] sm:$0xf0]  ;;  %v4521_v30 = vld [vmem:[#allocation8 + $0x328] sm:$0xf] }
 0x147   :  { %3008 = vmatpush.bf16.msrb.mxu3 %v5046_v43  ;;  %3036 = vmatpush.bf16.msra.mxu1 %v4282_v45  ;;  %v4425_v43 = vld [vmem:[#allocation8 + $0x268] sm:$0xf]  ;;  %v5472_v45 = vld [vmem:[#allocation8 + $0x274] sm:$0xf0]  ;;  %v5002_v38 = vor.u32 %v5616_v29, %v5001_v28 }
 0x148   :  { %v4761_v48 = vld [vmem:[#allocation8 + $0x508] sm:$0xf]  ;;  %v5600_v29 = vld [vmem:[#allocation8 + $0x674] sm:$0xf0] }
 0x149   :  { %3024 = vmatpush.bf16.msra.mxu0 %v4122_v49  ;;  %2996 = vmatpush.bf16.msrb.mxu2 %v4886_v53  ;;  %v4682_v49 = vor.u32 %v5536_v63, %v4681_v42  ;;  %v4426_v53 = vor.u32 %v5472_v45, %v4425_v43  ;;  %v4219_v42 = vld [vmem:[#allocation8 + $0xd8] sm:$0xf0]  ;;  %v5612_v45 = vld [vmem:[#allocation8 + $0x6d4] sm:$0xf0]  ;;  %v5129_v50 = vld [vmem:[#allocation8 + $0x7e8] sm:$0xf] }
 0x14a   :  { %v4937_v28 = vld [vmem:[#allocation8 + $0x668] sm:$0xf] }
 0x14b   :  { %3009 = vmatpush.bf16.msrb.mxu3 %v5030_v62  ;;  %3037 = vmatpush.bf16.msra.mxu1 %v4266_v0  ;;  %v4826_v62 = vor.u32 %v5572_v52, %v4825_v51  ;;  %v4553_v0 = vld [vmem:[#allocation8 + $0x368] sm:$0xf]  ;;  %v5648_v52 = vld [vmem:[#allocation8 + $0x7f4] sm:$0xf0] }
 0x14c   :  { %3025 = vmatmul.bf16.vlgmr.msra.gmra.mxu0 %v5934_v44  ;;  %2997 = vmatmul.bf16.vlgmr.msrb.gmra.mxu2 %v5960_v12  ;;  %v4554_v11 = vor.u32 %v5504_v2, %v4553_v0  ;;  %v5130_v0 = vor.u32 %v5648_v52, %v5129_v50  ;;  %v4969_v2 = vld [vmem:[#allocation8 + $0x6a8] sm:$0xf]  ;;  %v4139_v50 = vld [vmem:[#allocation8 + $0x38] sm:$0xf0] }
 0x14d   :  { %3073 = vmatpush.bf16.msrb.mxu0 %v4746_v55  ;;  %3045 = vmatpush.bf16.msra.mxu2 %v4490_v57  ;;  %v4665_v55 = vld [vmem:[#allocation8 + $0x448] sm:$0xf]  ;;  %v5532_v57 = vld [vmem:[#allocation8 + $0x454] sm:$0xf0] }
 0x14e   :  { %v4666_v1 = vor.u32 %v5532_v57, %v4665_v55  ;;  %v4363_v55 = vld [vmem:[#allocation8 + $0x1f8] sm:$0xf0]  ;;  %v4986_v57 = vor.u32 %v5612_v45, %v4985_v39 }
 0x14f   :  { %3010 = vmatpush.bf16.msrb.mxu3 %v5014_v17  ;;  %3038 = vmatpush.bf16.msra.mxu1 %v4250_v18  ;;  %v5500_v17 = vld [vmem:[#allocation8 + $0x354] sm:$0xf0]  ;;  %v4793_v18 = vld [vmem:[#allocation8 + $0x548] sm:$0xf] }
 0x150   :  { %v4538_v26 = vor.u32 %v5500_v17, %v4537_v15  ;;  %v4953_v17 = vld [vmem:[#allocation8 + $0x688] sm:$0xf] }
 0x151   :  { %3074 = vmatpush.bf16.msrb.mxu0 %v4730_v8  ;;  %3046 = vmatpush.bf16.msra.mxu2 %v4474_v14  ;;  %v5528_v8 = vld [vmem:[#allocation8 + $0x434] sm:$0xf0]  ;;  %v4810_v14 = vor.u32 %v5568_v5, %v4809_v3  ;;  %v5113_v5 = vld [vmem:[#allocation8 + $0x7c8] sm:$0xf] }
 0x152   :  { %3039 = vmatmul.bf16.vlgmr.msra.gmra.mxu1 %v5937_v4  ;;  %3011 = vmatmul.bf16.vlgmr.msrb.gmra.mxu3 %v5964_v41  ;;  %v4650_v16 = vor.u32 %v5528_v8, %v4649_v7  ;;  %v5608_v3 = vld [vmem:[#allocation8 + $0x6b4] sm:$0xf0]  ;;  %v5450_v8 = vld [vmem:[#allocation8 + $0x1cc] sm:$0xf] }
 0x153   :  { %3059 = vmatpush.bf16.msra.mxu3 %v4618_v20  ;;  %3087 = vmatpush.bf16.msrb.mxu1 %v4874_v21  ;;  %v4377_v20 = vld [vmem:[#allocation8 + $0x208] sm:$0xf]  ;;  %v5644_v7 = vld [vmem:[#allocation8 + $0x7d4] sm:$0xf0] }
 0x154   :  { %v4633_v21 = vld [vmem:[#allocation8 + $0x408] sm:$0xf]  ;;  %v5114_v15 = vor.u32 %v5644_v7, %v5113_v5  ;;  %v5550_v5 = vld [vmem:[#allocation8 + $0x4ec] sm:$0xf] }
 0x155   :  { %3075 = vmatpush.bf16.msrb.mxu0 %v4714_v23  ;;  %3047 = vmatpush.bf16.msra.mxu2 %v4458_v27  ;;  %v5460_v23 = vld [vmem:[#allocation8 + $0x214] sm:$0xf0]  ;;  %v4794_v27 = vor.u32 %v5564_v40, %v4793_v18  ;;  %v4634_v31 = vor.u32 %v5524_v22, %v4633_v21  ;;  %v5097_v40 = vld [vmem:[#allocation8 + $0x7a8] sm:$0xf]  ;;  %v5446_v21 = vld [vmem:[#allocation8 + $0x1ac] sm:$0xf] }
 0x156   :  { %v5604_v18 = vld [vmem:[#allocation8 + $0x694] sm:$0xf0]  ;;  %v4331_v22 = vld [vmem:[#allocation8 + $0x1b8] sm:$0xf0] }
 0x157   :  { %3060 = vmatpush.bf16.msra.mxu3 %v4602_v32  ;;  %3088 = vmatpush.bf16.msrb.mxu1 %v4858_v33  ;;  %v5496_v32 = vld [vmem:[#allocation8 + $0x334] sm:$0xf0]  ;;  %v4777_v33 = vld [vmem:[#allocation8 + $0x528] sm:$0xf]  ;;  %v4954_v25 = vor.u32 %v5604_v18, %v4953_v17 }
 0x158   :  { %v4522_v63 = vor.u32 %v5496_v32, %v4521_v30  ;;  %v4778_v43 = vor.u32 %v5560_v35, %v4777_v33  ;;  %v5081_v30 = vld [vmem:[#allocation8 + $0x788] sm:$0xf]  ;;  %v5636_v32 = vld [vmem:[#allocation8 + $0x794] sm:$0xf0]  ;;  %v5442_v33 = vld [vmem:[#allocation8 + $0x18c] sm:$0xf] }
 0x159   :  { %3076 = vmatpush.bf16.msrb.mxu0 %v4698_v36  ;;  %3048 = vmatpush.bf16.msra.mxu2 %v4442_v56  ;;  %v4378_v36 = vor.u32 %v5460_v23, %v4377_v20  ;;  %v5418_v56 = vld [vmem:[#allocation8 + $0xcc] sm:$0xf]  ;;  %v5640_v20 = vld [vmem:[#allocation8 + $0x7b4] sm:$0xf0]  ;;  %v4315_v35 = vld [vmem:[#allocation8 + $0x198] sm:$0xf0]  ;;  %v5082_v39 = vor.u32 %v5636_v32, %v5081_v30 }
 0x15a   :  { %v4222_v51 = vor.u32 %v5418_v56, %v4219_v42  ;;  %v5406_v23 = vld [vmem:[#allocation8 + $0x6c] sm:$0xf]  ;;  %v4318_v56 = vor.u32 %v5442_v33, %v4315_v35  ;;  %v4921_v42 = vld [vmem:[#allocation8 + $0x648] sm:$0xf]  ;;  %v5624_v17 = vld [vmem:[#allocation8 + $0x734] sm:$0xf0] }
 0x15b   :  { %3061 = vmatpush.bf16.msra.mxu3 %v4586_v46  ;;  %3089 = vmatpush.bf16.msrb.mxu1 %v4842_v47  ;;  %v4505_v46 = vld [vmem:[#allocation8 + $0x308] sm:$0xf]  ;;  %v5492_v47 = vld [vmem:[#allocation8 + $0x314] sm:$0xf0]  ;;  %v5426_v30 = vld [vmem:[#allocation8 + $0x10c] sm:$0xf] }
 0x15c   :  { %v5518_v33 = vld [vmem:[#allocation8 + $0x3ec] sm:$0xf]  ;;  %v4619_v35 = vld [vmem:[#allocation8 + $0x3f8] sm:$0xf0] }
 0x15d   :  { %3077 = vmatpush.bf16.msrb.mxu0 %v4682_v49  ;;  %3049 = vmatpush.bf16.msra.mxu2 %v4426_v53  ;;  %v5556_v49 = vld [vmem:[#allocation8 + $0x514] sm:$0xf0]  ;;  %v5454_v53 = vld [vmem:[#allocation8 + $0x1ec] sm:$0xf] }
 0x15f   :  { %3062 = vmatpush.bf16.msra.mxu3 %v4570_v61  ;;  %3090 = vmatpush.bf16.msrb.mxu1 %v4826_v62  ;;  %v4506_v61 = vor.u32 %v5492_v47, %v4505_v46  ;;  %v4762_v62 = vor.u32 %v5556_v49, %v4761_v48  ;;  %v5632_v46 = vld [vmem:[#allocation8 + $0x774] sm:$0xf0]  ;;  %v5438_v47 = vld [vmem:[#allocation8 + $0x16c] sm:$0xf]  ;;  %v4299_v48 = vld [vmem:[#allocation8 + $0x178] sm:$0xf0] }
 0x160   :  { %v5398_v49 = vld [vmem:[#allocation8 + $0x2c] sm:$0xf] }
 0x161   :  { %3078 = vmatpush.bf16.msrb.mxu0 %v4666_v1  ;;  %3050 = vmatpush.bf16.msra.mxu2 %v4410_v6  ;;  %v4366_v1 = vor.u32 %v5454_v53, %v4363_v55  ;;  %v4206_v6 = vor.u32 %v5414_v58, %v4203_v59  ;;  %v4302_v53 = vor.u32 %v5438_v47, %v4299_v48  ;;  %v4905_v55 = vld [vmem:[#allocation8 + $0x628] sm:$0xf] }
 0x162   :  { %v5049_v58 = vld [vmem:[#allocation8 + $0x748] sm:$0xf]  ;;  %v4142_v59 = vor.u32 %v5398_v49, %v4139_v50  ;;  %v5514_v49 = vld [vmem:[#allocation8 + $0x3cc] sm:$0xf]  ;;  %v4603_v50 = vld [vmem:[#allocation8 + $0x3d8] sm:$0xf0] }
 0x163   :  { %3063 = vmatpush.bf16.msra.mxu3 %v4554_v11  ;;  %3091 = vmatpush.bf16.msrb.mxu1 %v4810_v14  ;;  %v4187_v11 = vld [vmem:[#allocation8 + $0x98] sm:$0xf0]  ;;  %v4970_v14 = vor.u32 %v5608_v3, %v4969_v2 }
 0x164   :  { %v4123_v2 = vld [vmem:[#allocation8 + $0x18] sm:$0xf0] }
 0x165   :  { %3079 = vmatpush.bf16.msrb.mxu0 %v4650_v16  ;;  %3051 = vmatpush.bf16.msra.mxu2 %v4394_v19  ;;  %v4350_v16 = vor.u32 %v5450_v8, %v4347_v9  ;;  %v4190_v19 = vor.u32 %v5410_v10, %v4187_v11  ;;  %v4889_v9 = vld [vmem:[#allocation8 + $0x608] sm:$0xf]  ;;  %v5588_v10 = vld [vmem:[#allocation8 + $0x614] sm:$0xf0]  ;;  %v5486_v11 = vld [vmem:[#allocation8 + $0x2ec] sm:$0xf] }
 0x167   :  { %3064 = vmatpush.bf16.msra.mxu3 %v4538_v26  ;;  %3092 = vmatpush.bf16.msrb.mxu1 %v4794_v27  ;;  %v5098_v26 = vor.u32 %v5640_v20, %v5097_v40  ;;  %v4334_v27 = vor.u32 %v5446_v21, %v4331_v22  ;;  %v5430_v40 = vld [vmem:[#allocation8 + $0x12c] sm:$0xf]  ;;  %v4890_v20 = vor.u32 %v5588_v10, %v4889_v9  ;;  %v4731_v22 = vld [vmem:[#allocation8 + $0x4d8] sm:$0xf0] }
 0x168   :  { %v5546_v21 = vld [vmem:[#allocation8 + $0x4cc] sm:$0xf]  ;;  %v4427_v10 = vld [vmem:[#allocation8 + $0x278] sm:$0xf0] }
 0x169   :  { %3080 = vmatpush.bf16.msrb.mxu0 %v4634_v31  ;;  %3052 = vmatpush.bf16.msra.mxu2 %v4378_v36  ;;  %v4174_v31 = vor.u32 %v5406_v23, %v4171_v24  ;;  %v5402_v36 = vld [vmem:[#allocation8 + $0x4c] sm:$0xf]  ;;  %v4734_v32 = vor.u32 %v5546_v21, %v4731_v22  ;;  %v5982_v21 = vpop.f32.mrf.mxu0 }
 0x16a   :  { %v5470_v9 = vld [vmem:[#allocation8 + $0x26c] sm:$0xf] }
 0x16b   :  { %3065 = vmatpush.bf16.msra.mxu3 %v4522_v63  ;;  %3093 = vmatpush.bf16.msrb.mxu1 %v4778_v43  ;;  %v5596_v63 = vld [vmem:[#allocation8 + $0x654] sm:$0xf0]  ;;  %v5065_v43 = vld [vmem:[#allocation8 + $0x768] sm:$0xf]  ;;  %v5466_v22 = vld [vmem:[#allocation8 + $0x24c] sm:$0xf] }
 0x16c   :  { %3053 = vmatmul.bf16.vlgmr.msra.gmra.mxu2 %v5942_v34  ;;  %3081 = vmatmul.bf16.vlgmr.msrb.gmra.mxu0 %v5950_v54  ;;  %v5066_v52 = vor.u32 %v5632_v46, %v5065_v43  ;;  %v4622_v43 = vor.u32 %v5518_v33, %v4619_v35  ;;  %v4459_v46 = vld [vmem:[#allocation8 + $0x2b8] sm:$0xf0]  ;;  %v5984_v33 = vpop.f32.mrf.mxu1 }
 0x16d   :  { %3129 = vmatpush.bf16.msra.mxu0 %v4238_v37  ;;  %3101 = vmatpush.bf16.msrb.mxu2 %v5002_v38  ;;  %v4155_v37 = vld [vmem:[#allocation8 + $0x58] sm:$0xf0]  ;;  %v4938_v38 = vor.u32 %v5600_v29, %v4937_v28  ;;  %v5620_v29 = vld [vmem:[#allocation8 + $0x714] sm:$0xf0] }
 0x16e   :  { %v4158_v45 = vor.u32 %v5402_v36, %v4155_v37  ;;  %v5582_v36 = vld [vmem:[#allocation8 + $0x5ec] sm:$0xf]  ;;  %v4875_v37 = vld [vmem:[#allocation8 + $0x5f8] sm:$0xf0] }
 0x16f   :  { %3066 = vmatpush.bf16.msra.mxu3 %v4506_v61  ;;  %3094 = vmatpush.bf16.msrb.mxu1 %v4762_v62  ;;  %v5628_v61 = vld [vmem:[#allocation8 + $0x754] sm:$0xf0]  ;;  %v5434_v62 = vld [vmem:[#allocation8 + $0x14c] sm:$0xf]  ;;  %v4878_v47 = vor.u32 %v5582_v36, %v4875_v37  ;;  %v4395_v37 = vld [vmem:[#allocation8 + $0x238] sm:$0xf0] }
 0x170   :  { %v5050_v7 = vor.u32 %v5628_v61, %v5049_v58  ;;  %v5474_v58 = vld [vmem:[#allocation8 + $0x28c] sm:$0xf] }
 0x171   :  { %3130 = vmatpush.bf16.msra.mxu0 %v4222_v51  ;;  %3102 = vmatpush.bf16.msrb.mxu2 %v4986_v57  ;;  %v4922_v51 = vor.u32 %v5596_v63, %v4921_v42  ;;  %v5592_v57 = vld [vmem:[#allocation8 + $0x634] sm:$0xf0]  ;;  %v5462_v36 = vld [vmem:[#allocation8 + $0x22c] sm:$0xf] }
 0x172   :  { %3067 = vmatmul.bf16.vlgmr.msra.gmra.mxu3 %v5945_v60  ;;  %3095 = vmatmul.bf16.vlgmr.msrb.gmra.mxu1 %v5953_v13  ;;  %v4906_v3 = vor.u32 %v5592_v57, %v4905_v55  ;;  %v4699_v55 = vld [vmem:[#allocation8 + $0x498] sm:$0xf0] }
 0x173   :  { %3115 = vmatpush.bf16.msrb.mxu3 %v5130_v0  ;;  %3143 = vmatpush.bf16.msra.mxu1 %v4366_v1  ;;  %v4283_v0 = vld [vmem:[#allocation8 + $0x158] sm:$0xf0]  ;;  %v5394_v1 = vld [vmem:[#allocation8 + $0xc] sm:$0xf] }
 0x174   :  { %v4286_v8 = vor.u32 %v5434_v62, %v4283_v0  ;;  %v5510_v0 = vld [vmem:[#allocation8 + $0x3ac] sm:$0xf] }
 0x175   :  { %3131 = vmatpush.bf16.msra.mxu0 %v4206_v6  ;;  %3103 = vmatpush.bf16.msrb.mxu2 %v4970_v14  ;;  %v4747_v6 = vld [vmem:[#allocation8 + $0x4f8] sm:$0xf0]  ;;  %v4126_v14 = vor.u32 %v5394_v1, %v4123_v2  ;;  %v5574_v2 = vld [vmem:[#allocation8 + $0x5ac] sm:$0xf] }
 0x176   :  { %v4750_v18 = vor.u32 %v5550_v5, %v4747_v6  ;;  %v4587_v1 = vld [vmem:[#allocation8 + $0x3b8] sm:$0xf0]  ;;  %v5534_v5 = vld [vmem:[#allocation8 + $0x46c] sm:$0xf] }
 0x177   :  { %3116 = vmatpush.bf16.msrb.mxu3 %v5114_v15  ;;  %3144 = vmatpush.bf16.msra.mxu1 %v4350_v16  ;;  %v4491_v15 = vld [vmem:[#allocation8 + $0x2f8] sm:$0xf0]  ;;  %v5033_v16 = vld [vmem:[#allocation8 + $0x728] sm:$0xf] }
 0x178   :  { %v4494_v23 = vor.u32 %v5486_v11, %v4491_v15  ;;  %v5034_v24 = vor.u32 %v5624_v17, %v5033_v16  ;;  %v4683_v6 = vld [vmem:[#allocation8 + $0x478] sm:$0xf0]  ;;  %v5506_v15 = vld [vmem:[#allocation8 + $0x38c] sm:$0xf] }
 0x179   :  { %3132 = vmatpush.bf16.msra.mxu0 %v4190_v19  ;;  %3104 = vmatpush.bf16.msrb.mxu2 %v4954_v25  ;;  %v4267_v19 = vld [vmem:[#allocation8 + $0x138] sm:$0xf0]  ;;  %v5482_v25 = vld [vmem:[#allocation8 + $0x2cc] sm:$0xf] }
 0x17a   :  { %v4270_v28 = vor.u32 %v5430_v40, %v4267_v19  ;;  %v4571_v16 = vld [vmem:[#allocation8 + $0x398] sm:$0xf0]  ;;  %v5570_v17 = vld [vmem:[#allocation8 + $0x58c] sm:$0xf] }
 0x17b   :  { %3117 = vmatpush.bf16.msrb.mxu3 %v5098_v26  ;;  %3145 = vmatpush.bf16.msra.mxu1 %v4334_v27  ;;  %v4475_v26 = vld [vmem:[#allocation8 + $0x2d8] sm:$0xf0]  ;;  %v5017_v27 = vld [vmem:[#allocation8 + $0x708] sm:$0xf]  ;;  %v5530_v40 = vld [vmem:[#allocation8 + $0x44c] sm:$0xf] }
 0x17c   :  { %v5018_v42 = vor.u32 %v5620_v29, %v5017_v27  ;;  %v4667_v19 = vld [vmem:[#allocation8 + $0x458] sm:$0xf0] }
 0x17d   :  { %3133 = vmatpush.bf16.msra.mxu0 %v4174_v31  ;;  %3105 = vmatpush.bf16.msrb.mxu2 %v4938_v38  ;;  %v4251_v31 = vld [vmem:[#allocation8 + $0x118] sm:$0xf0]  ;;  %v5542_v38 = vld [vmem:[#allocation8 + $0x4ac] sm:$0xf] }
 0x17e   :  { %v4254_v63 = vor.u32 %v5426_v30, %v4251_v31  ;;  %v4555_v27 = vld [vmem:[#allocation8 + $0x378] sm:$0xf0]  ;;  %v5526_v30 = vld [vmem:[#allocation8 + $0x42c] sm:$0xf] }
 0x17f   :  { %3118 = vmatpush.bf16.msrb.mxu3 %v5082_v39  ;;  %3146 = vmatpush.bf16.msra.mxu1 %v4318_v56  ;;  %v4715_v39 = vld [vmem:[#allocation8 + $0x4b8] sm:$0xf0]  ;;  %v4478_v56 = vor.u32 %v5482_v25, %v4475_v26  ;;  %v4670_v25 = vor.u32 %v5530_v40, %v4667_v19  ;;  %v5502_v26 = vld [vmem:[#allocation8 + $0x36c] sm:$0xf]  ;;  %v5992_v19 = vpop.f32.mrf.mxu3 }
 0x180   :  { %v4718_v48 = vor.u32 %v5542_v38, %v4715_v39  ;;  %v4811_v29 = vld [vmem:[#allocation8 + $0x578] sm:$0xf0]  ;;  %v4558_v35 = vor.u32 %v5502_v26, %v4555_v27  ;;  %v5654_v27 = vld [vmem:[#allocation9 + $0x28] sm:$0xff] }
 0x181   :  { %3134 = vmatpush.bf16.msra.mxu0 %v4158_v45  ;;  %3106 = vmatpush.bf16.msrb.mxu2 %v4922_v51  ;;  %v5478_v45 = vld [vmem:[#allocation8 + $0x2ac] sm:$0xf]  ;;  %v4651_v31 = vld [vmem:[#allocation8 + $0x438] sm:$0xf0] }
 0x182   :  { %v5578_v51 = vld [vmem:[#allocation8 + $0x5cc] sm:$0xf]  ;;  %v4462_v57 = vor.u32 %v5478_v45, %v4459_v46  ;;  %v4654_v39 = vor.u32 %v5526_v30, %v4651_v31  ;;  %v4635_v46 = vld [vmem:[#allocation8 + $0x418] sm:$0xf0] }
 0x183   :  { %3119 = vmatpush.bf16.msrb.mxu3 %v5066_v52  ;;  %3147 = vmatpush.bf16.msra.mxu1 %v4302_v53  ;;  %v4859_v52 = vld [vmem:[#allocation8 + $0x5d8] sm:$0xf0]  ;;  %v5538_v53 = vld [vmem:[#allocation8 + $0x48c] sm:$0xf] }
 0x184   :  { %v4862_v61 = vor.u32 %v5578_v51, %v4859_v52  ;;  %v4702_v62 = vor.u32 %v5538_v53, %v4699_v55  ;;  %v5522_v45 = vld [vmem:[#allocation8 + $0x40c] sm:$0xf]  ;;  %v5003_v55 = vld [vmem:[#allocation8 + $0x6f8] sm:$0xf0] }
 0x185   :  { %3135 = vmatpush.bf16.msra.mxu0 %v4142_v59  ;;  %3107 = vmatpush.bf16.msrb.mxu2 %v4906_v3  ;;  %v4443_v59 = vld [vmem:[#allocation8 + $0x298] sm:$0xf0]  ;;  %v5614_v51 = vld [vmem:[#allocation8 + $0x6ec] sm:$0xf]  ;;  %v4638_v53 = vor.u32 %v5522_v45, %v4635_v46 }
 0x186   :  { %v4843_v3 = vld [vmem:[#allocation8 + $0x5b8] sm:$0xf0] }
 0x187   :  { %3120 = vmatpush.bf16.msrb.mxu3 %v5050_v7  ;;  %3148 = vmatpush.bf16.msra.mxu1 %v4286_v8  ;;  %v4446_v7 = vor.u32 %v5474_v58, %v4443_v59  ;;  %v4590_v8 = vor.u32 %v5510_v0, %v4587_v1  ;;  %v4846_v11 = vor.u32 %v5574_v2, %v4843_v3  ;;  %v5986_v58 = vpop.f32.mrf.mxu0  ;;  %v5988_v59 = vpop.f32.mrf.mxu2  ;;  %v5656_v0 = vld [vmem:[#allocation9 + $0x38] sm:$0xff] }
 0x188   :  { %v5006_v2 = vor.u32 %v5614_v51, %v5003_v55  ;;  %v5115_v26 = vld [vmem:[#allocation8 + $0x7d8] sm:$0xf0]  ;;  %v5662_v51 = vld [vmem:[#allocation9 + $0x68] sm:$0xff] }
 0x189   :  { %3136 = vmatpush.bf16.msra.mxu0 %v4126_v14  ;;  %3108 = vmatpush.bf16.msrb.mxu2 %v4890_v20  ;;  %v4686_v14 = vor.u32 %v5534_v5, %v4683_v6  ;;  %v4430_v20 = vor.u32 %v5470_v9, %v4427_v10  ;;  %v5610_v5 = vld [vmem:[#allocation8 + $0x6cc] sm:$0xf]  ;;  %v4987_v6 = vld [vmem:[#allocation8 + $0x6d8] sm:$0xf0] }
 0x18a   :  { %v4507_v9 = vld [vmem:[#allocation8 + $0x318] sm:$0xf0]  ;;  %v5554_v10 = vld [vmem:[#allocation8 + $0x50c] sm:$0xf] }
 0x18b   :  { %3121 = vmatpush.bf16.msrb.mxu3 %v5034_v24  ;;  %3149 = vmatpush.bf16.msra.mxu1 %v4270_v28  ;;  %v5566_v28 = vld [vmem:[#allocation8 + $0x56c] sm:$0xf]  ;;  %v4939_v45 = vld [vmem:[#allocation8 + $0x678] sm:$0xf0] }
 0x18c   :  { %3137 = vmatmul.bf16.vlgmr.msra.gmra.mxu0 %v5934_v44  ;;  %3109 = vmatmul.bf16.vlgmr.msrb.gmra.mxu2 %v5960_v12  ;;  %v4606_v44 = vor.u32 %v5514_v49, %v4603_v50  ;;  %v4814_v38 = vor.u32 %v5566_v28, %v4811_v29  ;;  %v5458_v49 = vld [vmem:[#allocation8 + $0x20c] sm:$0xf]  ;;  %v4379_v50 = vld [vmem:[#allocation8 + $0x218] sm:$0xf0]  ;;  %v5998_v28 = vld [vmem:[#allocation11 + $0x8] sm:$0xf] }
 0x18d   :  { %3185 = vmatpush.bf16.msrb.mxu0 %v4750_v18  ;;  %3157 = vmatpush.bf16.msra.mxu2 %v4494_v23  ;;  %v4827_v18 = vld [vmem:[#allocation8 + $0x598] sm:$0xf0]  ;;  %v4382_v1 = vor.u32 %v5458_v49, %v4379_v50  ;;  %v2846_v50 = vpop.f32.mrf.mxu3 }
 0x18e   :  { %v4411_v23 = vld [vmem:[#allocation8 + $0x258] sm:$0xf0]  ;;  %v4830_v24 = vor.u32 %v5570_v17, %v4827_v18  ;;  %v5655_v17 = vld [vmem:[#allocation9 + $0x30] sm:$0xff]  ;;  %v4990_v18 = vor.u32 %v5610_v5, %v4987_v6 }
 0x18f   :  { %3122 = vmatpush.bf16.msrb.mxu3 %v5018_v42  ;;  %3150 = vmatpush.bf16.msra.mxu1 %v4254_v63  ;;  %v4539_v42 = vld [vmem:[#allocation8 + $0x358] sm:$0xf0]  ;;  %v5562_v63 = vld [vmem:[#allocation8 + $0x54c] sm:$0xf]  ;;  %v2832_v30 = vpop.f32.mrf.mxu2 }
 0x190   :  { %v5664_v29 = vld [vmem:[#allocation9 + $0x78] sm:$0xff] }
 0x191   :  { %3186 = vmatpush.bf16.msrb.mxu0 %v4734_v32  ;;  %3158 = vmatpush.bf16.msra.mxu2 %v4478_v56  ;;  %v4414_v32 = vor.u32 %v5466_v22, %v4411_v23  ;;  %v5498_v56 = vld [vmem:[#allocation8 + $0x34c] sm:$0xf]  ;;  %v4971_v23 = vld [vmem:[#allocation8 + $0x6b8] sm:$0xf0] }
 0x192   :  { %3123 = vmatmul.bf16.vlgmr.msrb.gmra.mxu3 %v5964_v41  ;;  %3151 = vmatmul.bf16.vlgmr.msra.gmra.mxu1 %v5937_v4  ;;  %v4574_v4 = vor.u32 %v5506_v15, %v4571_v16  ;;  %v5646_v15 = vld [vmem:[#allocation8 + $0x7ec] sm:$0xf]  ;;  %v5131_v16 = vld [vmem:[#allocation8 + $0x7f8] sm:$0xf0] }
 0x193   :  { %3171 = vmatpush.bf16.msra.mxu3 %v4622_v43  ;;  %3199 = vmatpush.bf16.msrb.mxu1 %v4878_v47  ;;  %v4795_v43 = vld [vmem:[#allocation8 + $0x558] sm:$0xf0]  ;;  %v4398_v47 = vor.u32 %v5462_v36, %v4395_v37  ;;  %v5606_v22 = vld [vmem:[#allocation8 + $0x6ac] sm:$0xf]  ;;  %v1505_v36 = vperm.slane %v5998_v28, 0 }
 0x194   :  { %v4798_v52 = vor.u32 %v5562_v63, %v4795_v43  ;;  %v4974_v31 = vor.u32 %v5606_v22, %v4971_v23  ;;  %v5598_v43 = vld [vmem:[#allocation8 + $0x66c] sm:$0xf]  ;;  %v5652_v49 = vld [vmem:[#allocation9 + $0x18] sm:$0xff] }
 0x195   :  { %3187 = vmatpush.bf16.msrb.mxu0 %v4718_v48  ;;  %3159 = vmatpush.bf16.msra.mxu2 %v4462_v57  ;;  %v4542_v48 = vor.u32 %v5498_v56, %v4539_v42  ;;  %v5494_v57 = vld [vmem:[#allocation8 + $0x32c] sm:$0xf]  ;;  %v5663_v56 = vld [vmem:[#allocation9 + $0x70] sm:$0xff]  ;;  %v2803_v46 = vadd.f32 %v5982_v21, %v1505_v36  ;;  %v4891_v22 = vld [vmem:[#allocation8 + $0x618] sm:$0xf0] }
 0x196   :  { %v5630_v21 = vld [vmem:[#allocation8 + $0x76c] sm:$0xf] }
 0x197   :  { %3172 = vmatpush.bf16.msra.mxu3 %v4606_v44  ;;  %3200 = vmatpush.bf16.msrb.mxu1 %v4862_v61  ;;  %v4523_v44 = vld [vmem:[#allocation8 + $0x338] sm:$0xf0]  ;;  %v5558_v61 = vld [vmem:[#allocation8 + $0x52c] sm:$0xf] }
 0x198   :  { %v4526_v3 = vor.u32 %v5494_v57, %v4523_v44  ;;  %v5594_v57 = vld [vmem:[#allocation8 + $0x64c] sm:$0xf]  ;;  %v4923_v44 = vld [vmem:[#allocation8 + $0x658] sm:$0xf0] }
 0x199   :  { %3188 = vmatpush.bf16.msrb.mxu0 %v4702_v62  ;;  %3160 = vmatpush.bf16.msra.mxu2 %v4446_v7  ;;  %v4779_v62 = vld [vmem:[#allocation8 + $0x538] sm:$0xf0]  ;;  %v5490_v7 = vld [vmem:[#allocation8 + $0x30c] sm:$0xf]  ;;  %v4926_v5 = vor.u32 %v5594_v57, %v4923_v44 }
 0x19a   :  { %v4510_v40 = vor.u32 %v5490_v7, %v4507_v9  ;;  %v5590_v7 = vld [vmem:[#allocation8 + $0x62c] sm:$0xf] }
 0x19b   :  { %3173 = vmatpush.bf16.msra.mxu3 %v4590_v8  ;;  %3201 = vmatpush.bf16.msrb.mxu1 %v4846_v11  ;;  %v4782_v8 = vor.u32 %v5558_v61, %v4779_v62  ;;  %v4763_v11 = vld [vmem:[#allocation8 + $0x518] sm:$0xf0]  ;;  %v2817_v61 = vadd.f32 %v5984_v33, %v2803_v46 }
 0x19c   :  { %v5067_v62 = vld [vmem:[#allocation8 + $0x778] sm:$0xf0] }
 0x19d   :  { %3189 = vmatpush.bf16.msrb.mxu0 %v4686_v14  ;;  %3161 = vmatpush.bf16.msra.mxu2 %v4430_v20  ;;  %v5990_v14 = vpop.f32.mrf.mxu1  ;;  %v4766_v20 = vor.u32 %v5554_v10, %v4763_v11  ;;  %v5070_v6 = vor.u32 %v5630_v21, %v5067_v62  ;;  %v5626_v10 = vld [vmem:[#allocation8 + $0x74c] sm:$0xf]  ;;  %v5051_v11 = vld [vmem:[#allocation8 + $0x758] sm:$0xf0] }
 0x19f   :  { %3174 = vmatpush.bf16.msra.mxu3 %v4574_v4  ;;  %3202 = vmatpush.bf16.msrb.mxu1 %v4830_v24  ;;  %v5134_v4 = vor.u32 %v5646_v15, %v5131_v16  ;;  %v5995_v24 = vpop.f32.mrf.mxu0  ;;  %v5650_v15 = vld [vmem:[#allocation9 + $0x8] sm:$0xff] }
 0x1a1   :  { %3190 = vmatpush.bf16.msrb.mxu0 %v4670_v25  ;;  %3162 = vmatpush.bf16.msra.mxu2 %v4414_v32  ;;  %v5642_v25 = vld [vmem:[#allocation8 + $0x7cc] sm:$0xf] }
 0x1a2   :  { %v5602_v32 = vld [vmem:[#allocation8 + $0x68c] sm:$0xf] }
 0x1a3   :  { %3175 = vmatpush.bf16.msra.mxu3 %v4558_v35  ;;  %3203 = vmatpush.bf16.msrb.mxu1 %v4814_v38  ;;  %v4955_v35 = vld [vmem:[#allocation8 + $0x698] sm:$0xf0] }
 0x1a4   :  { %v5099_v38 = vld [vmem:[#allocation8 + $0x7b8] sm:$0xf0]  ;;  %v4958_v42 = vor.u32 %v5602_v32, %v4955_v35 }
 0x1a5   :  { %3191 = vmatpush.bf16.msrb.mxu0 %v4654_v39  ;;  %3163 = vmatpush.bf16.msra.mxu2 %v4398_v47  ;;  %v6001_v37 = vpop.f32.mrf.mxu1  ;;  %v5653_v39 = vld [vmem:[#allocation9 + $0x20] sm:$0xff]  ;;  %v5634_v47 = vld [vmem:[#allocation8 + $0x78c] sm:$0xf] }
 0x1a7   :  { %3176 = vmatpush.bf16.msra.mxu3 %v4542_v48  ;;  %3204 = vmatpush.bf16.msrb.mxu1 %v4798_v52  ;;  %v5083_v48 = vld [vmem:[#allocation8 + $0x798] sm:$0xf0]  ;;  %v2860_v52 = vpop.f32.mrf.mxu0 }
 0x1a8   :  { %v5086_v55 = vor.u32 %v5634_v47, %v5083_v48  ;;  %v5657_v47 = vld [vmem:[#allocation9 + $0x40] sm:$0xff] }
 0x1a9   :  { %3192 = vmatpush.bf16.msrb.mxu0 %v4638_v53  ;;  %3164 = vmatpush.bf16.msra.mxu2 %v4382_v1  ;;  %v4942_v53 = vor.u32 %v5598_v43, %v4939_v45  ;;  %v5661_v1 = vld [vmem:[#allocation9 + $0x60] sm:$0xff] }
 0x1ab   :  { %3177 = vmatpush.bf16.msra.mxu3 %v4526_v3  ;;  %3205 = vmatpush.bf16.msrb.mxu1 %v4782_v8  ;;  %v4907_v8 = vld [vmem:[#allocation8 + $0x638] sm:$0xf0] }
 0x1ac   :  { %3193 = vmatmul.bf16.vlgmr.msrb.gmra.mxu0 %v5950_v54  ;;  %3165 = vmatmul.bf16.vlgmr.msra.gmra.mxu2 %v5942_v34  ;;  %v5118_v54 = vor.u32 %v5642_v25, %v5115_v26  ;;  %v5638_v34 = vld [vmem:[#allocation8 + $0x7ac] sm:$0xf] }
 0x1ad   :  { %3512 = vmatpush.bf16.msra.mxu0 %v5656_v0  ;;  %3213 = vmatpush.bf16.msrb.mxu2 %v5006_v2  ;;  %v5102_v63 = vor.u32 %v5638_v34, %v5099_v38  ;;  %v5651_v0 = vld [vmem:[#allocation9 + $0x10] sm:$0xff]  ;;  %v2874_v3 = vpop.f32.mrf.mxu1  ;;  %v5622_v26 = vld [vmem:[#allocation8 + $0x72c] sm:$0xf] }
 0x1ae   :  { %v5618_v38 = vld [vmem:[#allocation8 + $0x70c] sm:$0xf] }
 0x1af   :  { %3178 = vmatpush.bf16.msra.mxu3 %v4510_v40  ;;  %3206 = vmatpush.bf16.msrb.mxu1 %v4766_v20  ;;  %v4910_v40 = vor.u32 %v5590_v7, %v4907_v8  ;;  %v5054_v20 = vor.u32 %v5626_v10, %v5051_v11  ;;  %v2914_v25 = vpop.f32.mrf.mxu0 }
 0x1b1   :  { %3513 = vmatpush.bf16.msra.mxu0 %v5655_v17  ;;  %3214 = vmatpush.bf16.msrb.mxu2 %v4990_v18  ;;  %v5660_v17 = vld [vmem:[#allocation9 + $0x58] sm:$0xff] }
 0x1b2   :  { %3179 = vmatmul.bf16.vlgmr.msra.gmra.mxu3 %v5945_v60  ;;  %3207 = vmatmul.bf16.vlgmr.msrb.gmra.mxu1 %v5953_v13  ;;  %v2805_v60 = vadd.f32 %v5986_v58, %v1505_v36  ;;  %v2886_v13 = vpop.f32.mrf.mxu2  ;;  %v2831_v58 = vadd.f32 %v5988_v59, %v2817_v61 }
 0x1b3   :  { %3227 = vmatpush.bf16.msrb.mxu3 %v5134_v4  ;;  %3526 = vmatpush.bf16.msra.mxu1 %v5664_v29  ;;  %v5586_v4 = vld [vmem:[#allocation8 + $0x60c] sm:$0xf]  ;;  %v5649_v29 = vld [vmem:[#allocation9] sm:$0xff] }
 0x1b4   :  { %v2819_v2 = vadd.f32 %v5990_v14, %v2805_v60  ;;  %v2845_v9 = vadd.f32 %v5992_v19, %v2831_v58  ;;  %v1506_v60 = vperm.slane %v5998_v28, 1 }
 0x1b5   :  { %3514 = vmatpush.bf16.msra.mxu0 %v5654_v27  ;;  %3215 = vmatpush.bf16.msrb.mxu2 %v4974_v31  ;;  %v2900_v16 = vpop.f32.mrf.mxu3  ;;  %v5035_v27 = vld [vmem:[#allocation8 + $0x738] sm:$0xf0]  ;;  %v2928_v35 = vpop.f32.mrf.mxu1 }
 0x1b6   :  { %v2833_v33 = vadd.f32 %v2832_v30, %v2819_v2  ;;  %v2859_v59 = vadd.f32 %v5995_v24, %v2845_v9  ;;  %v5659_v30 = vld [vmem:[#allocation9 + $0x50] sm:$0xff]  ;;  %v4894_v24 = vor.u32 %v5586_v4, %v4891_v22  ;;  %v5038_v32 = vor.u32 %v5622_v26, %v5035_v27  ;;  %v5669_v4 = vld [vmem:[#allocation9 + $0xa0] sm:$0xff]  ;;  %v5668_v22 = vld [vmem:[#allocation9 + $0x98] sm:$0xff] }
 0x1b7   :  { %3228 = vmatpush.bf16.msrb.mxu3 %v5118_v54  ;;  %3527 = vmatpush.bf16.msra.mxu1 %v5663_v56  ;;  %v5658_v56 = vld [vmem:[#allocation9 + $0x48] sm:$0xff]  ;;  %v2916_v48 = vpop.f32.mrf.mxu0 }
 0x1b8   :  { %v2847_v14 = vadd.f32 %v2846_v50, %v2833_v33  ;;  %v2873_v19 = vadd.f32 %v6001_v37, %v2859_v59  ;;  %v5019_v37 = vld [vmem:[#allocation8 + $0x718] sm:$0xf0]  ;;  %v2917_v57 = vadd.f32 %v2916_v48, %v1506_v60 }
 0x1b9   :  { %3515 = vmatpush.bf16.msra.mxu0 %v5653_v39  ;;  %3216 = vmatpush.bf16.msrb.mxu2 %v4958_v42  ;;  %v5022_v43 = vor.u32 %v5618_v38, %v5019_v37 }
 0x1ba   :  { %v2888_v18 = vpop.f32.mrf.mxu2  ;;  %v2861_v23 = vadd.f32 %v2860_v52, %v2847_v14  ;;  %v2887_v54 = vadd.f32 %v2886_v13, %v2873_v19  ;;  %v2915_v13 = vadd.f32 %v2914_v25, %v1506_v60  ;;  %v5667_v19 = vld [vmem:[#allocation9 + $0x90] sm:$0xff]  ;;  %v5666_v25 = vld [vmem:[#allocation9 + $0x88] sm:$0xff] }
 0x1bb   :  { %3229 = vmatpush.bf16.msrb.mxu3 %v5102_v63  ;;  %3528 = vmatpush.bf16.msra.mxu1 %v5662_v51 }
 0x1bc   :  { %v2875_v31 = vadd.f32 %v2874_v3, %v2861_v23  ;;  %v2901_v36 = vadd.f32 %v2900_v16, %v2887_v54  ;;  %v1507_v54 = vperm.slane %v5998_v28, 2 }
 0x1bd   :  { %3516 = vmatpush.bf16.msra.mxu0 %v5652_v49  ;;  %3217 = vmatpush.bf16.msrb.mxu2 %v4942_v53  ;;  %v2902_v39 = vpop.f32.mrf.mxu3  ;;  %v2930_v51 = vpop.f32.mrf.mxu1 }
 0x1be   :  { %v2889_v34 = vadd.f32 %v2888_v18, %v2875_v31  ;;  %v3241_v45 = vmax.f32 %v2901_v36, 0.0  ;;  %v2931_v61 = vadd.f32 %v2930_v51, %v2917_v57  ;;  %v5671_v18 = vld [vmem:[#allocation9 + $0xb0] sm:$0xff] }
 0x1bf   :  { %3230 = vmatpush.bf16.msrb.mxu3 %v5086_v55  ;;  %3529 = vmatpush.bf16.msra.mxu1 %v5661_v1  ;;  %v2970_v53 = vpop.f32.mrf.mxu0  ;;  %v2929_v55 = vadd.f32 %v2928_v35, %v2915_v13 }
 0x1c0   :  { %v2903_v42 = vadd.f32 %v2902_v39, %v2889_v34 }
 0x1c1   :  { %3517 = vmatpush.bf16.msra.mxu0 %v5651_v0  ;;  %3218 = vmatpush.bf16.msrb.mxu2 %v4926_v5 }
 0x1c2   :  { %v2942_v63 = vpop.f32.mrf.mxu2  ;;  %v3245_v46 = vmax.f32 %v2903_v42, 0.0 }
 0x1c3   :  { %3231 = vmatpush.bf16.msrb.mxu3 %v5070_v6  ;;  %3530 = vmatpush.bf16.msra.mxu1 %v5660_v17 }
 0x1c4   :  { %v3249_v49 = vpack.c.bf16 %v3245_v46, %v3241_v45 }
 0x1c5   :  { %3518 = vmatpush.bf16.msra.mxu0 %v5650_v15  ;;  %3219 = vmatpush.bf16.msrb.mxu2 %v4910_v40  ;;  %v2956_v50 = vpop.f32.mrf.mxu3  ;;  %v2984_v21 = vpop.f32.mrf.mxu1  ;;  %v5672_v15 = vld [vmem:[#allocation9 + $0xb8] sm:$0xff] }
 0x1c7   :  { %3232 = vmatpush.bf16.msrb.mxu3 %v5054_v20  ;;  %3531 = vmatpush.bf16.msra.mxu1 %v5659_v30  ;;  %v2972_v3 = vpop.f32.mrf.mxu0  ;;  %v5670_v20 = vld [vmem:[#allocation9 + $0xa8] sm:$0xff] }
 0x1c9   :  { %3519 = vmatpush.bf16.msra.mxu0 %v5649_v29  ;;  %3220 = vmatpush.bf16.msrb.mxu2 %v4894_v24  ;;  %v5665_v29 = vld [vmem:[#allocation9 + $0x80] sm:$0xff] }
 0x1ca   :  { %v2944_v52 = vpop.f32.mrf.mxu2 }
 0x1cb   :  { %3233 = vmatpush.bf16.msrb.mxu3 %v5038_v32  ;;  %3532 = vmatpush.bf16.msra.mxu1 %v5658_v56  ;;  %v2945_v1 = vadd.f32 %v2944_v52, %v2931_v61  ;;  %v5680_v61 = vld [vmem:[#allocation9 + $0xf8] sm:$0xff] }
 0x1cc   :  { %3221 = vmatmul.bf16.vlgmr.msrb.gmra.mxu2 %v5960_v12  ;;  %3520 = vmatmul.bf16.vlgmr.msra.gmra.mxu0 %v3249_v49  ;;  %v2943_v12 = vadd.f32 %v2942_v63, %v2929_v55 }
 0x1cd   :  { %v2958_v44 = vpop.f32.mrf.mxu3  ;;  %v2986_v7 = vpop.f32.mrf.mxu1  ;;  %3540 = vmatpush.bf16.msra.mxu2 %v5672_v15 }
 0x1ce   :  { %v2957_v0 = vadd.f32 %v2956_v50, %v2943_v12  ;;  %v2959_v2 = vadd.f32 %v2958_v44, %v2945_v1 }
 0x1cf   :  { %3234 = vmatpush.bf16.msrb.mxu3 %v5022_v43  ;;  %3533 = vmatpush.bf16.msra.mxu1 %v5657_v47  ;;  %v3026_v23 = vpop.f32.mrf.mxu0 }
 0x1d0   :  { %v2971_v58 = vadd.f32 %v2970_v53, %v2957_v0  ;;  %v2973_v6 = vadd.f32 %v2972_v3, %v2959_v2  ;;  %v3027_v35 = vadd.f32 %v3026_v23, %v1507_v54  ;;  %v5678_v2 = vld [vmem:[#allocation9 + $0xe8] sm:$0xff]  ;;  %v5676_v3 = vld [vmem:[#allocation9 + $0xd8] sm:$0xff] }
 0x1d1   :  { %3541 = vmatpush.bf16.msra.mxu2 %v5671_v18 }
 0x1d2   :  { %3235 = vmatmul.bf16.vlgmr.msrb.gmra.mxu3 %v5964_v41  ;;  %v2998_v62 = vpop.f32.mrf.mxu2  ;;  %v2985_v41 = vadd.f32 %v2984_v21, %v2971_v58  ;;  %v2987_v33 = vadd.f32 %v2986_v7, %v2973_v6  ;;  %v5679_v21 = vld [vmem:[#allocation9 + $0xf0] sm:$0xff]  ;;  %v5677_v58 = vld [vmem:[#allocation9 + $0xe0] sm:$0xff] }
 0x1d3   :  { %3554 = vmatpush.bf16.msra.mxu3 %v5680_v61 }
 0x1d4   :  { %v2999_v9 = vadd.f32 %v2998_v62, %v2985_v41  ;;  %v5674_v41 = vld [vmem:[#allocation9 + $0xc8] sm:$0xff] }
 0x1d5   :  { %v3012_v5 = vpop.f32.mrf.mxu3  ;;  %3542 = vmatpush.bf16.msra.mxu2 %v5670_v20  ;;  %v3040_v26 = vpop.f32.mrf.mxu1 }
 0x1d6   :  { %v3013_v10 = vadd.f32 %v3012_v5, %v2999_v9  ;;  %v3041_v34 = vadd.f32 %v3040_v26, %v3027_v35  ;;  %v5675_v5 = vld [vmem:[#allocation9 + $0xd0] sm:$0xff]  ;;  %v5673_v9 = vld [vmem:[#allocation9 + $0xc0] sm:$0xff] }
 0x1d7   :  { %v3028_v30 = vpop.f32.mrf.mxu0  ;;  %3555 = vmatpush.bf16.msra.mxu3 %v5679_v21 }
 0x1d8   :  { %v3242_v14 = vmax.f32 %v3013_v10, 0.0  ;;  %v3029_v38 = vadd.f32 %v3028_v30, %v1507_v54 }
 0x1d9   :  { %3543 = vmatpush.bf16.msra.mxu2 %v5669_v4 }
 0x1da   :  { %v3000_v8 = vpop.f32.mrf.mxu2 }
 0x1db   :  { %v3001_v11 = vadd.f32 %v3000_v8, %v2987_v33  ;;  %3556 = vmatpush.bf16.msra.mxu3 %v5678_v2 }
 0x1dd   :  { %v3014_v16 = vpop.f32.mrf.mxu3  ;;  %3544 = vmatpush.bf16.msra.mxu2 %v5668_v22  ;;  %v3042_v24 = vpop.f32.mrf.mxu1 }
 0x1de   :  { %v3015_v17 = vadd.f32 %v3014_v16, %v3001_v11  ;;  %v3043_v39 = vadd.f32 %v3042_v24, %v3029_v38  ;;  %v1508_v11 = vperm.slane %v5998_v28, 3 }
 0x1df   :  { %3557 = vmatpush.bf16.msra.mxu3 %v5677_v58 }
 0x1e0   :  { %v3246_v59 = vmax.f32 %v3015_v17, 0.0 }
 0x1e1   :  { %3545 = vmatpush.bf16.msra.mxu2 %v5667_v19 }
 0x1e2   :  { %v3250_v40 = vpack.c.bf16 %v3246_v59, %v3242_v14 }
 0x1e3   :  { %3558 = vmatpush.bf16.msra.mxu3 %v5676_v3 }
 0x1e4   :  { %3534 = vmatmul.bf16.vlgmr.msra.gmra.mxu1 %v3250_v40 }
 0x1e5   :  { %3546 = vmatpush.bf16.msra.mxu2 %v5666_v25 }
 0x1e7   :  { %3559 = vmatpush.bf16.msra.mxu3 %v5675_v5 }
 0x1e9   :  { %3547 = vmatpush.bf16.msra.mxu2 %v5665_v29  ;;  %v3082_v36 = vpop.f32.mrf.mxu0 }
 0x1eb   :  { %3560 = vmatpush.bf16.msra.mxu3 %v5674_v41 }
 0x1ef   :  { %v3054_v27 = vpop.f32.mrf.mxu2  ;;  %v3096_v42 = vpop.f32.mrf.mxu1  ;;  %3561 = vmatpush.bf16.msra.mxu3 %v5673_v9 }
 0x1f0   :  { %v3055_v56 = vadd.f32 %v3054_v27, %v3041_v34 }
 0x1f1   :  { %v3084_v48 = vpop.f32.mrf.mxu0 }
 0x1f5   :  { %v3068_v31 = vpop.f32.mrf.mxu3 }
 0x1f6   :  { %v3069_v63 = vadd.f32 %v3068_v31, %v3055_v56 }
 0x1f7   :  { %v3056_v32 = vpop.f32.mrf.mxu2  ;;  %v3098_v60 = vpop.f32.mrf.mxu1 }
 0x1f8   :  { %v3057_v43 = vadd.f32 %v3056_v32, %v3043_v39  ;;  %v3083_v47 = vadd.f32 %v3082_v36, %v3069_v63 }
 0x1fa   :  { %v3097_v51 = vadd.f32 %v3096_v42, %v3083_v47 }
 0x1fd   :  { %v3070_v37 = vpop.f32.mrf.mxu3 }
 0x1fe   :  { %v3071_v46 = vadd.f32 %v3070_v37, %v3057_v43  ;;  %v5695_v43 = vld [vmem:[#allocation11 + $0xc] ss:$0 sm:$0xff] }
 0x200   :  { %v3085_v50 = vadd.f32 %v3084_v48, %v3071_v46 }
 0x202   :  { %v3099_v53 = vadd.f32 %v3098_v60, %v3085_v50 }
 0x209   :  { %v3138_v6 = vpop.f32.mrf.mxu0 }
 0x20a   :  { %v3139_v17 = vadd.f32 %v3138_v6, %v1508_v11 }
 0x20f   :  { %v3110_v45 = vpop.f32.mrf.mxu2  ;;  %v3152_v7 = vpop.f32.mrf.mxu1 }
 0x210   :  { %v3111_v13 = vadd.f32 %v3110_v45, %v3097_v51  ;;  %v3153_v59 = vadd.f32 %v3152_v7, %v3139_v17 }
 0x211   :  { %v3140_v33 = vpop.f32.mrf.mxu0 }
 0x212   :  { %v3141_v18 = vadd.f32 %v3140_v33, %v1508_v11 }
 0x215   :  { %v3124_v49 = vpop.f32.mrf.mxu3 }
 0x216   :  { %v3125_v55 = vadd.f32 %v3124_v49, %v3111_v13 }
 0x217   :  { %v3112_v52 = vpop.f32.mrf.mxu2  ;;  %v3154_v15 = vpop.f32.mrf.mxu1 }
 0x218   :  { %v3113_v57 = vadd.f32 %v3112_v52, %v3099_v53  ;;  %v3243_v62 = vmax.f32 %v3125_v55, 0.0  ;;  %v3155_v20 = vadd.f32 %v3154_v15, %v3141_v18 }
 0x21d   :  { %v3126_v44 = vpop.f32.mrf.mxu3 }
 0x21e   :  { %v3127_v12 = vadd.f32 %v3126_v44, %v3113_v57 }
 0x220   :  { %v3247_v0 = vmax.f32 %v3127_v12, 0.0 }
 0x222   :  { %v3251_v1 = vpack.c.bf16 %v3247_v0, %v3243_v62 }
 0x224   :  { %3548 = vmatmul.bf16.vlgmr.msra.gmra.mxu2 %v3251_v1 }
 0x229   :  { %v3194_v14 = vpop.f32.mrf.mxu0 }
 0x22f   :  { %v3166_v8 = vpop.f32.mrf.mxu2  ;;  %v3208_v22 = vpop.f32.mrf.mxu1 }
 0x230   :  { %v3167_v4 = vadd.f32 %v3166_v8, %v3153_v59 }
 0x231   :  { %v3196_v29 = vpop.f32.mrf.mxu0 }
 0x235   :  { %v3180_v10 = vpop.f32.mrf.mxu3 }
 0x236   :  { %v3181_v19 = vadd.f32 %v3180_v10, %v3167_v4 }
 0x237   :  { %v3168_v16 = vpop.f32.mrf.mxu2  ;;  %v3210_v28 = vpop.f32.mrf.mxu1 }
 0x238   :  { %v3169_v23 = vadd.f32 %v3168_v16, %v3155_v20  ;;  %v3195_v27 = vadd.f32 %v3194_v14, %v3181_v19 }
 0x23a   :  { %v3209_v54 = vadd.f32 %v3208_v22, %v3195_v27 }
 0x23d   :  { %v3182_v40 = vpop.f32.mrf.mxu3 }
 0x23e   :  { %v3183_v26 = vadd.f32 %v3182_v40, %v3169_v23 }
 0x240   :  { %v3197_v31 = vadd.f32 %v3196_v29, %v3183_v26 }
 0x242   :  { %v3211_v35 = vadd.f32 %v3210_v28, %v3197_v31 }
 0x249   :  { %v3521_v63 = vpop.f32.mrf.mxu0 }
 0x24a   :  { %v3522_v47 = vadd.f32 %v5695_v43, %v3521_v63 }
 0x24f   :  { %v3222_v25 = vpop.f32.mrf.mxu2 }
 0x250   :  { %v3223_v32 = vadd.f32 %v3222_v25, %v3209_v54 }
 0x251   :  { %v3523_v50 = vpop.f32.mrf.mxu0 }
 0x252   :  { %v3524_v13 = vadd.f32 %v5695_v43, %v3523_v50 }
 0x255   :  { %v3236_v30 = vpop.f32.mrf.mxu3 }
 0x256   :  { %v3237_v36 = vadd.f32 %v3236_v30, %v3223_v32 }
 0x257   :  { %v3224_v24 = vpop.f32.mrf.mxu2 }
 0x258   :  { %v3225_v34 = vadd.f32 %v3224_v24, %v3211_v35  ;;  %v3244_v39 = vmax.f32 %v3237_v36, 0.0 }
 0x25d   :  { %v3238_v38 = vpop.f32.mrf.mxu3 }
 0x25e   :  { %v3239_v37 = vadd.f32 %v3238_v38, %v3225_v34 }
 0x260   :  { %v3248_v56 = vmax.f32 %v3239_v37, 0.0 }
 0x261   :  { %v3535_v45 = vpop.f32.mrf.mxu1 }
 0x262   :  { %v3252_v42 = vpack.c.bf16 %v3248_v56, %v3244_v39  ;;  %v3536_v48 = vadd.f32 %v3535_v45, %v3522_v47 }
 0x264   :  { %3562 = vmatmul.bf16.vlgmr.msra.gmra.mxu3 %v3252_v42 }
 0x269   :  { %v3537_v52 = vpop.f32.mrf.mxu1 }
 0x26a   :  { %v3538_v55 = vadd.f32 %v3537_v52, %v3524_v13 }
 0x2a7   :  { %v3549_v46 = vpop.f32.mrf.mxu2 }
 0x2a8   :  { %v3550_v49 = vadd.f32 %v3549_v46, %v3536_v48 }
 0x2af   :  { %v3551_v53 = vpop.f32.mrf.mxu2 }
 0x2b0   :  { %v3552_v57 = vadd.f32 %v3551_v53, %v3538_v55 }
 0x2e7   :  { %v3563_v51 = vpop.f32.mrf.mxu3 }
 0x2e8   :  { %v3564_v60 = vadd.f32 %v3563_v51, %v3550_v49 }
 0x2ea   :  { %3568 = vst [vmem:[#allocation12] sm:$0xff] %v3564_v60 }
 0x2ef   :  { %v3565_v44 = vpop.f32.mrf.mxu3 }
 0x2f0   :  { %v3566_v61 = vadd.f32 %v3565_v44, %v3552_v57 }
 0x2f2   :  { %3569 = vst [vmem:[#allocation12 + $0x8] sm:$0xff] %v3566_v61 }
 0x2f3   :  { %3582 = dma.vmem_to_hbm [thread:$0]  %s3575_s22, 256, %s3577_s25, [#allocation5], %s5855_s13, %s5855_s13, %s5856_s14  }
 0x2f4   :  { %5846 = dma.done.wait [#allocation5], 256  }
 0x2f5   :  { %5847 = vsyncadd [#allocation5], 4294967040 }
 0x2f6   :  { %3587 = vsyncpa [#allocation4], 1 }
 0x2f7   :  { %3588 = vsyncpa [#allocation7], 1 }
 0x2f8   :  { %3589 = vsyncpa [#allocation10], 1 }
 0x2f9   :  { %3590 = vsyncpa [#allocation5], 1 }

</bundles_post_ra>
